<compile_context>
chip_gen: v6e
topology: v6e:2x2x1
jax: 0.10.0
libtpu: 0.0.40
codegen_flags: <defaults>
</compile_context>

<pallas_src>
import jax
import jax.numpy as jnp
import numpy as np
from jax.experimental import pallas as pl
from jax.experimental.pallas import tpu as pltpu

EPS = 1e-5
PAD_L = 16          # left/right margin in the padded scratch; 16 keeps the
                    # interior store sublane-aligned for packed bf16 rows.

_VMEM_LIMIT = None


def _vmem_limit_bytes():
    """~3/4 of physical VMEM (v5e/v6e: 128 MiB -> 96; v7x: 64 MiB -> 48)."""
    global _VMEM_LIMIT
    if _VMEM_LIMIT is None:
        try:
            cap = int(pltpu.get_tpu_info().vmem_capacity_bytes)
        except Exception:
            cap = 64 << 20
        _VMEM_LIMIT = int(min(cap * 3 // 4, 100 << 20))
    return _VMEM_LIMIT


# ----------------------------------------------------------------------------
# Kernels
# ----------------------------------------------------------------------------
def _zero_halo(xp_ref, H, W):
    """Zero only the halo region actually read by the 3x3 taps.

    Done every grid step: with a 'parallel' batch grid each core owns its own
    (uninitialized) scratch, so a pid==0 init would be wrong on megacore.
    """
    Wp, Cin = xp_ref.shape[1], xp_ref.shape[2]
    dt = xp_ref.dtype
    xp_ref[0] = jnp.zeros((Wp, Cin), dt)                       # top halo row
    xp_ref[H + 1] = jnp.zeros((Wp, Cin), dt)                   # bottom halo row
    xp_ref[pl.ds(1, H), pl.ds(0, PAD_L), :] = jnp.zeros((H, PAD_L, Cin), dt)
    xp_ref[pl.ds(1, H), pl.ds(PAD_L + W, PAD_L), :] = jnp.zeros((H, PAD_L, Cin), dt)


def _conv3x3_tail(xp_ref, w_ref, y_ref, sum_ref, ssq_ref):
    """3x3 conv as 3 accumulated per-ky im2col matmuls (bf16 in, f32 acc),
    plus per-image sum / sum-of-squares for the following BatchNorm."""
    H, W, Co = y_ref.shape[1], y_ref.shape[2], y_ref.shape[3]
    Cin = xp_ref.shape[2]
    xp = xp_ref[...]                        # (H+2, W+2*PAD_L, Cin) bf16
    w = w_ref[...]                          # (9*Cin, Co)          bf16
    acc = jnp.zeros((H * W, Co), jnp.float32)
    for ky in range(3):                     # bounded im2col: K = 3*Cin per step
        patches = jnp.concatenate(
            [xp[ky:ky + H, PAD_L - 1 + kx:PAD_L - 1 + kx + W, :]
             for kx in range(3)],
            axis=-1).reshape(H * W, 3 * Cin)
        acc = acc + jnp.dot(patches, w[ky * 3 * Cin:(ky + 1) * 3 * Cin, :],
                            preferred_element_type=jnp.float32)
    y_ref[0] = acc.reshape(H, W, Co).astype(y_ref.dtype)        # bf16 store
    sum_ref[0] = jnp.sum(acc, axis=0, keepdims=True)            # f32 partials
    ssq_ref[0] = jnp.sum(acc * acc, axis=0, keepdims=True)


def conv1_stats_kernel(x_ref, w_ref, y_ref, sum_ref, ssq_ref, xp_ref):
    """conv1 (3x3, pad 1, bias dropped — BN cancels it) + BN1 partial stats."""
    H, W = x_ref.shape[1], x_ref.shape[2]
    _zero_halo(xp_ref, H, W)
    xp_ref[pl.ds(1, H), pl.ds(PAD_L, W), :] = x_ref[0].astype(xp_ref.dtype)
    _conv3x3_tail(xp_ref, w_ref, y_ref, sum_ref, ssq_ref)


def bn1_prelu_conv2_stats_kernel(y1_ref, scale_ref, shift_ref, alpha_ref,
                                 w_ref, y2_ref, sum_ref, ssq_ref, xp_ref):
    """BN1-normalize + PReLU prologue, then conv2 (bias dropped) + BN2 stats."""
    H, W = y1_ref.shape[1], y1_ref.shape[2]
    _zero_halo(xp_ref, H, W)
    yn = y1_ref[0].astype(jnp.float32) * scale_ref[0] + shift_ref[0]   # BN1
    a = alpha_ref[...]                                                 # (1, 1)
    yn = jnp.where(yn >= 0, yn, a * yn)                                # PReLU
    xp_ref[pl.ds(1, H), pl.ds(PAD_L, W), :] = yn.astype(xp_ref.dtype)
    _conv3x3_tail(xp_ref, w_ref, y2_ref, sum_ref, ssq_ref)


def bn2_add_kernel(y2_ref, scale_ref, shift_ref, res_ref, o_ref):
    """BN2-normalize + residual add on a lane-dense (rows, W*C) view."""
    o_ref[...] = (y2_ref[...].astype(jnp.float32) * scale_ref[0]
                  + shift_ref[0] + res_ref[...])


# ----------------------------------------------------------------------------
# Pallas wrappers
# ----------------------------------------------------------------------------
def conv1_bn_stats(x, w_mat):
    N, H, W, Cin = x.shape
    Co = w_mat.shape[1]
    stat_spec = pl.BlockSpec((1, 1, Co), lambda n: (n, 0, 0))
    return pl.pallas_call(
        conv1_stats_kernel,
        grid=(N,),
        in_specs=[
            pl.BlockSpec((1, H, W, Cin), lambda n: (n, 0, 0, 0)),
            pl.BlockSpec((9 * Cin, Co), lambda n: (0, 0)),
        ],
        out_specs=(
            pl.BlockSpec((1, H, W, Co), lambda n: (n, 0, 0, 0)),
            stat_spec, stat_spec,
        ),
        out_shape=(
            jax.ShapeDtypeStruct((N, H, W, Co), jnp.bfloat16),
            jax.ShapeDtypeStruct((N, 1, Co), jnp.float32),
            jax.ShapeDtypeStruct((N, 1, Co), jnp.float32),
        ),
        scratch_shapes=[pltpu.VMEM((H + 2, W + 2 * PAD_L, Cin), jnp.bfloat16)],
        compiler_params=pltpu.CompilerParams(
            dimension_semantics=("parallel",),
            vmem_limit_bytes=_vmem_limit_bytes()),
    )(x, w_mat)


def bn1_prelu_conv2_bn_stats(y1, scale1, shift1, alpha, w_mat):
    N, H, W, Cin = y1.shape
    Co = w_mat.shape[1]
    param_spec = pl.BlockSpec((1, Cin), lambda n: (0, 0))
    stat_spec = pl.BlockSpec((1, 1, Co), lambda n: (n, 0, 0))
    return pl.pallas_call(
        bn1_prelu_conv2_stats_kernel,
        grid=(N,),
        in_specs=[
            pl.BlockSpec((1, H, W, Cin), lambda n: (n, 0, 0, 0)),
            param_spec, param_spec,
            pl.BlockSpec((1, 1), lambda n: (0, 0)),
            pl.BlockSpec((9 * Cin, Co), lambda n: (0, 0)),
        ],
        out_specs=(
            pl.BlockSpec((1, H, W, Co), lambda n: (n, 0, 0, 0)),
            stat_spec, stat_spec,
        ),
        out_shape=(
            jax.ShapeDtypeStruct((N, H, W, Co), jnp.bfloat16),
            jax.ShapeDtypeStruct((N, 1, Co), jnp.float32),
            jax.ShapeDtypeStruct((N, 1, Co), jnp.float32),
        ),
        scratch_shapes=[pltpu.VMEM((H + 2, W + 2 * PAD_L, Cin), jnp.bfloat16)],
        compiler_params=pltpu.CompilerParams(
            dimension_semantics=("parallel",),
            vmem_limit_bytes=_vmem_limit_bytes()),
    )(y1, scale1, shift1, alpha, w_mat)


def _row_tile(rows, lanes):
    """Row tile for the lane-dense elementwise pass: large enough to amortize
    the ~0.35 us/step overhead, small enough that the double-buffered
    (2 in + 1 out) f32/bf16 blocks stay well inside VMEM."""
    budget_rows = max(8, (1 << 20) // max(lanes, 1))   # ~4 MiB per f32 block
    t = min(512, budget_rows)
    t -= t % 8
    t = max(t, 8)
    return rows if t >= rows else t


def bn2_residual_add(y2, scale_c, shift_c, x):
    N, H, W, C = y2.shape
    R, L = N * H, W * C
    y2f = y2.reshape(R, L)             # contiguous reshape: lane-dense view
    xf = x.reshape(R, L)
    scale = jnp.tile(scale_c, (1, W))  # per-channel -> (1, W*C)
    shift = jnp.tile(shift_c, (1, W))
    TR = _row_tile(R, L)
    rows_spec = pl.BlockSpec((TR, L), lambda r: (r, 0))
    param_spec = pl.BlockSpec((1, L), lambda r: (0, 0))
    out = pl.pallas_call(
        bn2_add_kernel,
        grid=(pl.cdiv(R, TR),),
        in_specs=[rows_spec, param_spec, param_spec, rows_spec],
        out_specs=pl.BlockSpec((TR, L), lambda r: (r, 0)),
        out_shape=jax.ShapeDtypeStruct((R, L), jnp.float32),
        compiler_params=pltpu.CompilerParams(
            dimension_semantics=("parallel",),
            vmem_limit_bytes=_vmem_limit_bytes()),
    )(y2f, scale, shift, xf)
    return out.reshape(N, H, W, C)


# ----------------------------------------------------------------------------
# Parameter preprocessing (one-time, outside the jitted forward)
# ----------------------------------------------------------------------------
def prepare_params(p):
    def wmat(w_oihw):
        # OIHW -> (ky, kx, Cin, Cout) -> (9*Cin, Cout), matching the per-ky
        # im2col column order; bf16 feeds the MXU at full rate.
        return jnp.transpose(w_oihw, (2, 3, 1, 0)).reshape(
            -1, w_oihw.shape[0]).astype(jnp.bfloat16)
    # Conv biases intentionally dropped: training-mode BN cancels them exactly.
    return {
        "w1": wmat(p["w1"]),
        "g1": p["g1"].reshape(1, -1).astype(jnp.float32),
        "be1": p["be1"].reshape(1, -1).astype(jnp.float32),
        "alpha": jnp.full((1, 1), p["alpha"], jnp.float32),
        "w2": wmat(p["w2"]),
        "g2": p["g2"].reshape(1, -1).astype(jnp.float32),
        "be2": p["be2"].reshape(1, -1).astype(jnp.float32),
    }


def _bn_scale_shift(s, sq, gamma, beta, count):
    mean = s / count
    var = jnp.maximum(sq / count - mean * mean, 0.0)    # clamp: avoid rsqrt(<0)
    scale = gamma * jax.lax.rsqrt(var + EPS)
    shift = beta - mean * scale
    return scale, shift


# ----------------------------------------------------------------------------
# ResidualBlock forward (NCHW in / NCHW out)
# ----------------------------------------------------------------------------
@jax.jit
def residual_block_forward(x_nchw, prep):
    x = jnp.transpose(x_nchw, (0, 2, 3, 1)).astype(jnp.float32)   # NCHW -> NHWC
    N, H, W, C = x.shape
    count = float(N * H * W)

    y1, s1, q1 = conv1_bn_stats(x, prep["w1"])
    sc1, sh1 = _bn_scale_shift(jnp.sum(s1, axis=0), jnp.sum(q1, axis=0),
                               prep["g1"], prep["be1"], count)

    y2, s2, q2 = bn1_prelu_conv2_bn_stats(y1, sc1, sh1, prep["alpha"],
                                          prep["w2"])
    sc2, sh2 = _bn_scale_shift(jnp.sum(s2, axis=0), jnp.sum(q2, axis=0),
                               prep["g2"], prep["be2"], count)

    out = bn2_residual_add(y2, sc2, sh2, x)
    return jnp.transpose(out, (0, 3, 1, 2))                       # NHWC -> NCHW


# ----------------------------------------------------------------------------
# Pure-JAX f32 reference (mirrors PyTorch training-mode forward, with biases)
# ----------------------------------------------------------------------------
def ref_forward(x, p):
    def conv(x, w, b):
        y = jax.lax.conv_general_dilated(
            x, w, (1, 1), ((1, 1), (1, 1)),
            dimension_numbers=("NCHW", "OIHW", "NCHW"))
        return y + b[None, :, None, None]

    def bn(x, g, be):
        mean = x.mean(axis=(0, 2, 3), keepdims=True)
        var = x.var(axis=(0, 2, 3), keepdims=True)   # biased, as in PyTorch BN
        return ((x - mean) / jnp.sqrt(var + EPS)
                * g[None, :, None, None] + be[None, :, None, None])

    y = bn(conv(x, p["w1"], p["b1"]), p["g1"], p["be1"])
    y = jnp.where(y >= 0, y, p["alpha"] * y)                 # PReLU
    y = bn(conv(y, p["w2"], p["b2"]), p["g2"], p["be2"])
    return y + x


# ----------------------------------------------------------------------------
if __name__ == "__main__":
    N, C, H, W = 2, 4, 16, 16
    keys = jax.random.split(jax.random.PRNGKey(0), 9)

    params = {
        "w1": 0.1 * jax.random.normal(keys[0], (C, C, 3, 3), jnp.float32),
        "b1": 0.1 * jax.random.normal(keys[1], (C,), jnp.float32),
        "g1": 1.0 + 0.1 * jax.random.normal(keys[2], (C,), jnp.float32),
        "be1": 0.1 * jax.random.normal(keys[3], (C,), jnp.float32),
        "alpha": jnp.float32(0.25),   # PReLU default init (single parameter)
        "w2": 0.1 * jax.random.normal(keys[4], (C, C, 3, 3), jnp.float32),
        "b2": 0.1 * jax.random.normal(keys[5], (C,), jnp.float32),
        "g2": 1.0 + 0.1 * jax.random.normal(keys[6], (C,), jnp.float32),
        "be2": 0.1 * jax.random.normal(keys[7], (C,), jnp.float32),
    }
    x = jax.random.normal(keys[8], (N, C, H, W), jnp.float32)

    prep = prepare_params(params)          # one-time weight/param preprocessing
    out = residual_block_forward(x, prep)
    out = jax.block_until_ready(out)

    ref = ref_forward(x, params)
    assert out.shape == ref.shape == (N, C, H, W)
    # Tolerance accounts for bf16 MXU inputs/weights and bf16 y1/y2 storage
    # (stats and matmul accumulation stay f32); reference is pure f32.
    np.testing.assert_allclose(np.asarray(out), np.asarray(ref),
                               rtol=4e-2, atol=4e-2)
    print("KERNEL_OK")
</pallas_src>

<mosaic_0001>
module attributes {stable_mosaic.version = 11 : i64} {
  func.func @conv1_stats_kernel(%arg0: i32, %arg1: memref<1x16x16x4xf32, #tpu.memory_space<vmem>>, %arg2: memref<36x4xbf16, #tpu.memory_space<vmem>>, %arg3: memref<1x16x16x4xbf16, #tpu.memory_space<vmem>>, %arg4: memref<1x1x4xf32, #tpu.memory_space<vmem>>, %arg5: memref<1x1x4xf32, #tpu.memory_space<vmem>>, %arg6: memref<18x48x4xbf16, #tpu.memory_space<vmem>>) attributes {dimension_semantics = [#tpu.dimension_semantics<parallel>], iteration_bounds = array<i64: 2>, scalar_prefetch = 0 : i64, scratch_operands = 1 : i64, tpu.core_type = #tpu.core_type<tc>, window_params = [{transform_indices = @transform_0, window_bounds = array<i64: 1, 16, 16, 4>}, {pipeline_mode = #tpu.pipeline_mode<synchronous>, transform_indices = @transform_1, window_bounds = array<i64: 36, 4>}, {transform_indices = @transform_2, window_bounds = array<i64: 1, 16, 16, 4>}, {transform_indices = @transform_3, window_bounds = array<i64: 1, 1, 4>}, {transform_indices = @transform_4, window_bounds = array<i64: 1, 1, 4>}]} {
    %cst = arith.constant 0.000000e+00 : bf16
    %0 = vector.broadcast %cst : bf16 to vector<48x4xbf16>
    %c0 = arith.constant 0 : index
    %c0_0 = arith.constant 0 : index
    %c0_1 = arith.constant 0 : index
    %1 = vector.load %arg6[%c0, %c0_0, %c0_1] : memref<18x48x4xbf16, #tpu.memory_space<vmem>>, vector<1x48x4xbf16>
    %2 = vector.shape_cast %1 : vector<1x48x4xbf16> to vector<48x4xbf16>
    %3 = vector.shape_cast %0 : vector<48x4xbf16> to vector<1x48x4xbf16>
    tpu.vector_store %arg6[%c0, %c0_0, %c0_1], %3 {strides = array<i32>} : memref<18x48x4xbf16, #tpu.memory_space<vmem>>, vector<1x48x4xbf16>,
    %cst_2 = arith.constant 0.000000e+00 : bf16
    %4 = vector.broadcast %cst_2 : bf16 to vector<48x4xbf16>
    %c17 = arith.constant 17 : index
    %c0_3 = arith.constant 0 : index
    %c0_4 = arith.constant 0 : index
    %5 = vector.load %arg6[%c17, %c0_3, %c0_4] : memref<18x48x4xbf16, #tpu.memory_space<vmem>>, vector<1x48x4xbf16>
    %6 = vector.shape_cast %5 : vector<1x48x4xbf16> to vector<48x4xbf16>
    %7 = vector.shape_cast %4 : vector<48x4xbf16> to vector<1x48x4xbf16>
    tpu.vector_store %arg6[%c17, %c0_3, %c0_4], %7 {strides = array<i32>} : memref<18x48x4xbf16, #tpu.memory_space<vmem>>, vector<1x48x4xbf16>,
    %cst_5 = arith.constant 0.000000e+00 : bf16
    %8 = vector.broadcast %cst_5 : bf16 to vector<16x16x4xbf16>
    %c1 = arith.constant 1 : index
    %c0_6 = arith.constant 0 : index
    %c0_7 = arith.constant 0 : index
    %9 = vector.load %arg6[%c1, %c0_6, %c0_7] : memref<18x48x4xbf16, #tpu.memory_space<vmem>>, vector<16x16x4xbf16>
    tpu.vector_store %arg6[%c1, %c0_6, %c0_7], %8 {strides = array<i32>} : memref<18x48x4xbf16, #tpu.memory_space<vmem>>, vector<16x16x4xbf16>,
    %cst_8 = arith.constant 0.000000e+00 : bf16
    %10 = vector.broadcast %cst_8 : bf16 to vector<16x16x4xbf16>
    %c1_9 = arith.constant 1 : index
    %c32 = arith.constant 32 : index
    %c0_10 = arith.constant 0 : index
    %11 = vector.load %arg6[%c1_9, %c32, %c0_10] : memref<18x48x4xbf16, #tpu.memory_space<vmem>>, vector<16x16x4xbf16>
    tpu.vector_store %arg6[%c1_9, %c32, %c0_10], %10 {strides = array<i32>} : memref<18x48x4xbf16, #tpu.memory_space<vmem>>, vector<16x16x4xbf16>,
    %c0_11 = arith.constant 0 : index
    %c0_12 = arith.constant 0 : index
    %c0_13 = arith.constant 0 : index
    %c0_14 = arith.constant 0 : index
    %12 = vector.load %arg1[%c0_11, %c0_12, %c0_13, %c0_14] : memref<1x16x16x4xf32, #tpu.memory_space<vmem>>, vector<1x16x16x4xf32>
    %13 = vector.shape_cast %12 : vector<1x16x16x4xf32> to vector<16x16x4xf32>
    %14 = arith.truncf %13 : vector<16x16x4xf32> to vector<16x16x4xbf16>
    %c1_15 = arith.constant 1 : index
    %c16 = arith.constant 16 : index
    %c0_16 = arith.constant 0 : index
    %15 = vector.load %arg6[%c1_15, %c16, %c0_16] : memref<18x48x4xbf16, #tpu.memory_space<vmem>>, vector<16x16x4xbf16>
    tpu.vector_store %arg6[%c1_15, %c16, %c0_16], %14 {strides = array<i32>} : memref<18x48x4xbf16, #tpu.memory_space<vmem>>, vector<16x16x4xbf16>,
    %c0_17 = arith.constant 0 : index
    %c0_18 = arith.constant 0 : index
    %c0_19 = arith.constant 0 : index
    %16 = vector.load %arg6[%c0_17, %c0_18, %c0_19] : memref<18x48x4xbf16, #tpu.memory_space<vmem>>, vector<18x48x4xbf16>
    %c0_20 = arith.constant 0 : index
    %c0_21 = arith.constant 0 : index
    %17 = vector.load %arg2[%c0_20, %c0_21] : memref<36x4xbf16, #tpu.memory_space<vmem>>, vector<36x4xbf16>
    %cst_22 = arith.constant 0.000000e+00 : f32
    %18 = vector.broadcast %cst_22 : f32 to vector<256x4xf32>
    %19 = vector.extract_strided_slice %16 {offsets = [0, 15, 0], sizes = [16, 16, 4], strides = [1, 1, 1]} : vector<18x48x4xbf16> to vector<16x16x4xbf16>
    %20 = vector.extract_strided_slice %16 {offsets = [0, 16, 0], sizes = [16, 16, 4], strides = [1, 1, 1]} : vector<18x48x4xbf16> to vector<16x16x4xbf16>
    %21 = vector.extract_strided_slice %16 {offsets = [0, 17, 0], sizes = [16, 16, 4], strides = [1, 1, 1]} : vector<18x48x4xbf16> to vector<16x16x4xbf16>
    %22 = tpu.concatenate %19, %20, %21 in 2 : vector<16x16x4xbf16>, vector<16x16x4xbf16>, vector<16x16x4xbf16> -> vector<16x16x12xbf16>
    %23 = vector.shape_cast %22 : vector<16x16x12xbf16> to vector<256x12xbf16>
    %24 = vector.extract_strided_slice %17 {offsets = [0, 0], sizes = [12, 4], strides = [1, 1]} : vector<36x4xbf16> to vector<12x4xbf16>
    %cst_23 = arith.constant dense<0.000000e+00> : vector<256x4xf32>
    %25 = tpu.matmul %23, %24, %cst_23 {dimension_numbers = #tpu.dot_dimension_numbers<[1], [0], [0], [1], [0, 0, 1, 1], [], []>} : vector<256x12xbf16>, vector<12x4xbf16>, vector<256x4xf32> -> vector<256x4xf32>
    %26 = arith.addf %18, %25 : vector<256x4xf32>
    %27 = vector.extract_strided_slice %16 {offsets = [1, 15, 0], sizes = [16, 16, 4], strides = [1, 1, 1]} : vector<18x48x4xbf16> to vector<16x16x4xbf16>
    %28 = vector.extract_strided_slice %16 {offsets = [1, 16, 0], sizes = [16, 16, 4], strides = [1, 1, 1]} : vector<18x48x4xbf16> to vector<16x16x4xbf16>
    %29 = vector.extract_strided_slice %16 {offsets = [1, 17, 0], sizes = [16, 16, 4], strides = [1, 1, 1]} : vector<18x48x4xbf16> to vector<16x16x4xbf16>
    %30 = tpu.concatenate %27, %28, %29 in 2 : vector<16x16x4xbf16>, vector<16x16x4xbf16>, vector<16x16x4xbf16> -> vector<16x16x12xbf16>
    %31 = vector.shape_cast %30 : vector<16x16x12xbf16> to vector<256x12xbf16>
    %32 = vector.extract_strided_slice %17 {offsets = [12, 0], sizes = [12, 4], strides = [1, 1]} : vector<36x4xbf16> to vector<12x4xbf16>
    %cst_24 = arith.constant dense<0.000000e+00> : vector<256x4xf32>
    %33 = tpu.matmul %31, %32, %cst_24 {dimension_numbers = #tpu.dot_dimension_numbers<[1], [0], [0], [1], [0, 0, 1, 1], [], []>} : vector<256x12xbf16>, vector<12x4xbf16>, vector<256x4xf32> -> vector<256x4xf32>
    %34 = arith.addf %26, %33 : vector<256x4xf32>
    %35 = vector.extract_strided_slice %16 {offsets = [2, 15, 0], sizes = [16, 16, 4], strides = [1, 1, 1]} : vector<18x48x4xbf16> to vector<16x16x4xbf16>
    %36 = vector.extract_strided_slice %16 {offsets = [2, 16, 0], sizes = [16, 16, 4], strides = [1, 1, 1]} : vector<18x48x4xbf16> to vector<16x16x4xbf16>
    %37 = vector.extract_strided_slice %16 {offsets = [2, 17, 0], sizes = [16, 16, 4], strides = [1, 1, 1]} : vector<18x48x4xbf16> to vector<16x16x4xbf16>
    %38 = tpu.concatenate %35, %36, %37 in 2 : vector<16x16x4xbf16>, vector<16x16x4xbf16>, vector<16x16x4xbf16> -> vector<16x16x12xbf16>
    %39 = vector.shape_cast %38 : vector<16x16x12xbf16> to vector<256x12xbf16>
    %40 = vector.extract_strided_slice %17 {offsets = [24, 0], sizes = [12, 4], strides = [1, 1]} : vector<36x4xbf16> to vector<12x4xbf16>
    %cst_25 = arith.constant dense<0.000000e+00> : vector<256x4xf32>
    %41 = tpu.matmul %39, %40, %cst_25 {dimension_numbers = #tpu.dot_dimension_numbers<[1], [0], [0], [1], [0, 0, 1, 1], [], []>} : vector<256x12xbf16>, vector<12x4xbf16>, vector<256x4xf32> -> vector<256x4xf32>
    %42 = arith.addf %34, %41 : vector<256x4xf32>
    %43 = vector.shape_cast %42 : vector<256x4xf32> to vector<16x16x4xf32>
    %44 = arith.truncf %43 : vector<16x16x4xf32> to vector<16x16x4xbf16>
    %c0_26 = arith.constant 0 : index
    %c0_27 = arith.constant 0 : index
    %c0_28 = arith.constant 0 : index
    %c0_29 = arith.constant 0 : index
    %45 = vector.load %arg3[%c0_26, %c0_27, %c0_28, %c0_29] : memref<1x16x16x4xbf16, #tpu.memory_space<vmem>>, vector<1x16x16x4xbf16>
    %46 = vector.shape_cast %45 : vector<1x16x16x4xbf16> to vector<16x16x4xbf16>
    %47 = vector.shape_cast %44 : vector<16x16x4xbf16> to vector<1x16x16x4xbf16>
    tpu.vector_store %arg3[%c0_26, %c0_27, %c0_28, %c0_29], %47 {strides = array<i32>} : memref<1x16x16x4xbf16, #tpu.memory_space<vmem>>, vector<1x16x16x4xbf16>,
    %cst_30 = arith.constant dense<0.000000e+00> : vector<4xf32>
    %48 = vector.multi_reduction <add>, %42, %cst_30 [0] : vector<256x4xf32> to vector<4xf32>
    %49 = vector.shape_cast %48 : vector<4xf32> to vector<1x4xf32>
    %c0_31 = arith.constant 0 : index
    %c0_32 = arith.constant 0 : index
    %c0_33 = arith.constant 0 : index
    %50 = vector.load %arg4[%c0_31, %c0_32, %c0_33] : memref<1x1x4xf32, #tpu.memory_space<vmem>>, vector<1x1x4xf32>
    %51 = vector.shape_cast %50 : vector<1x1x4xf32> to vector<1x4xf32>
    %52 = vector.shape_cast %49 : vector<1x4xf32> to vector<1x1x4xf32>
    tpu.vector_store %arg4[%c0_31, %c0_32, %c0_33], %52 {strides = array<i32>} : memref<1x1x4xf32, #tpu.memory_space<vmem>>, vector<1x1x4xf32>,
    %53 = arith.mulf %42, %42 : vector<256x4xf32>
    %cst_34 = arith.constant dense<0.000000e+00> : vector<4xf32>
    %54 = vector.multi_reduction <add>, %53, %cst_34 [0] : vector<256x4xf32> to vector<4xf32>
    %55 = vector.shape_cast %54 : vector<4xf32> to vector<1x4xf32>
    %c0_35 = arith.constant 0 : index
    %c0_36 = arith.constant 0 : index
    %c0_37 = arith.constant 0 : index
    %56 = vector.load %arg5[%c0_35, %c0_36, %c0_37] : memref<1x1x4xf32, #tpu.memory_space<vmem>>, vector<1x1x4xf32>
    %57 = vector.shape_cast %56 : vector<1x1x4xf32> to vector<1x4xf32>
    %58 = vector.shape_cast %55 : vector<1x4xf32> to vector<1x1x4xf32>
    tpu.vector_store %arg5[%c0_35, %c0_36, %c0_37], %58 {strides = array<i32>} : memref<1x1x4xf32, #tpu.memory_space<vmem>>, vector<1x1x4xf32>,
    return
  }
  func.func @transform_0(%arg0: i32) -> (i32, i32, i32, i32) {
    %c0_i32 = arith.constant 0 : i32
    %c0_i32_0 = arith.constant 0 : i32
    %c0_i32_1 = arith.constant 0 : i32
    %c0_i32_2 = arith.constant 0 : i32
    return %arg0, %c0_i32, %c0_i32_0, %c0_i32_1 : i32, i32, i32, i32
  }
  func.func @transform_1(%arg0: i32) -> (i32, i32) {
    %c0_i32 = arith.constant 0 : i32
    %c0_i32_0 = arith.constant 0 : i32
    %c0_i32_1 = arith.constant 0 : i32
    return %c0_i32, %c0_i32_0 : i32, i32
  }
  func.func @transform_2(%arg0: i32) -> (i32, i32, i32, i32) {
    %c0_i32 = arith.constant 0 : i32
    %c0_i32_0 = arith.constant 0 : i32
    %c0_i32_1 = arith.constant 0 : i32
    %c0_i32_2 = arith.constant 0 : i32
    return %arg0, %c0_i32, %c0_i32_0, %c0_i32_1 : i32, i32, i32, i32
  }
  func.func @transform_3(%arg0: i32) -> (i32, i32, i32) {
    %c0_i32 = arith.constant 0 : i32
    %c0_i32_0 = arith.constant 0 : i32
    %c0_i32_1 = arith.constant 0 : i32
    return %arg0, %c0_i32, %c0_i32_0 : i32, i32, i32
  }
  func.func @transform_4(%arg0: i32) -> (i32, i32, i32) {
    %c0_i32 = arith.constant 0 : i32
    %c0_i32_0 = arith.constant 0 : i32
    %c0_i32_1 = arith.constant 0 : i32
    return %arg0, %c0_i32, %c0_i32_0 : i32, i32, i32
  }
}

module attributes {stable_mosaic.version = 11 : i64} {
  func.func @bn1_prelu_conv2_stats_kernel(%arg0: i32, %arg1: memref<1x16x16x4xbf16, #tpu.memory_space<vmem>>, %arg2: memref<1x4xf32, #tpu.memory_space<vmem>>, %arg3: memref<1x4xf32, #tpu.memory_space<vmem>>, %arg4: memref<1x1xf32, #tpu.memory_space<vmem>>, %arg5: memref<36x4xbf16, #tpu.memory_space<vmem>>, %arg6: memref<1x16x16x4xbf16, #tpu.memory_space<vmem>>, %arg7: memref<1x1x4xf32, #tpu.memory_space<vmem>>, %arg8: memref<1x1x4xf32, #tpu.memory_space<vmem>>, %arg9: memref<18x48x4xbf16, #tpu.memory_space<vmem>>) attributes {dimension_semantics = [#tpu.dimension_semantics<parallel>], iteration_bounds = array<i64: 2>, scalar_prefetch = 0 : i64, scratch_operands = 1 : i64, tpu.core_type = #tpu.core_type<tc>, window_params = [{transform_indices = @transform_0, window_bounds = array<i64: 1, 16, 16, 4>}, {pipeline_mode = #tpu.pipeline_mode<synchronous>, transform_indices = @transform_1, window_bounds = array<i64: 1, 4>}, {pipeline_mode = #tpu.pipeline_mode<synchronous>, transform_indices = @transform_2, window_bounds = array<i64: 1, 4>}, {pipeline_mode = #tpu.pipeline_mode<synchronous>, transform_indices = @transform_3, window_bounds = array<i64: 1, 1>}, {pipeline_mode = #tpu.pipeline_mode<synchronous>, transform_indices = @transform_4, window_bounds = array<i64: 36, 4>}, {transform_indices = @transform_5, window_bounds = array<i64: 1, 16, 16, 4>}, {transform_indices = @transform_6, window_bounds = array<i64: 1, 1, 4>}, {transform_indices = @transform_7, window_bounds = array<i64: 1, 1, 4>}]} {
    %cst = arith.constant 0.000000e+00 : bf16
    %0 = vector.broadcast %cst : bf16 to vector<48x4xbf16>
    %c0 = arith.constant 0 : index
    %c0_0 = arith.constant 0 : index
    %c0_1 = arith.constant 0 : index
    %1 = vector.load %arg9[%c0, %c0_0, %c0_1] : memref<18x48x4xbf16, #tpu.memory_space<vmem>>, vector<1x48x4xbf16>
    %2 = vector.shape_cast %1 : vector<1x48x4xbf16> to vector<48x4xbf16>
    %3 = vector.shape_cast %0 : vector<48x4xbf16> to vector<1x48x4xbf16>
    tpu.vector_store %arg9[%c0, %c0_0, %c0_1], %3 {strides = array<i32>} : memref<18x48x4xbf16, #tpu.memory_space<vmem>>, vector<1x48x4xbf16>,
    %cst_2 = arith.constant 0.000000e+00 : bf16
    %4 = vector.broadcast %cst_2 : bf16 to vector<48x4xbf16>
    %c17 = arith.constant 17 : index
    %c0_3 = arith.constant 0 : index
    %c0_4 = arith.constant 0 : index
    %5 = vector.load %arg9[%c17, %c0_3, %c0_4] : memref<18x48x4xbf16, #tpu.memory_space<vmem>>, vector<1x48x4xbf16>
    %6 = vector.shape_cast %5 : vector<1x48x4xbf16> to vector<48x4xbf16>
    %7 = vector.shape_cast %4 : vector<48x4xbf16> to vector<1x48x4xbf16>
    tpu.vector_store %arg9[%c17, %c0_3, %c0_4], %7 {strides = array<i32>} : memref<18x48x4xbf16, #tpu.memory_space<vmem>>, vector<1x48x4xbf16>,
    %cst_5 = arith.constant 0.000000e+00 : bf16
    %8 = vector.broadcast %cst_5 : bf16 to vector<16x16x4xbf16>
    %c1 = arith.constant 1 : index
    %c0_6 = arith.constant 0 : index
    %c0_7 = arith.constant 0 : index
    %9 = vector.load %arg9[%c1, %c0_6, %c0_7] : memref<18x48x4xbf16, #tpu.memory_space<vmem>>, vector<16x16x4xbf16>
    tpu.vector_store %arg9[%c1, %c0_6, %c0_7], %8 {strides = array<i32>} : memref<18x48x4xbf16, #tpu.memory_space<vmem>>, vector<16x16x4xbf16>,
    %cst_8 = arith.constant 0.000000e+00 : bf16
    %10 = vector.broadcast %cst_8 : bf16 to vector<16x16x4xbf16>
    %c1_9 = arith.constant 1 : index
    %c32 = arith.constant 32 : index
    %c0_10 = arith.constant 0 : index
    %11 = vector.load %arg9[%c1_9, %c32, %c0_10] : memref<18x48x4xbf16, #tpu.memory_space<vmem>>, vector<16x16x4xbf16>
    tpu.vector_store %arg9[%c1_9, %c32, %c0_10], %10 {strides = array<i32>} : memref<18x48x4xbf16, #tpu.memory_space<vmem>>, vector<16x16x4xbf16>,
    %c0_11 = arith.constant 0 : index
    %c0_12 = arith.constant 0 : index
    %c0_13 = arith.constant 0 : index
    %c0_14 = arith.constant 0 : index
    %12 = vector.load %arg1[%c0_11, %c0_12, %c0_13, %c0_14] : memref<1x16x16x4xbf16, #tpu.memory_space<vmem>>, vector<1x16x16x4xbf16>
    %13 = vector.shape_cast %12 : vector<1x16x16x4xbf16> to vector<16x16x4xbf16>
    %14 = arith.extf %13 : vector<16x16x4xbf16> to vector<16x16x4xf32>
    %c0_15 = arith.constant 0 : index
    %c0_16 = arith.constant 0 : index
    %15 = vector.load %arg2[%c0_15, %c0_16] : memref<1x4xf32, #tpu.memory_space<vmem>>, vector<1x4xf32>
    %16 = vector.shape_cast %15 : vector<1x4xf32> to vector<4xf32>
    %17 = vector.shape_cast %16 : vector<4xf32> to vector<1x1x4xf32>
    %18 = vector.broadcast %17 : vector<1x1x4xf32> to vector<16x16x4xf32>
    %19 = arith.mulf %14, %18 : vector<16x16x4xf32>
    %c0_17 = arith.constant 0 : index
    %c0_18 = arith.constant 0 : index
    %20 = vector.load %arg3[%c0_17, %c0_18] : memref<1x4xf32, #tpu.memory_space<vmem>>, vector<1x4xf32>
    %21 = vector.shape_cast %20 : vector<1x4xf32> to vector<4xf32>
    %22 = vector.shape_cast %21 : vector<4xf32> to vector<1x1x4xf32>
    %23 = vector.broadcast %22 : vector<1x1x4xf32> to vector<16x16x4xf32>
    %24 = arith.addf %19, %23 : vector<16x16x4xf32>
    %c0_19 = arith.constant 0 : index
    %c0_20 = arith.constant 0 : index
    %25 = vector.load %arg4[%c0_19, %c0_20] : memref<1x1xf32, #tpu.memory_space<vmem>>, vector<1x1xf32>
    %cst_21 = arith.constant 0.000000e+00 : f32
    %26 = vector.broadcast %cst_21 : f32 to vector<16x16x4xf32>
    %27 = arith.cmpf oge, %24, %26 : vector<16x16x4xf32>
    %28 = vector.shape_cast %25 : vector<1x1xf32> to vector<1x1x1xf32>
    %29 = vector.broadcast %28 : vector<1x1x1xf32> to vector<16x16x4xf32>
    %30 = arith.mulf %29, %24 : vector<16x16x4xf32>
    %31 = arith.select %27, %24, %30 : vector<16x16x4xi1>, vector<16x16x4xf32>
    %32 = arith.truncf %31 : vector<16x16x4xf32> to vector<16x16x4xbf16>
    %c1_22 = arith.constant 1 : index
    %c16 = arith.constant 16 : index
    %c0_23 = arith.constant 0 : index
    %33 = vector.load %arg9[%c1_22, %c16, %c0_23] : memref<18x48x4xbf16, #tpu.memory_space<vmem>>, vector<16x16x4xbf16>
    tpu.vector_store %arg9[%c1_22, %c16, %c0_23], %32 {strides = array<i32>} : memref<18x48x4xbf16, #tpu.memory_space<vmem>>, vector<16x16x4xbf16>,
    %c0_24 = arith.constant 0 : index
    %c0_25 = arith.constant 0 : index
    %c0_26 = arith.constant 0 : index
    %34 = vector.load %arg9[%c0_24, %c0_25, %c0_26] : memref<18x48x4xbf16, #tpu.memory_space<vmem>>, vector<18x48x4xbf16>
    %c0_27 = arith.constant 0 : index
    %c0_28 = arith.constant 0 : index
    %35 = vector.load %arg5[%c0_27, %c0_28] : memref<36x4xbf16, #tpu.memory_space<vmem>>, vector<36x4xbf16>
    %cst_29 = arith.constant 0.000000e+00 : f32
    %36 = vector.broadcast %cst_29 : f32 to vector<256x4xf32>
    %37 = vector.extract_strided_slice %34 {offsets = [0, 15, 0], sizes = [16, 16, 4], strides = [1, 1, 1]} : vector<18x48x4xbf16> to vector<16x16x4xbf16>
    %38 = vector.extract_strided_slice %34 {offsets = [0, 16, 0], sizes = [16, 16, 4], strides = [1, 1, 1]} : vector<18x48x4xbf16> to vector<16x16x4xbf16>
    %39 = vector.extract_strided_slice %34 {offsets = [0, 17, 0], sizes = [16, 16, 4], strides = [1, 1, 1]} : vector<18x48x4xbf16> to vector<16x16x4xbf16>
    %40 = tpu.concatenate %37, %38, %39 in 2 : vector<16x16x4xbf16>, vector<16x16x4xbf16>, vector<16x16x4xbf16> -> vector<16x16x12xbf16>
    %41 = vector.shape_cast %40 : vector<16x16x12xbf16> to vector<256x12xbf16>
    %42 = vector.extract_strided_slice %35 {offsets = [0, 0], sizes = [12, 4], strides = [1, 1]} : vector<36x4xbf16> to vector<12x4xbf16>
    %cst_30 = arith.constant dense<0.000000e+00> : vector<256x4xf32>
    %43 = tpu.matmul %41, %42, %cst_30 {dimension_numbers = #tpu.dot_dimension_numbers<[1], [0], [0], [1], [0, 0, 1, 1], [], []>} : vector<256x12xbf16>, vector<12x4xbf16>, vector<256x4xf32> -> vector<256x4xf32>
    %44 = arith.addf %36, %43 : vector<256x4xf32>
    %45 = vector.extract_strided_slice %34 {offsets = [1, 15, 0], sizes = [16, 16, 4], strides = [1, 1, 1]} : vector<18x48x4xbf16> to vector<16x16x4xbf16>
    %46 = vector.extract_strided_slice %34 {offsets = [1, 16, 0], sizes = [16, 16, 4], strides = [1, 1, 1]} : vector<18x48x4xbf16> to vector<16x16x4xbf16>
    %47 = vector.extract_strided_slice %34 {offsets = [1, 17, 0], sizes = [16, 16, 4], strides = [1, 1, 1]} : vector<18x48x4xbf16> to vector<16x16x4xbf16>
    %48 = tpu.concatenate %45, %46, %47 in 2 : vector<16x16x4xbf16>, vector<16x16x4xbf16>, vector<16x16x4xbf16> -> vector<16x16x12xbf16>
    %49 = vector.shape_cast %48 : vector<16x16x12xbf16> to vector<256x12xbf16>
    %50 = vector.extract_strided_slice %35 {offsets = [12, 0], sizes = [12, 4], strides = [1, 1]} : vector<36x4xbf16> to vector<12x4xbf16>
    %cst_31 = arith.constant dense<0.000000e+00> : vector<256x4xf32>
    %51 = tpu.matmul %49, %50, %cst_31 {dimension_numbers = #tpu.dot_dimension_numbers<[1], [0], [0], [1], [0, 0, 1, 1], [], []>} : vector<256x12xbf16>, vector<12x4xbf16>, vector<256x4xf32> -> vector<256x4xf32>
    %52 = arith.addf %44, %51 : vector<256x4xf32>
    %53 = vector.extract_strided_slice %34 {offsets = [2, 15, 0], sizes = [16, 16, 4], strides = [1, 1, 1]} : vector<18x48x4xbf16> to vector<16x16x4xbf16>
    %54 = vector.extract_strided_slice %34 {offsets = [2, 16, 0], sizes = [16, 16, 4], strides = [1, 1, 1]} : vector<18x48x4xbf16> to vector<16x16x4xbf16>
    %55 = vector.extract_strided_slice %34 {offsets = [2, 17, 0], sizes = [16, 16, 4], strides = [1, 1, 1]} : vector<18x48x4xbf16> to vector<16x16x4xbf16>
    %56 = tpu.concatenate %53, %54, %55 in 2 : vector<16x16x4xbf16>, vector<16x16x4xbf16>, vector<16x16x4xbf16> -> vector<16x16x12xbf16>
    %57 = vector.shape_cast %56 : vector<16x16x12xbf16> to vector<256x12xbf16>
    %58 = vector.extract_strided_slice %35 {offsets = [24, 0], sizes = [12, 4], strides = [1, 1]} : vector<36x4xbf16> to vector<12x4xbf16>
    %cst_32 = arith.constant dense<0.000000e+00> : vector<256x4xf32>
    %59 = tpu.matmul %57, %58, %cst_32 {dimension_numbers = #tpu.dot_dimension_numbers<[1], [0], [0], [1], [0, 0, 1, 1], [], []>} : vector<256x12xbf16>, vector<12x4xbf16>, vector<256x4xf32> -> vector<256x4xf32>
    %60 = arith.addf %52, %59 : vector<256x4xf32>
    %61 = vector.shape_cast %60 : vector<256x4xf32> to vector<16x16x4xf32>
    %62 = arith.truncf %61 : vector<16x16x4xf32> to vector<16x16x4xbf16>
    %c0_33 = arith.constant 0 : index
    %c0_34 = arith.constant 0 : index
    %c0_35 = arith.constant 0 : index
    %c0_36 = arith.constant 0 : index
    %63 = vector.load %arg6[%c0_33, %c0_34, %c0_35, %c0_36] : memref<1x16x16x4xbf16, #tpu.memory_space<vmem>>, vector<1x16x16x4xbf16>
    %64 = vector.shape_cast %63 : vector<1x16x16x4xbf16> to vector<16x16x4xbf16>
    %65 = vector.shape_cast %62 : vector<16x16x4xbf16> to vector<1x16x16x4xbf16>
    tpu.vector_store %arg6[%c0_33, %c0_34, %c0_35, %c0_36], %65 {strides = array<i32>} : memref<1x16x16x4xbf16, #tpu.memory_space<vmem>>, vector<1x16x16x4xbf16>,
    %cst_37 = arith.constant dense<0.000000e+00> : vector<4xf32>
    %66 = vector.multi_reduction <add>, %60, %cst_37 [0] : vector<256x4xf32> to vector<4xf32>
    %67 = vector.shape_cast %66 : vector<4xf32> to vector<1x4xf32>
    %c0_38 = arith.constant 0 : index
    %c0_39 = arith.constant 0 : index
    %c0_40 = arith.constant 0 : index
    %68 = vector.load %arg7[%c0_38, %c0_39, %c0_40] : memref<1x1x4xf32, #tpu.memory_space<vmem>>, vector<1x1x4xf32>
    %69 = vector.shape_cast %68 : vector<1x1x4xf32> to vector<1x4xf32>
    %70 = vector.shape_cast %67 : vector<1x4xf32> to vector<1x1x4xf32>
    tpu.vector_store %arg7[%c0_38, %c0_39, %c0_40], %70 {strides = array<i32>} : memref<1x1x4xf32, #tpu.memory_space<vmem>>, vector<1x1x4xf32>,
    %71 = arith.mulf %60, %60 : vector<256x4xf32>
    %cst_41 = arith.constant dense<0.000000e+00> : vector<4xf32>
    %72 = vector.multi_reduction <add>, %71, %cst_41 [0] : vector<256x4xf32> to vector<4xf32>
    %73 = vector.shape_cast %72 : vector<4xf32> to vector<1x4xf32>
    %c0_42 = arith.constant 0 : index
    %c0_43 = arith.constant 0 : index
    %c0_44 = arith.constant 0 : index
    %74 = vector.load %arg8[%c0_42, %c0_43, %c0_44] : memref<1x1x4xf32, #tpu.memory_space<vmem>>, vector<1x1x4xf32>
    %75 = vector.shape_cast %74 : vector<1x1x4xf32> to vector<1x4xf32>
    %76 = vector.shape_cast %73 : vector<1x4xf32> to vector<1x1x4xf32>
    tpu.vector_store %arg8[%c0_42, %c0_43, %c0_44], %76 {strides = array<i32>} : memref<1x1x4xf32, #tpu.memory_space<vmem>>, vector<1x1x4xf32>,
    return
  }
  func.func @transform_0(%arg0: i32) -> (i32, i32, i32, i32) {
    %c0_i32 = arith.constant 0 : i32
    %c0_i32_0 = arith.constant 0 : i32
    %c0_i32_1 = arith.constant 0 : i32
    %c0_i32_2 = arith.constant 0 : i32
    return %arg0, %c0_i32, %c0_i32_0, %c0_i32_1 : i32, i32, i32, i32
  }
  func.func @transform_1(%arg0: i32) -> (i32, i32) {
    %c0_i32 = arith.constant 0 : i32
    %c0_i32_0 = arith.constant 0 : i32
    %c0_i32_1 = arith.constant 0 : i32
    return %c0_i32, %c0_i32_0 : i32, i32
  }
  func.func @transform_2(%arg0: i32) -> (i32, i32) {
    %c0_i32 = arith.constant 0 : i32
    %c0_i32_0 = arith.constant 0 : i32
    %c0_i32_1 = arith.constant 0 : i32
    return %c0_i32, %c0_i32_0 : i32, i32
  }
  func.func @transform_3(%arg0: i32) -> (i32, i32) {
    %c0_i32 = arith.constant 0 : i32
    %c0_i32_0 = arith.constant 0 : i32
    %c0_i32_1 = arith.constant 0 : i32
    return %c0_i32, %c0_i32_0 : i32, i32
  }
  func.func @transform_4(%arg0: i32) -> (i32, i32) {
    %c0_i32 = arith.constant 0 : i32
    %c0_i32_0 = arith.constant 0 : i32
    %c0_i32_1 = arith.constant 0 : i32
    return %c0_i32, %c0_i32_0 : i32, i32
  }
  func.func @transform_5(%arg0: i32) -> (i32, i32, i32, i32) {
    %c0_i32 = arith.constant 0 : i32
    %c0_i32_0 = arith.constant 0 : i32
    %c0_i32_1 = arith.constant 0 : i32
    %c0_i32_2 = arith.constant 0 : i32
    return %arg0, %c0_i32, %c0_i32_0, %c0_i32_1 : i32, i32, i32, i32
  }
  func.func @transform_6(%arg0: i32) -> (i32, i32, i32) {
    %c0_i32 = arith.constant 0 : i32
    %c0_i32_0 = arith.constant 0 : i32
    %c0_i32_1 = arith.constant 0 : i32
    return %arg0, %c0_i32, %c0_i32_0 : i32, i32, i32
  }
  func.func @transform_7(%arg0: i32) -> (i32, i32, i32) {
    %c0_i32 = arith.constant 0 : i32
    %c0_i32_0 = arith.constant 0 : i32
    %c0_i32_1 = arith.constant 0 : i32
    return %arg0, %c0_i32, %c0_i32_0 : i32, i32, i32
  }
}

module attributes {stable_mosaic.version = 11 : i64} {
  func.func @bn2_add_kernel(%arg0: i32, %arg1: memref<32x64xbf16, #tpu.memory_space<vmem>>, %arg2: memref<1x64xf32, #tpu.memory_space<vmem>>, %arg3: memref<1x64xf32, #tpu.memory_space<vmem>>, %arg4: memref<32x64xf32, #tpu.memory_space<vmem>>, %arg5: memref<32x64xf32, #tpu.memory_space<vmem>>) attributes {dimension_semantics = [#tpu.dimension_semantics<parallel>], iteration_bounds = array<i64: 1>, scalar_prefetch = 0 : i64, scratch_operands = 0 : i64, tpu.core_type = #tpu.core_type<tc>, window_params = [{transform_indices = @transform_0, window_bounds = array<i64: 32, 64>}, {pipeline_mode = #tpu.pipeline_mode<synchronous>, transform_indices = @transform_1, window_bounds = array<i64: 1, 64>}, {pipeline_mode = #tpu.pipeline_mode<synchronous>, transform_indices = @transform_2, window_bounds = array<i64: 1, 64>}, {transform_indices = @transform_3, window_bounds = array<i64: 32, 64>}, {transform_indices = @transform_4, window_bounds = array<i64: 32, 64>}]} {
    %c0 = arith.constant 0 : index
    %c0_0 = arith.constant 0 : index
    %0 = vector.load %arg1[%c0, %c0_0] : memref<32x64xbf16, #tpu.memory_space<vmem>>, vector<32x64xbf16>
    %1 = arith.extf %0 : vector<32x64xbf16> to vector<32x64xf32>
    %c0_1 = arith.constant 0 : index
    %c0_2 = arith.constant 0 : index
    %2 = vector.load %arg2[%c0_1, %c0_2] : memref<1x64xf32, #tpu.memory_space<vmem>>, vector<1x64xf32>
    %3 = vector.shape_cast %2 : vector<1x64xf32> to vector<64xf32>
    %4 = vector.shape_cast %3 : vector<64xf32> to vector<1x64xf32>
    %5 = vector.broadcast %4 : vector<1x64xf32> to vector<32x64xf32>
    %6 = arith.mulf %1, %5 : vector<32x64xf32>
    %c0_3 = arith.constant 0 : index
    %c0_4 = arith.constant 0 : index
    %7 = vector.load %arg3[%c0_3, %c0_4] : memref<1x64xf32, #tpu.memory_space<vmem>>, vector<1x64xf32>
    %8 = vector.shape_cast %7 : vector<1x64xf32> to vector<64xf32>
    %9 = vector.shape_cast %8 : vector<64xf32> to vector<1x64xf32>
    %10 = vector.broadcast %9 : vector<1x64xf32> to vector<32x64xf32>
    %11 = arith.addf %6, %10 : vector<32x64xf32>
    %c0_5 = arith.constant 0 : index
    %c0_6 = arith.constant 0 : index
    %12 = vector.load %arg4[%c0_5, %c0_6] : memref<32x64xf32, #tpu.memory_space<vmem>>, vector<32x64xf32>
    %13 = arith.addf %11, %12 : vector<32x64xf32>
    %c0_7 = arith.constant 0 : index
    %c0_8 = arith.constant 0 : index
    %14 = vector.load %arg5[%c0_7, %c0_8] : memref<32x64xf32, #tpu.memory_space<vmem>>, vector<32x64xf32>
    tpu.vector_store %arg5[%c0_7, %c0_8], %13 {strides = array<i32>} : memref<32x64xf32, #tpu.memory_space<vmem>>, vector<32x64xf32>,
    return
  }
  func.func @transform_0(%arg0: i32) -> (i32, i32) {
    %c0_i32 = arith.constant 0 : i32
    %c0_i32_0 = arith.constant 0 : i32
    return %arg0, %c0_i32 : i32, i32
  }
  func.func @transform_1(%arg0: i32) -> (i32, i32) {
    %c0_i32 = arith.constant 0 : i32
    %c0_i32_0 = arith.constant 0 : i32
    %c0_i32_1 = arith.constant 0 : i32
    return %c0_i32, %c0_i32_0 : i32, i32
  }
  func.func @transform_2(%arg0: i32) -> (i32, i32) {
    %c0_i32 = arith.constant 0 : i32
    %c0_i32_0 = arith.constant 0 : i32
    %c0_i32_1 = arith.constant 0 : i32
    return %c0_i32, %c0_i32_0 : i32, i32
  }
  func.func @transform_3(%arg0: i32) -> (i32, i32) {
    %c0_i32 = arith.constant 0 : i32
    %c0_i32_0 = arith.constant 0 : i32
    return %arg0, %c0_i32 : i32, i32
  }
  func.func @transform_4(%arg0: i32) -> (i32, i32) {
    %c0_i32 = arith.constant 0 : i32
    %c0_i32_0 = arith.constant 0 : i32
    return %arg0, %c0_i32 : i32, i32
  }
}

</mosaic_0001>

<bundles_post_ra>
// kernel: residual_block_forward.5
= control target key start
LH: loop header
LB: loop body
LE: loop exit
PB: predicated region body
PF: predicated region fallthrough
CT: control target
= control target key end

     0   :  { %vm55_vm0 = vcmask 523264   ;;  %s136_s0 = inlined_call_operand.vmem [shape: bf16[32,64], index: 0, kind: input, shape index: {}]   ;;  %s137_s1 = inlined_call_operand.vmem [shape: f32[1,64], index: 1, kind: input, shape index: {}]   ;;  %s138_s2 = inlined_call_operand.vmem [shape: f32[1,64], index: 2, kind: input, shape index: {}]   ;;  %s139_s3 = inlined_call_operand.vmem [shape: f32[32,64], index: 3, kind: input, shape index: {}]   ;;  %s140_s4 = inlined_call_operand.vmem [shape: f32[32,64], index: 4, kind: output, shape index: {}]  }
   0x1   :  { %v67_v0 = vld [vmem:[%s136_s0] sm:$0xff]   ;;  %v74_v4 = vld [vmem:[%s136_s0 + $0x8] sm:$0xff]   ;;  %v49_v16 = vld [vmem:[%s139_s3 + $0x10] sm:$0xff] }
   0x2   :  { %v64_v1 = vld [vmem:[%s137_s1] ss:$0 sm:$0xff]  ;;  %v68_v2 = vunpack.c.l.bf16 %v67_v0  ;;  %v69_v3 = vunpack.c.h.bf16 %v67_v0  ;;  %v72_v6 = vunpack.c.l.bf16 %v74_v4  ;;  %v73_v7 = vunpack.c.h.bf16 %v74_v4  ;;  %v48_v11 = vld [vmem:[%s139_s3 + $0x8] sm:$0xff]  ;;  %v50_v17 = vld [vmem:[%s139_s3 + $0x18] sm:$0xff] }
   0x3   :  { %v65_v5 = vld [vmem:[%s138_s2] ss:$0 sm:$0xff] }
   0x4   :  { %v32_v8 = vmul.f32 %v68_v2, %v64_v1  ;;  %v33_v9 = vmul.f32 %v69_v3, %v64_v1  ;;  %v47_v10 = vld [vmem:[%s139_s3] sm:$0xff]  ;;  %v34_v12 = vmul.f32 %v72_v6, %v64_v1  ;;  %v35_v13 = vmul.f32 %v73_v7, %v64_v1 }
   0x6   :  { %v43_v14 = vadd.f32 %v65_v5, %v32_v8  ;;  %v44_v15 = vadd.f32 %v65_v5, %v33_v9  ;;  %v45_v18 = vadd.f32 %v65_v5, %v34_v12  ;;  %v46_v19 = vadd.f32 %v65_v5, %v35_v13 }
   0x8   :  { %v51_v20 = vadd.f32 %v47_v10, %v43_v14  ;;  %v52_v21 = vadd.f32 %v48_v11, %v44_v15  ;;  %v53_v22 = vadd.f32 %v49_v16, %v45_v18  ;;  %v54_v23 = vadd.f32 %v50_v17, %v46_v19 }
   0xa   :  { %56 = vst.msk [vmem:[%s140_s4] sm:$0xff] %vm55_vm0, %v51_v20  ;;  %57 = vst.msk [vmem:[%s140_s4 + $0x8] sm:$0xff] %vm55_vm0, %v52_v21 }
   0xb   :  { %58 = vst.msk [vmem:[%s140_s4 + $0x10] sm:$0xff] %vm55_vm0, %v53_v22  ;;  %59 = vst.msk [vmem:[%s140_s4 + $0x18] sm:$0xff] %vm55_vm0, %v54_v23 }

// kernel: residual_block_forward.3
= control target key start
LH: loop header
LB: loop body
LE: loop exit
PB: predicated region body
PF: predicated region fallthrough
CT: control target
= control target key end

     0   :  { %s3069_s15 = smov 0   ;;  %s3952_s0 = inlined_call_operand.vmem [shape: f32[2,16,16,4], index: 0, kind: input, shape index: {}]   ;;  %s3953_s1 = inlined_call_operand.vmem [shape: bf16[36,4], index: 1, kind: input, shape index: {}]   ;;  %s3954_s2 = inlined_call_operand.vmem [shape: bf16[2,16,16,4], index: 2, kind: output, shape index: {0}]   ;;  %s3955_s3 = inlined_call_operand.vmem [shape: f32[2,1,4], index: 3, kind: output, shape index: {1}]   ;;  %s3956_s4 = inlined_call_operand.vmem [shape: f32[2,1,4], index: 4, kind: output, shape index: {2}]  }
   0x1 LB: > { %s2554_s16 = sadd.s32 4294967295, %s3039_s15   ;;  %p2558_p0 = scmp.ge.s32.totalorder %s3039_s15, 1  ;;  %s3039_s15 = sphi %s3069_s15, %s15_s15  }
   0x2   : > { %p167_p1 = scmp.lt.s32.totalorder %s3039_s15, 3 }
   0x4   : > { %p168_p2 = pnand %p2558_p0, %p167_p1 }
   0x5   : > { %p3079_p3 = scmp.lt.s32.totalorder (!%p168_p2), %s2554_s16, 1  ;;  %s3042_s22 = smov (!%p168_p2), 8  }
   0x6   : > { %171 = sbr.rel (%p168_p2) target bundleno = 551 (0x227), region = 28  ;;  %s3043_s23 = smov (!%p168_p2), 4  }
   0xb   : > { %vm216_vm0 = vcmask 27648   ;;  %v3041_v0 = vmov 0   ;;  %s3959_s16 = smov (!%p3079_p3, %s2554_s16), 1  ;;  %vm916_vm1 = vcmask 1042432   ;;  %vm1524_vm2 = vcmask 1045504  }
   0xc   : > { %279 = vst.msk [vmem:[#allocation2 + $0xe8] sm:$0xf] %vm216_vm0, %v3041_v0  ;;  %218 = vst.msk [vmem:[#allocation2 + $0x4] sm:$0xf] %vm216_vm0, %v3041_v0  ;;  %s2752_s18 = sshll.u32 %s3959_s16, 8  ;;  %vm1029_vm3 = vcmask 31744   ;;  %s211_s12 = scalar_lea.vmem %s3955_s3, %s3959_s16 }
   0xd   : > { %219 = vst.msk [vmem:[#allocation2 + $0x8] sm:$0xf] %vm216_vm0, %v3041_v0  ;;  %220 = vst.msk [vmem:[#allocation2 + $0xc] sm:$0xf] %vm216_vm0, %v3041_v0  ;;  %s3133_s21 = scalar_lea.vmem %s3952_s0, %s2752_s18  ;;  %vm1110_vm4 = vcmask 64512   ;;  %vm1475_vm6 = vcmask 97280   ;;  %s214_s17 = scalar_lea.vmem %s3956_s4, %s3959_s16 }
   0xe   : > { %221 = vst.msk [vmem:[#allocation2 + $0x10] sm:$0xf] %vm216_vm0, %v3041_v0  ;;  %225 = vst.msk [vmem:[#allocation2 + $0x19c] sm:$0xf] %vm216_vm0, %v3041_v0  ;;  %v311_v1 = vld [vmem:[%s3133_s21 + $0x80] sm:$0xff]  ;;  %v312_v2 = vld [vmem:[%s3133_s21 + $0x88] sm:$0xff] }
   0xf   : > { %226 = vst.msk [vmem:[#allocation2 + $0x1a0] sm:$0xf] %vm216_vm0, %v3041_v0  ;;  %227 = vst.msk [vmem:[#allocation2 + $0x1a4] sm:$0xf] %vm216_vm0, %v3041_v0  ;;  %v295_v3 = vld [vmem:[%s3133_s21] sm:$0xff]  ;;  %v2770_v4 = vpack.c.bf16 %v311_v1, %v311_v1  ;;  %v2771_v5 = vpack.c.bf16 %v312_v2, %v312_v2  ;;  %v296_v6 = vld [vmem:[%s3133_s21 + $0x8] sm:$0xff] }
  0x10   : > { %228 = vst.msk [vmem:[#allocation2 + $0x1a8] sm:$0xf] %vm216_vm0, %v3041_v0  ;;  %232 = vst.msk [vmem:[#allocation2 + $0x1c] sm:$0xf] %vm216_vm0, %v3041_v0  ;;  %v2754_v7 = vpack.c.bf16 %v295_v3, %v295_v3  ;;  %v313_v8 = vld [vmem:[%s3133_s21 + $0x90] sm:$0xff]  ;;  %v314_v9 = vld [vmem:[%s3133_s21 + $0x98] sm:$0xff]  ;;  %v2755_v10 = vpack.c.bf16 %v296_v6, %v296_v6 }
  0x11   : > { %234 = vst.msk [vmem:[#allocation2 + $0x34] sm:$0xf] %vm216_vm0, %v3041_v0  ;;  %236 = vst.msk [vmem:[#allocation2 + $0x4c] sm:$0xf] %vm216_vm0, %v3041_v0  ;;  %v2772_v11 = vpack.c.bf16 %v313_v8, %v313_v8  ;;  %v2773_v12 = vpack.c.bf16 %v314_v9, %v314_v9  ;;  %v297_v13 = vld [vmem:[%s3133_s21 + $0x10] sm:$0xff]  ;;  %v298_v14 = vld [vmem:[%s3133_s21 + $0x18] sm:$0xff] }
  0x12   : > { %238 = vst.msk [vmem:[#allocation2 + $0x64] sm:$0xf] %vm216_vm0, %v3041_v0  ;;  %240 = vst.msk [vmem:[#allocation2 + $0x7c] sm:$0xf] %vm216_vm0, %v3041_v0  ;;  %v2756_v15 = vpack.c.bf16 %v297_v13, %v297_v13  ;;  %v2757_v16 = vpack.c.bf16 %v298_v14, %v298_v14  ;;  %v317_v17 = vld [vmem:[%s3133_s21 + $0xb0] sm:$0xff]  ;;  %v318_v18 = vld [vmem:[%s3133_s21 + $0xb8] sm:$0xff] }
  0x13   : > { %242 = vst.msk [vmem:[#allocation2 + $0x94] sm:$0xf] %vm216_vm0, %v3041_v0  ;;  %244 = vst.msk [vmem:[#allocation2 + $0xac] sm:$0xf] %vm216_vm0, %v3041_v0  ;;  %v2776_v19 = vpack.c.bf16 %v317_v17, %v317_v17  ;;  %v2777_v20 = vpack.c.bf16 %v318_v18, %v318_v18  ;;  %v315_v21 = vld [vmem:[%s3133_s21 + $0xa0] sm:$0xff]  ;;  %v316_v22 = vld [vmem:[%s3133_s21 + $0xa8] sm:$0xff] }
  0x14   : > { %246 = vst.msk [vmem:[#allocation2 + $0xc4] sm:$0xf] %vm216_vm0, %v3041_v0  ;;  %248 = vst.msk [vmem:[#allocation2 + $0xdc] sm:$0xf] %vm216_vm0, %v3041_v0  ;;  %v2774_v23 = vpack.c.bf16 %v315_v21, %v315_v21  ;;  %v2775_v24 = vpack.c.bf16 %v316_v22, %v316_v22  ;;  %v299_v25 = vld [vmem:[%s3133_s21 + $0x20] sm:$0xff]  ;;  %v300_v26 = vld [vmem:[%s3133_s21 + $0x28] sm:$0xff] }
  0x15   : > { %250 = vst.msk [vmem:[#allocation2 + $0xf4] sm:$0xf] %vm216_vm0, %v3041_v0  ;;  %252 = vst.msk [vmem:[#allocation2 + $0x10c] sm:$0xf] %vm216_vm0, %v3041_v0  ;;  %v2758_v27 = vpack.c.bf16 %v299_v25, %v299_v25  ;;  %v2759_v28 = vpack.c.bf16 %v300_v26, %v300_v26  ;;  %v301_v29 = vld [vmem:[%s3133_s21 + $0x30] sm:$0xff]  ;;  %v302_v30 = vld [vmem:[%s3133_s21 + $0x38] sm:$0xff] }
  0x16   : > { %254 = vst.msk [vmem:[#allocation2 + $0x124] sm:$0xf] %vm216_vm0, %v3041_v0  ;;  %256 = vst.msk [vmem:[#allocation2 + $0x13c] sm:$0xf] %vm216_vm0, %v3041_v0  ;;  %v2760_v31 = vpack.c.bf16 %v301_v29, %v301_v29  ;;  %v2761_v32 = vpack.c.bf16 %v302_v30, %v302_v30  ;;  %v321_v33 = vld [vmem:[%s3133_s21 + $0xd0] sm:$0xff]  ;;  %v322_v13 = vld [vmem:[%s3133_s21 + $0xd8] sm:$0xff] }
  0x17   : > { %258 = vst.msk [vmem:[#allocation2 + $0x154] sm:$0xf] %vm216_vm0, %v3041_v0  ;;  %260 = vst.msk [vmem:[#allocation2 + $0x16c] sm:$0xf] %vm216_vm0, %v3041_v0  ;;  %v2780_v37 = vpack.c.bf16 %v321_v33, %v321_v33  ;;  %v2992_v46 = vld [vmem:[#allocation2 + $0xe8] ss:$0 sps:$4 sm:$0xff]  }
  0x18   : > { %262 = vst.msk [vmem:[#allocation2 + $0x184] sm:$0xf] %vm216_vm0, %v3041_v0  ;;  %263 = vst.msk [vmem:[#allocation2 + $0x28] sm:$0xf] %vm216_vm0, %v3041_v0  ;;  %v945_v54 = vrot.slane %v2992_v46, 5  ;;  %v319_v14 = vld [vmem:[%s3133_s21 + $0xc0] sm:$0xff] }
  0x19   : > { %265 = vst.msk [vmem:[#allocation2 + $0x40] sm:$0xf] %vm216_vm0, %v3041_v0  ;;  %267 = vst.msk [vmem:[#allocation2 + $0x58] sm:$0xf] %vm216_vm0, %v3041_v0  ;;  %v305_v29 = vld [vmem:[%s3133_s21 + $0x50] sm:$0xff]  ;;  %v2778_v33 = vpack.c.bf16 %v319_v14, %v319_v14  ;;  %s2753_s6 = sshll.u32 %s3959_s16, 7 }
  0x1a   : > { %269 = vst.msk [vmem:[#allocation2 + $0x70] sm:$0xf] %vm216_vm0, %v3041_v0  ;;  %271 = vst.msk [vmem:[#allocation2 + $0x88] sm:$0xf] %vm216_vm0, %v3041_v0  ;;  %vm1175_vm5 = vsmask.f32 4352  ;;  %s3785_s9 = scalar_lea.vmem %s3954_s2, %s2753_s6 }
  0x1b   : > { %273 = vst.msk [vmem:[#allocation2 + $0xa0] sm:$0xf] %vm216_vm0, %v3041_v0  ;;  %275 = vst.msk [vmem:[#allocation2 + $0xb8] sm:$0xf] %vm216_vm0, %v3041_v0  ;;  %vm2345_vm7 = vcmask 24576  }
  0x1c   : > { %277 = vst.msk [vmem:[#allocation2 + $0xd0] sm:$0xf] %vm216_vm0, %v3041_v0  ;;  %281 = vst.msk [vmem:[#allocation2 + $0x100] sm:$0xf] %vm216_vm0, %v3041_v0 }
  0x1d   : > { %283 = vst.msk [vmem:[#allocation2 + $0x118] sm:$0xf] %vm216_vm0, %v3041_v0  ;;  %285 = vst.msk [vmem:[#allocation2 + $0x130] sm:$0xf] %vm216_vm0, %v3041_v0 }
  0x1e   : > { %287 = vst.msk [vmem:[#allocation2 + $0x148] sm:$0xf] %vm216_vm0, %v3041_v0  ;;  %289 = vst.msk [vmem:[#allocation2 + $0x160] sm:$0xf] %vm216_vm0, %v3041_v0 }
  0x1f   : > { %291 = vst.msk [vmem:[#allocation2 + $0x178] sm:$0xf] %vm216_vm0, %v3041_v0  ;;  %293 = vst.msk [vmem:[#allocation2 + $0x190] sm:$0xf] %vm216_vm0, %v3041_v0  ;;  %v2994_v51 = vld [vmem:[#allocation2 + $0x28] ss:$0 sps:$4 sm:$0xff]  }
  0x20   : > { %471 = vst.msk [vmem:[#allocation2 + $0xe0] sm:$0xf] %vm216_vm0, %v2770_v4  ;;  %472 = vst.msk [vmem:[#allocation2 + $0xe4] sm:$0xf] %vm216_vm0, %v2771_v5  ;;  %v921_v58 = vrot.slane %v2994_v51, 5 }
  0x21   : > { %455 = vst.msk [vmem:[#allocation2 + $0x20] sm:$0xf] %vm216_vm0, %v2754_v7  ;;  %456 = vst.msk [vmem:[#allocation2 + $0x24] sm:$0xf] %vm216_vm0, %v2755_v10  ;;  %v2995_v59 = vld [vmem:[#allocation2 + $0x40] ss:$0 sps:$4 sm:$0xff]  }
  0x22   : > { %473 = vst.msk [vmem:[#allocation2 + $0xf8] sm:$0xf] %vm216_vm0, %v2772_v11  ;;  %474 = vst.msk [vmem:[#allocation2 + $0xfc] sm:$0xf] %vm216_vm0, %v2773_v12  ;;  %v924_v11 = vrot.slane %v2995_v59, 5 }
  0x23   : > { %457 = vst.msk [vmem:[#allocation2 + $0x38] sm:$0xf] %vm216_vm0, %v2756_v15  ;;  %458 = vst.msk [vmem:[#allocation2 + $0x3c] sm:$0xf] %vm216_vm0, %v2757_v16  ;;  %v2993_v49 = vld [vmem:[#allocation2 + $0x100] ss:$0 sps:$4 sm:$0xff]  }
  0x24   : > { %477 = vst.msk [vmem:[#allocation2 + $0x128] sm:$0xf] %vm216_vm0, %v2776_v19  ;;  %478 = vst.msk [vmem:[#allocation2 + $0x12c] sm:$0xf] %vm216_vm0, %v2777_v20  ;;  %v948_v57 = vrot.slane %v2993_v49, 5  ;;  %v320_v15 = vld [vmem:[%s3133_s21 + $0xc8] sm:$0xff] }
  0x25   : > { %475 = vst.msk [vmem:[#allocation2 + $0x110] sm:$0xf] %vm216_vm0, %v2774_v23  ;;  %476 = vst.msk [vmem:[#allocation2 + $0x114] sm:$0xf] %vm216_vm0, %v2775_v24  ;;  %v325_v49 = vld [vmem:[%s3133_s21 + $0xf0] sm:$0xff] }
  0x26   : > { %459 = vst.msk [vmem:[#allocation2 + $0x50] sm:$0xf] %vm216_vm0, %v2758_v27  ;;  %460 = vst.msk [vmem:[#allocation2 + $0x54] sm:$0xf] %vm216_vm0, %v2759_v28  ;;  %v303_v27 = vld [vmem:[%s3133_s21 + $0x40] sm:$0xff]  ;;  %v304_v28 = vld [vmem:[%s3133_s21 + $0x48] sm:$0xff] }
  0x27   : > { %v3164_v34 = vld [vmem:[#allocation2 + $0xe0] sm:$0xf]  ;;  %v3166_v35 = vld [vmem:[#allocation2 + $0xe4] sm:$0xf]  ;;  %461 = vst.msk [vmem:[#allocation2 + $0x68] sm:$0xf] %vm216_vm0, %v2760_v31 }
  0x28   : > { %v3168_v36 = vld [vmem:[#allocation2 + $0x20] sm:$0xf]  ;;  %v2636_v38 = vcombine.low %v3164_v34, %v3166_v35  ;;  %v3174_v39 = vld [vmem:[#allocation2 + $0x24] sm:$0xf]  ;;  %462 = vst.msk [vmem:[#allocation2 + $0x6c] sm:$0xf] %vm216_vm0, %v2761_v32  ;;  %v2781_v32 = vpack.c.bf16 %v322_v13, %v322_v13  ;;  %v2784_v13 = vpack.c.bf16 %v325_v49, %v325_v49 }
  0x29   : > { %v3176_v40 = vld [vmem:[#allocation2 + $0xf8] sm:$0xf]  ;;  %v3178_v41 = vld [vmem:[#allocation2 + $0xfc] sm:$0xf]  ;;  %v2628_v42 = vcombine.low %v3168_v36, %v3174_v39  ;;  %481 = vst.msk [vmem:[#allocation2 + $0x158] sm:$0xf] %vm216_vm0, %v2780_v37 }
  0x2a   : > { %v2637_v43 = vcombine.low %v3176_v40, %v3178_v41  ;;  %v3186_v44 = vld [vmem:[#allocation2 + $0x38] sm:$0xf]  ;;  %v3188_v45 = vld [vmem:[#allocation2 + $0x3c] sm:$0xf]  ;;  %v944_v47 = vrot.slane %v2636_v38, 5  ;;  %v781_v55 = vshrl.u32 %v2636_v38, 16 }
  0x2b   : > { %v3193_v48 = vcombine.low %v3186_v44, %v3188_v45  ;;  %v920_v50 = vrot.slane %v2628_v42, 5  ;;  %v784_v56 = vshll.u32 %v2636_v38, 16  ;;  %v3199_v62 = vld [vmem:[#allocation2 + $0x128] sm:$0xf]  ;;  %v3201_v63 = vld [vmem:[#allocation2 + $0x12c] sm:$0xf] }
  0x2c   : > { %1001 = vrot.lane.b32.xlu1 %v944_v47, %s3042_s22  ;;  %v947_v52 = vrot.slane %v2637_v43, 5  ;;  %v789_v60 = vshrl.u32 %v2637_v43, 16  ;;  %v792_v61 = vshll.u32 %v2637_v43, 16  ;;  %v946_v0 = vsel %vm916_vm1, %v944_v47, %v945_v54  ;;  %v3205_v3 = vld [vmem:[#allocation2 + $0x110] sm:$0xf]  ;;  %v306_v37 = vld [vmem:[%s3133_s21 + $0x58] sm:$0xff] }
  0x2d   : > { %969 = vrot.lane.b32.xlu0 %v920_v50, %s3042_s22  ;;  %v923_v53 = vrot.slane %v3193_v48, 5  ;;  %v783_v1 = vrot.slane %v781_v55, 4  ;;  %v786_v2 = vrot.slane %v784_v56, 5  ;;  %v3207_v4 = vld [vmem:[#allocation2 + $0x114] sm:$0xf]  ;;  %v725_v6 = vshrl.u32 %v3193_v48, 16 }
  0x2e   : > { %v949_v5 = vsel %vm916_vm1, %v947_v52, %v948_v57  ;;  %v728_v7 = vshll.u32 %v3193_v48, 16  ;;  %v717_v8 = vshrl.u32 %v2628_v42, 16  ;;  %v720_v9 = vshll.u32 %v2628_v42, 16  ;;  %v3226_v20 = vld [vmem:[#allocation2 + $0x50] sm:$0xf]  ;;  %v323_v38 = vld [vmem:[%s3133_s21 + $0xe0] sm:$0xff] }
  0x2f   : > { %v3214_v10 = vcombine.low %v3199_v62, %v3201_v63  ;;  %v3219_v12 = vcombine.low %v3205_v3, %v3207_v4  ;;  %v787_v16 = vor.u32 %v786_v2, %v783_v1  ;;  %v922_v17 = vsel %vm916_vm1, %v920_v50, %v921_v58  ;;  %v3232_v23 = vld [vmem:[#allocation2 + $0x54] sm:$0xf]  ;;  %v324_v48 = vld [vmem:[%s3133_s21 + $0xe8] sm:$0xff]  ;;  %v2998_v51 = vld [vmem:[#allocation2 + $0x118] ss:$0 sps:$4 sm:$0xff]  }
  0x30   : > { %1005 = vrot.lane.b32.xlu1 %v947_v52, %s3042_s22  ;;  %v791_v18 = vrot.slane %v789_v60, 4  ;;  %v794_v19 = vrot.slane %v792_v61, 5  ;;  %v3228_v21 = vrot.slane %v725_v6, 4  ;;  %v3230_v22 = vrot.slane %v728_v7, 5  ;;  %482 = vst.msk [vmem:[#allocation2 + $0x15c] sm:$0xf] %vm216_vm0, %v2781_v32 }
  0x31   : > { %973 = vrot.lane.b32.xlu0 %v923_v53, %s3042_s22  ;;  %v3234_v24 = vrot.slane %v717_v8, 4  ;;  %v3236_v25 = vrot.slane %v720_v9, 5  ;;  %v805_v26 = vshrl.u32 %v3214_v10, 16  ;;  %v808_v30 = vshll.u32 %v3214_v10, 16  ;;  %479 = vst.msk [vmem:[#allocation2 + $0x140] sm:$0xf] %vm216_vm0, %v2778_v33 }
  0x32   : > { %v797_v31 = vshrl.u32 %v3219_v12, 16  ;;  %v795_v42 = vor.u32 %v794_v19, %v791_v18  ;;  %v925_v43 = vsel %vm916_vm1, %v923_v53, %v924_v11  ;;  %v800_v46 = vshll.u32 %v3219_v12, 16  ;;  %v326_v55 = vld [vmem:[%s3133_s21 + $0xf8] sm:$0xff]  ;;  %v307_v56 = vld [vmem:[%s3133_s21 + $0x60] sm:$0xff]  ;;  %v308_v57 = vld [vmem:[%s3133_s21 + $0x68] sm:$0xff] }
  0x33   : > { %v2779_v47 = vpack.c.bf16 %v320_v15, %v320_v15  ;;  %v731_v50 = vor.u32 %v3230_v22, %v3228_v21  ;;  %v3256_v52 = vcombine.low %v3226_v20, %v3232_v23  ;;  %v2762_v53 = vpack.c.bf16 %v303_v27, %v303_v27  ;;  %v310_v1 = vld [vmem:[%s3133_s21 + $0x78] sm:$0xff]  ;;  %v3269_v6 = vld [vmem:[#allocation2 + $0x68] sm:$0xf]  ;;  %v3274_v11 = vld [vmem:[#allocation2 + $0x6c] sm:$0xf] }
  0x34   : > { %1003 = vrot.lane.b32.xlu1 %v946_v0, %s3042_s22  ;;  %v2763_v54 = vpack.c.bf16 %v304_v28, %v304_v28  ;;  %v723_v58 = vor.u32 %v3236_v25, %v3234_v24  ;;  %v807_v59 = vrot.slane %v805_v26, 4  ;;  %v2764_v60 = vpack.c.bf16 %v305_v29, %v305_v29  ;;  %v309_v0 = vld [vmem:[%s3133_s21 + $0x70] sm:$0xff]  ;;  %485 = vst.msk [vmem:[#allocation2 + $0x188] sm:$0xf] %vm216_vm0, %v2784_v13  ;;  %v559_v13 = vld [vmem:[%s3953_s1] sm:$0xf] }
  0x35   : > { %1007 = vrot.lane.b32.xlu0 %v949_v5, %s3042_s22  ;;  %480 = vst.msk [vmem:[#allocation2 + $0x144] sm:$0xf] %vm216_vm0, %v2779_v47  ;;  %v2765_v61 = vpack.c.bf16 %v306_v37, %v306_v37  ;;  %v810_v2 = vrot.slane %v808_v30, 5  ;;  %v799_v5 = vrot.slane %v797_v31, 4  ;;  %463 = vst.msk [vmem:[#allocation2 + $0x80] sm:$0xf] %vm216_vm0, %v2762_v53  ;;  %v2782_v7 = vpack.c.bf16 %v323_v38, %v323_v38 }
  0x36   : > { %464 = vst.msk [vmem:[#allocation2 + $0x84] sm:$0xf] %vm216_vm0, %v2763_v54  ;;  %v2783_v8 = vpack.c.bf16 %v324_v48, %v324_v48  ;;  %v802_v9 = vrot.slane %v800_v46, 5  ;;  %465 = vst.msk [vmem:[#allocation2 + $0x98] sm:$0xf] %vm216_vm0, %v2764_v60  ;;  %v2785_v14 = vpack.c.bf16 %v326_v55, %v326_v55  ;;  %v2766_v15 = vpack.c.bf16 %v307_v56, %v307_v56 }
  0x37   : > { %466 = vst.msk [vmem:[#allocation2 + $0x9c] sm:$0xf] %vm216_vm0, %v2765_v61  ;;  %483 = vst.msk [vmem:[#allocation2 + $0x170] sm:$0xf] %vm216_vm0, %v2782_v7  ;;  %v2769_v18 = vpack.c.bf16 %v310_v1, %v310_v1  ;;  %v811_v19 = vor.u32 %v810_v2, %v807_v59  ;;  %v951_v21 = vrot.slane %v2998_v51, 5  ;;  %v3286_v22 = vcombine.low %v3269_v6, %v3274_v11 }
  0x38   : > { %971 = vrot.lane.b32.xlu1 %v922_v17, %s3042_s22  ;;  %484 = vst.msk [vmem:[#allocation2 + $0x174] sm:$0xf] %vm216_vm0, %v2783_v8  ;;  %v2768_v17 = vpack.c.bf16 %v309_v0, %v309_v0  ;;  %486 = vst.msk [vmem:[#allocation2 + $0x18c] sm:$0xf] %vm216_vm0, %v2785_v14  ;;  %v803_v24 = vor.u32 %v802_v9, %v799_v5  ;;  %v950_v25 = vrot.slane %v3219_v12, 5  ;;  %v733_v26 = vshrl.u32 %v3256_v52, 16 }
  0x39   : > { %854 = vrot.lane.b32.xlu0 %v787_v16, %s3043_s23  ;;  %v2767_v16 = vpack.c.bf16 %v308_v57, %v308_v57  ;;  %467 = vst.msk [vmem:[#allocation2 + $0xb0] sm:$0xf] %vm216_vm0, %v2766_v15  ;;  %470 = vst.msk [vmem:[#allocation2 + $0xcc] sm:$0xf] %vm216_vm0, %v2769_v18  ;;  %v736_v27 = vshll.u32 %v3256_v52, 16  ;;  %v741_v28 = vshrl.u32 %v3286_v22, 16 }
  0x3a   : > { %469 = vst.msk [vmem:[#allocation2 + $0xc8] sm:$0xf] %vm216_vm0, %v2768_v17  ;;  %v744_v29 = vshll.u32 %v3286_v22, 16  ;;  %v952_v30 = vsel %vm916_vm1, %v950_v25, %v951_v21  ;;  %v735_v31 = vrot.slane %v733_v26, 4  ;;  %v3001_v33 = vld [vmem:[#allocation2 + $0x130] ss:$0 sps:$4 sm:$0xff]  }
  0x3b   : > { %468 = vst.msk [vmem:[#allocation2 + $0xb4] sm:$0xf] %vm216_vm0, %v2767_v16  ;;  %v738_v32 = vrot.slane %v736_v27, 5  ;;  %v953_v12 = vrot.slane %v3214_v10, 5  ;;  %v743_v37 = vrot.slane %v741_v28, 4  ;;  %v954_v48 = vrot.slane %v3001_v33, 5 }
  0x3c   : > { %975 = vrot.lane.b32.xlu1 %v925_v43, %s3042_s22  ;;  %v746_v38 = vrot.slane %v744_v29, 5  ;;  %v3002_v43 = vld [vmem:[#allocation2 + $0x58] ss:$0 sps:$4 sm:$0xff]   ;;  %v3305_v47 = vld [vmem:[#allocation2 + $0x15c] sm:$0xf]  ;;  %v926_v54 = vrot.slane %v3256_v52, 5 }
  0x3d   : > { %856 = vrot.lane.b32.xlu0 %v795_v42, %s3043_s23  ;;  %v739_v42 = vor.u32 %v738_v32, %v735_v31  ;;  %v3303_v46 = vld [vmem:[#allocation2 + $0x158] sm:$0xf]  ;;  %v3307_v49 = vld [vmem:[#allocation2 + $0x140] sm:$0xf]  ;;  %v3003_v51 = vld [vmem:[#allocation2 + $0x70] ss:$0 sps:$4 sm:$0xff]   ;;  %v955_v57 = vsel %vm916_vm1, %v953_v12, %v954_v48 }
  0x3e   : > { %v747_v53 = vor.u32 %v746_v38, %v743_v37  ;;  %v3314_v10 = vcombine.low %v3303_v46, %v3305_v47  ;;  %v927_v55 = vrot.slane %v3002_v43, 5  ;;  %v930_v59 = vrot.slane %v3003_v51, 5  ;;  %v560_v0 = vld [vmem:[%s3953_s1 + $0x4] sm:$0xf]  ;;  %v561_v52 = vld [vmem:[%s3953_s1 + $0x8] sm:$0xf] }
  0x3f   : > { %v3333_v7 = vld [vmem:[#allocation2 + $0x80] sm:$0xf]  ;;  %v3335_v8 = vld [vmem:[#allocation2 + $0x84] sm:$0xf]  ;;  %v3006_v9 = vld [vmem:[#allocation2 + $0x148] ss:$0 sps:$4 sm:$0xff]   ;;  %v2663_v14 = vcombine.low %v560_v0, %v561_v52  ;;  %v3349_v26 = vcombine.low %v559_v13, %v560_v0 }
  0x40   : > { %840 = vrot.lane.b32.xlu1 %v731_v50, %s3043_s23  ;;  %v3309_v50 = vld [vmem:[#allocation2 + $0x144] sm:$0xf]  ;;  %v821_v60 = vshrl.u32 %v3314_v10, 16  ;;  %v824_v61 = vshll.u32 %v3314_v10, 16  ;;  %v928_v1 = vsel %vm916_vm1, %v926_v54, %v927_v55  ;;  %v3342_v18 = vld [vmem:[#allocation2 + $0x98] sm:$0xf] }
  0x41   : > { %838 = vrot.lane.b32.xlu0 %v723_v58, %s3043_s23  ;;  %v2640_v56 = vcombine.low %v3307_v49, %v3309_v50  ;;  %v929_v58 = vrot.slane %v3286_v22, 5  ;;  %v2632_v22 = vcombine.low %v3333_v7, %v3335_v8  ;;  %v957_v29 = vrot.slane %v3006_v9, 5  ;;  %v3009_v51 = vld [vmem:[#allocation2 + $0x160] ss:$0 sps:$4 sm:$0xff]  }
  0x42   : > { %v823_v16 = vrot.slane %v821_v60, 4  ;;  %v826_v17 = vrot.slane %v824_v61, 5  ;;  %v3372_v60 = vld [vmem:[#allocation2 + $0x174] sm:$0xf]  ;;  %v3011_v0 = vld [vmem:[#allocation2 + $0xa0] ss:$0 sps:$4 sm:$0xff]  }
  0x43   : > { %v813_v2 = vshrl.u32 %v2640_v56, 16  ;;  %v816_v5 = vshll.u32 %v2640_v56, 16  ;;  %v931_v15 = vsel %vm916_vm1, %v929_v58, %v930_v59  ;;  %v956_v32 = vrot.slane %v2640_v56, 5  ;;  %v3370_v59 = vld [vmem:[#allocation2 + $0x170] sm:$0xf] }
  0x44   : > { %860 = vrot.lane.b32.xlu1 %v811_v19, %s3043_s23  ;;  %v827_v28 = vor.u32 %v826_v17, %v823_v16  ;;  %v749_v33 = vshrl.u32 %v2632_v22, 16  ;;  %v932_v52 = vrot.slane %v2632_v22, 5  ;;  %v936_v13 = vrot.slane %v3011_v0, 5 }
  0x45   : > { %858 = vrot.lane.b32.xlu0 %v803_v24, %s3043_s23  ;;  %v815_v19 = vrot.slane %v813_v2, 4  ;;  %v818_v21 = vrot.slane %v816_v5, 5  ;;  %v3347_v24 = vld [vmem:[#allocation2 + $0x9c] sm:$0xf]  ;;  %v3378_v2 = vld [vmem:[#allocation2 + $0x188] sm:$0xf] }
  0x46   : > { %v751_v43 = vrot.slane %v749_v33, 4  ;;  %v3380_v5 = vld [vmem:[#allocation2 + $0x18c] sm:$0xf] }
  0x47   : > { %v819_v31 = vor.u32 %v818_v21, %v815_v19  ;;  %v3391_v21 = vld [vmem:[#allocation2 + $0xb0] sm:$0xf]  ;;  %v3404_v33 = vld [vmem:[#allocation2 + $0xcc] sm:$0xf] }
  0x48   : > { %1011 = vrot.lane.b32.xlu1 %v952_v30, %s3042_s22  ;;  %v3357_v30 = vcombine.low %v3342_v18, %v3347_v24 }
  0x49   : > { %1009 = vrot.lane.b32.xlu0 %v950_v25, %s3042_s22  ;;  %v1474_v25 = vrot.slane %v2663_v14, 2  ;;  %v3386_v14 = vcombine.low %v3378_v2, %v3380_v5 }
  0x4a   : > { %v757_v37 = vshrl.u32 %v3357_v30, 16  ;;  %v760_v38 = vshll.u32 %v3357_v30, 16  ;;  %v935_v16 = vrot.slane %v3357_v30, 5 }
  0x4b   : > { %2974 = vmatprep.subr.msk.bf16.mxu1 %vm1524_vm2, %v1474_v25  ;;  %v1526_v27 = vsel %vm1524_vm2, %v1474_v25, 0  ;;  %2973 = vmatprep.subr.msk.bf16.mxu0 %vm1524_vm2, %v1474_v25  ;;  %v1426_v25 = vshrl.u32 %v3386_v14, 16 }
  0x4c   : > { %1013 = vrot.lane.b32.xlu1 %v953_v12, %s3042_s22  ;;  %2972 = vmatpush3.bf16.msra.mxu1 %v1526_v27  ;;  %v752_v12 = vshll.u32 %v2632_v22, 16  ;;  %v762_v55 = vrot.slane %v760_v38, 5  ;;  %v3393_v22 = vld [vmem:[#allocation2 + $0xb4] sm:$0xf] }
  0x4d   : > { %842 = vrot.lane.b32.xlu0 %v739_v42, %s3043_s23  ;;  %2870 = vmatpush3.bf16.msra.mxu0 %v1526_v27  ;;  %v958_v42 = vsel %vm916_vm1, %v956_v32, %v957_v29  ;;  %v1429_v27 = vshll.u32 %v3386_v14, 16  ;;  %v2634_v30 = vcombine.low %v3391_v21, %v3393_v22  ;;  %v1428_v38 = vrot.slane %v1426_v25, 4  ;;  %v3427_v25 = vld [vmem:[#allocation2 + $0x8] sm:$0xf] }
  0x4e   : > { %2975 = vmatprep.subr.msk.bf16.mxu1 %vm1524_vm2, %v3349_v26  ;;  %v754_v48 = vrot.slane %v752_v12, 5  ;;  %v3014_v12 = vld [vmem:[#allocation2 + $0x178] ss:$0 sps:$4 sm:$0xff]  }
  0x50   : > { %844 = vrot.lane.b32.xlu1 %v747_v53, %s3043_s23  ;;  %v959_v53 = vrot.slane %v3314_v10, 5  ;;  %v755_v56 = vor.u32 %v754_v48, %v751_v43  ;;  %v2642_v10 = vcombine.low %v3370_v59, %v3372_v60 }
  0x51   : > { %1015 = vrot.lane.b32.xlu0 %v955_v57, %s3042_s22  ;;  %v3010_v57 = vld [vmem:[#allocation2 + $0x88] ss:$0 sps:$4 sm:$0xff]  }
  0x52   : > { %v829_v17 = vshrl.u32 %v2642_v10, 16  ;;  %v832_v19 = vshll.u32 %v2642_v10, 16 }
  0x54   : > { %979 = vrot.lane.b32.xlu1 %v928_v1, %s3042_s22  ;;  %v933_v1 = vrot.slane %v3010_v57, 5  ;;  %v831_v29 = vrot.slane %v829_v17, 4  ;;  %v3018_v17 = vld [vmem:[#allocation2 + $0xb8] ss:$0 sps:$4 sm:$0xff]  }
  0x55   : > { %977 = vrot.lane.b32.xlu0 %v926_v54, %s3042_s22  ;;  %v759_v54 = vrot.slane %v757_v37, 4  ;;  %v962_v37 = vrot.slane %v2642_v10, 5  ;;  %v3017_v10 = vld [vmem:[#allocation2 + $0x190] ss:$0 sps:$4 sm:$0xff]  }
  0x57   : > { %v763_v61 = vor.u32 %v762_v55, %v759_v54  ;;  %v3412_v54 = vsel %vm1524_vm2, %v3349_v26, 0  ;;  %v3026_v55 = vld [vmem:[%s3953_s1 + $0xc] sm:$0x3f]  }
  0x58   : > { %983 = vrot.lane.b32.xlu1 %v931_v15, %s3042_s22  ;;  %v934_v15 = vsel %vm916_vm1, %v932_v52, %v933_v1  ;;  %2976 = vmatprep.subr.msk.bf16.mxu0 %vm1524_vm2, %v3026_v55  ;;  %v3420_v0 = vsel %vm1524_vm2, %v3026_v55, 0 }
  0x59   : > { %981 = vrot.lane.b32.xlu0 %v929_v58, %s3042_s22  ;;  %v960_v58 = vrot.slane %v3009_v51, 5  ;;  %v765_v51 = vshrl.u32 %v2634_v30, 16 }
  0x5b   : > { %v961_v9 = vsel %vm916_vm1, %v959_v53, %v960_v58 }
  0x5c   : > { %864 = vrot.lane.b32.xlu1 %v827_v28, %s3043_s23  ;;  %v937_v28 = vsel %vm916_vm1, %v935_v16, %v936_v13 }
  0x5d   : > { %862 = vrot.lane.b32.xlu0 %v819_v31, %s3043_s23  ;;  %v834_v31 = vrot.slane %v832_v19, 5  ;;  %v1439_v19 = vrot.slane %v3017_v10, 5 }
  0x5f   : > { %v835_v48 = vor.u32 %v834_v31, %v831_v29  ;;  %v3019_v29 = vld [vmem:[#allocation2 + $0xd0] ss:$0 sps:$4 sm:$0xff]   ;;  %v938_v31 = vrot.slane %v2634_v30, 5 }
  0x60   : > { %1019 = vrot.lane.b32.xlu1 %v958_v42, %s3042_s22  ;;  %v1431_v42 = vrot.slane %v1429_v27, 5  ;;  %v3429_v27 = vld [vmem:[#allocation2 + $0xc] sm:$0xf] }
  0x61   : > { %1017 = vrot.lane.b32.xlu0 %v956_v32, %s3042_s22  ;;  %v3402_v32 = vld [vmem:[#allocation2 + $0xc8] sm:$0xf] }
  0x62   : > { %v2635_v43 = vcombine.low %v3402_v32, %v3404_v33  ;;  %v1432_v57 = vor.u32 %v1431_v42, %v1428_v38  ;;  %v3437_v38 = vld [vmem:[#allocation2 + $0x1a4] sm:$0xf] }
  0x64   : > { %1021 = vrot.lane.b32.xlu1 %v959_v53, %s3042_s22  ;;  %v768_v53 = vshll.u32 %v2634_v30, 16  ;;  %v773_v58 = vshrl.u32 %v2635_v43, 16 }
  0x65   : > { %846 = vrot.lane.b32.xlu0 %v755_v56, %s3043_s23  ;;  %v963_v56 = vrot.slane %v3014_v12, 5  ;;  %v939_v12 = vrot.slane %v3018_v17, 5 }
  0x66   : > { %v770_v26 = vrot.slane %v768_v53, 5  ;;  %v775_v13 = vrot.slane %v773_v58, 4  ;;  %v941_v53 = vrot.slane %v2635_v43, 5 }
  0x67   : > { %v964_v1 = vsel %vm916_vm1, %v962_v37, %v963_v56  ;;  %v940_v30 = vsel %vm916_vm1, %v938_v31, %v939_v12 }
  0x68   : > { %848 = vrot.lane.b32.xlu1 %v763_v61, %s3043_s23  ;;  %v776_v61 = vshll.u32 %v2635_v43, 16 }
  0x69   : > { %1023 = vrot.lane.b32.xlu0 %v961_v9, %s3042_s22  ;;  %v1438_v9 = vrot.slane %v3386_v14, 5  ;;  %v2627_v14 = vcombine.low %v3427_v25, %v3429_v27 }
  0x6b   : > { %v1440_v42 = vsel %vm916_vm1, %v1438_v9, %v1439_v19  ;;  %v709_v55 = vshrl.u32 %v2627_v14, 16  ;;  %v712_v56 = vshll.u32 %v2627_v14, 16  ;;  %v917_v10 = vrot.slane %v2627_v14, 5 }
  0x6c   : > { %987 = vrot.lane.b32.xlu1 %v934_v15, %s3042_s22  ;;  %v778_v15 = vrot.slane %v776_v61, 5 }
  0x6d   : > { %985 = vrot.lane.b32.xlu0 %v932_v52, %s3042_s22  ;;  %v767_v52 = vrot.slane %v765_v51, 4 }
  0x70   : > { %991 = vrot.lane.b32.xlu1 %v937_v28, %s3042_s22  ;;  %v779_v28 = vor.u32 %v778_v15, %v775_v13  ;;  %v3025_v15 = vld [vmem:[#allocation2 + $0x1a8] ss:$0 sps:$4 sm:$0xff]  }
  0x71   : > { %989 = vrot.lane.b32.xlu0 %v935_v16, %s3042_s22  ;;  %v771_v16 = vor.u32 %v770_v26, %v767_v52  ;;  %v711_v52 = vrot.slane %v709_v55, 4  ;;  %v714_v26 = vrot.slane %v712_v56, 5  ;;  %v2614_v56 = vcombine.low %v3166_v35, %v3166_v35 }
  0x73   : > { %v715_v43 = vor.u32 %v714_v26, %v711_v52 }
  0x74   : > { %1025 = vrot.lane.b32.xlu1 %v962_v37, %s3042_s22  ;;  %v3435_v37 = vld [vmem:[#allocation2 + $0x1a0] sm:$0xf] }
  0x75   : > { %866 = vrot.lane.b32.xlu0 %v835_v48, %s3043_s23  ;;  %v942_v48 = vrot.slane %v3019_v29, 5  ;;  %v2699_v51 = vcombine.low %v3435_v37, %v3437_v38 }
  0x77   : > { %v1872_v58 = vshll.u32 %v2699_v51, 16  ;;  %v943_v61 = vsel %vm916_vm1, %v941_v53, %v942_v48  ;;  %v1881_v19 = vrot.slane %v2699_v51, 5 }
  0x78   : > { %1433 = vrot.lane.b32.xlu1 %v1432_v57, %s3043_s23  ;;  %v1869_v57 = vshrl.u32 %v2699_v51, 16 }
  0x79   : > { %1027 = vrot.lane.b32.xlu0 %v964_v1, %s3042_s22  ;;  %v3021_v1 = vld [vmem:[#allocation2 + $0x10] ss:$0 sps:$4 sm:$0xff]   ;;  %v1874_v13 = vrot.slane %v1872_v58, 5  ;;  %v527_v58 = vld [vmem:[#allocation2 + $0xf4] sm:$0xf] }
  0x7c   : > { %1441 = vrot.lane.b32.xlu1 %v1438_v9, %s3042_s22  ;;  %v1871_v9 = vrot.slane %v1869_v57, 4 }
  0x7d   : > { %850 = vrot.lane.b32.xlu0 %v771_v16, %s3043_s23  ;;  %v918_v16 = vrot.slane %v3021_v1, 5  ;;  %v2616_v1 = vcombine.low %v3178_v41, %v3178_v41 }
  0x7e   : > { %v1875_v17 = vor.u32 %v1874_v13, %v1871_v9  ;;  %v491_v9 = vld [vmem:[#allocation2 + $0x1c] sm:$0xf]  ;;  %v3467_v13 = vld [vmem:[#allocation2 + $0x124] sm:$0xf] }
  0x7f   : > { %v919_v29 = vsel %vm916_vm1, %v917_v10, %v918_v16 }
  0x80   : > { %852 = vrot.lane.b32.xlu1 %v779_v28, %s3043_s23  ;;  %v1882_v28 = vrot.slane %v3025_v15, 5  ;;  %v2600_v15 = vcombine.low %v3188_v45, %v3188_v45 }
  0x81   : > { %1443 = vrot.lane.b32.xlu0 %v1440_v42, %s3042_s22 }
  0x84   : > { %995 = vrot.lane.b32.xlu1 %v940_v30, %s3042_s22  ;;  %v523_v30 = vld [vmem:[#allocation2 + $0xdc] sm:$0xf] }
  0x85   : > { %993 = vrot.lane.b32.xlu0 %v938_v31, %s3042_s22  ;;  %v1883_v31 = vsel %vm916_vm1, %v1881_v19, %v1882_v28  ;;  %v2613_v55 = vcombine.low %v523_v30, %v3164_v34 }
  0x88   : > { %999 = vrot.lane.b32.xlu1 %v943_v61, %s3042_s22 }
  0x89   : > { %997 = vrot.lane.b32.xlu0 %v941_v53, %s3042_s22 }
  0x8c   : > { %965 = vrot.lane.b32.xlu1 %v917_v10, %s3042_s22  ;;  %v495_v10 = vld [vmem:[#allocation2 + $0x34] sm:$0xf] }
  0x8d   : > { %836 = vrot.lane.b32.xlu0 %v715_v43, %s3043_s23  ;;  %v2615_v43 = vcombine.low %v527_v58, %v3176_v40  ;;  %v2599_v30 = vcombine.low %v495_v10, %v3186_v44  ;;  %v2619_v40 = vcombine.low %v3467_v13, %v3199_v62 }
  0x90   : > { %1876 = vrot.lane.b32.xlu1 %v1875_v17, %s3043_s23 }
  0x91   : > { %967 = vrot.lane.b32.xlu0 %v919_v29, %s3042_s22 }
  0x94   : > { %1886 = vrot.lane.b32.xlu1 %v1883_v31, %s3042_s22  ;;  %v3474_v31 = vld [vmem:[#allocation2 + $0x10c] sm:$0xf] }
  0x95   : > { %1884 = vrot.lane.b32.xlu0 %v1881_v19, %s3042_s22  ;;  %v2617_v44 = vcombine.low %v3474_v31, %v3205_v3 }
  0x9e   : > { %v1002_v12 = vpop.permute.xlu1 %1001 }
  0x9f   : > { %v3458_v14 = vpop.permute.xlu0 %969 }
  0xa2   : > { %v1006_v42 = vpop.permute.xlu1 %1005 }
  0xa3   : > { %v974_v48 = vpop.permute.xlu0 %973 }
  0xa6   : > { %v1004_v51 = vpop.permute.xlu1 %1003 }
  0xa7   : > { %v1008_v53 = vpop.permute.xlu0 %1007 }
  0xaa   : > { %v972_v57 = vpop.permute.xlu1 %971 }
  0xab   : > { %v855_v61 = vpop.permute.xlu0 %854 }
  0xac   : > { %v1077_v52 = vsel %vm1029_vm3, %v2613_v55, %v855_v61  ;;  %v1079_v26 = vsel %vm1029_vm3, %v2614_v56, %v855_v61 }
  0xad   : > { %v1148_v34 = vsel %vm1110_vm4, %v1077_v52, %v1002_v12  ;;  %v1150_v35 = vsel %vm1110_vm4, %v1079_v26, %v1004_v51  ;;  %v2598_v12 = vcombine.low %v3174_v39, %v3174_v39  ;;  %v2597_v51 = vcombine.low %v491_v9, %v3168_v36 }
  0xae   : > { %v1311_v16 = vshrl.u32 %v1148_v34, 16  ;;  %v1314_v17 = vshll.u32 %v1148_v34, 16  ;;  %v1318_v19 = vshrl.u32 %v1150_v35, 16  ;;  %v1321_v28 = vshll.u32 %v1150_v35, 16  ;;  %v976_v29 = vpop.permute.xlu1 %975 }
  0xaf   : > { %v857_v41 = vpop.permute.xlu0 %856  ;;  %v2618_v39 = vcombine.low %v3207_v4, %v3207_v4 }
  0xb0   : > { %v1313_v55 = vrot.slane %v1311_v16, 3  ;;  %v1316_v45 = vrot.slane %v1314_v17, 4  ;;  %v1320_v56 = vrot.slane %v1318_v19, 3  ;;  %v1323_v58 = vrot.slane %v1321_v28, 4 }
  0xb1   : > { %v1082_v61 = vsel %vm1029_vm3, %v2615_v43, %v857_v41  ;;  %v1084_v52 = vsel %vm1029_vm3, %v2616_v1, %v857_v41 }
  0xb2   : > { %v1152_v36 = vsel %vm1110_vm4, %v1082_v61, %v1006_v42  ;;  %v1154_v62 = vsel %vm1110_vm4, %v1084_v52, %v1008_v53  ;;  %v841_v26 = vpop.permute.xlu1 %840  ;;  %v1317_v10 = vor.u32 %v1316_v45, %v1313_v55  ;;  %v1324_v9 = vor.u32 %v1323_v58, %v1320_v56 }
  0xb3   : > { %v1326_v13 = vshrl.u32 %v1152_v36, 16  ;;  %v1329_v34 = vshll.u32 %v1152_v36, 16  ;;  %v1333_v35 = vshrl.u32 %v1154_v62, 16  ;;  %v1336_v43 = vshll.u32 %v1154_v62, 16  ;;  %v839_v16 = vpop.permute.xlu0 %838 }
  0xb4   : > { %v1042_v1 = vsel %vm1029_vm3, %v2599_v30, %v841_v26  ;;  %v1044_v17 = vsel %vm1029_vm3, %v2600_v15, %v841_v26  ;;  %v1037_v3 = vsel %vm1029_vm3, %v2597_v51, %v839_v16  ;;  %v1039_v4 = vsel %vm1029_vm3, %v2598_v12, %v839_v16 }
  0xb5   : > { %v1328_v19 = vrot.slane %v1326_v13, 3  ;;  %v1331_v42 = vrot.slane %v1329_v34, 4  ;;  %v1335_v28 = vrot.slane %v1333_v35, 3  ;;  %v1338_v53 = vrot.slane %v1336_v43, 4 }
  0xb6   : > { %v1120_v31 = vsel %vm1110_vm4, %v1042_v1, %v974_v48  ;;  %v1122_v41 = vsel %vm1110_vm4, %v1044_v17, %v976_v29  ;;  %v1116_v55 = vsel %vm1110_vm4, %v1037_v3, %v3458_v14  ;;  %v1118_v45 = vsel %vm1110_vm4, %v1039_v4, %v972_v57  ;;  %v861_v30 = vpop.permute.xlu1 %860 }
  0xb7   : > { %v1332_v56 = vor.u32 %v1331_v42, %v1328_v19  ;;  %v1339_v15 = vor.u32 %v1338_v53, %v1335_v28  ;;  %v1206_v58 = vshrl.u32 %v1120_v31, 16  ;;  %v1209_v51 = vshll.u32 %v1120_v31, 16  ;;  %v859_v61 = vpop.permute.xlu0 %858 }
  0xb8   : > { %v1213_v12 = vshrl.u32 %v1122_v41, 16  ;;  %v1216_v52 = vshll.u32 %v1122_v41, 16  ;;  %v1191_v36 = vshrl.u32 %v1116_v55, 16  ;;  %v1194_v62 = vshll.u32 %v1116_v55, 16 }
  0xb9   : > { %v1208_v26 = vrot.slane %v1206_v58, 3  ;;  %v1211_v13 = vrot.slane %v1209_v51, 4  ;;  %v1198_v48 = vshrl.u32 %v1118_v45, 16  ;;  %v1201_v34 = vshll.u32 %v1118_v45, 16 }
  0xba   : > { %v1215_v29 = vrot.slane %v1213_v12, 3  ;;  %v1218_v35 = vrot.slane %v1216_v52, 4  ;;  %v1193_v43 = vrot.slane %v1191_v36, 3  ;;  %v1196_v14 = vrot.slane %v1194_v62, 4  ;;  %v1012_v16 = vpop.permute.xlu1 %1011  ;;  %v499_v62 = vld [vmem:[#allocation2 + $0x4c] sm:$0xf] }
  0xbb   : > { %v1212_v57 = vor.u32 %v1211_v13, %v1208_v26  ;;  %v1200_v1 = vrot.slane %v1198_v48, 3  ;;  %v1203_v17 = vrot.slane %v1201_v34, 4  ;;  %v3500_v3 = vsel %vm1175_vm5, %v1317_v10, %v1324_v9  ;;  %v1010_v4 = vpop.permute.xlu0 %1009 }
  0xbc   : > { %v1219_v19 = vor.u32 %v1218_v35, %v1215_v29  ;;  %2887 = vmatprep.mubr.msk.bf16.mxu1 %vm1475_vm6, %v3500_v3  ;;  %v2620_v42 = vcombine.low %v3201_v63, %v3201_v63  ;;  %v1092_v28 = vsel %vm1029_vm3, %v2619_v40, %v861_v30  ;;  %v1087_v53 = vsel %vm1029_vm3, %v2617_v44, %v859_v61 }
  0xbd   : > { %v1089_v31 = vsel %vm1029_vm3, %v2618_v39, %v859_v61  ;;  %v3510_v41 = vsel %vm1175_vm5, %v1332_v56, %v1339_v15  ;;  %v1156_v10 = vsel %vm1110_vm4, %v1087_v53, %v1010_v4  ;;  %v1197_v9 = vor.u32 %v1196_v14, %v1193_v43 }
  0xbe   : > { %2888 = vmatmul.mubr.msk.bf16.vlgmr.msra.gmra.mxu1 %vm1475_vm6, %v3510_v41  ;;  %v1158_v55 = vsel %vm1110_vm4, %v1089_v31, %v1012_v16  ;;  %v1341_v45 = vshrl.u32 %v1156_v10, 16  ;;  %v1344_v58 = vshll.u32 %v1156_v10, 16  ;;  %v1204_v63 = vor.u32 %v1203_v17, %v1200_v1  ;;  %v1014_v51 = vpop.permute.xlu1 %1013  ;;  %v503_v16 = vld [vmem:[#allocation2 + $0x64] sm:$0xf] }
  0xbf   : > { %v1348_v40 = vshrl.u32 %v1158_v55, 16  ;;  %v1351_v12 = vshll.u32 %v1158_v55, 16  ;;  %v3517_v44 = vsel %vm1175_vm5, %v1212_v57, %v1219_v19  ;;  %v1160_v39 = vsel %vm1110_vm4, %v1092_v28, %v1014_v51  ;;  %v843_v56 = vpop.permute.xlu0 %842  ;;  %2904 = vmatpush3.bf16.msra.mxu1 %v3412_v54 }
  0xc0   : > { %v1343_v15 = vrot.slane %v1341_v45, 3  ;;  %v1346_v61 = vrot.slane %v1344_v58, 4  ;;  %v3522_v52 = vsel %vm1175_vm5, %v1197_v9, %v1204_v63  ;;  %v1356_v36 = vshrl.u32 %v1160_v39, 16 }
  0xc1   : > { %v1350_v26 = vrot.slane %v1348_v40, 3  ;;  %v1353_v13 = vrot.slane %v1351_v12, 4  ;;  %2871 = vmatprep.mubr.msk.bf16.mxu0 %vm1475_vm6, %v3522_v52  ;;  %v1359_v48 = vshll.u32 %v1160_v39, 16  ;;  %v2602_v54 = vcombine.low %v3232_v23, %v3232_v23 }
  0xc2   : > { %v1347_v34 = vor.u32 %v1346_v61, %v1343_v15  ;;  %2872 = vmatmul.mubr.msk.bf16.vlgmr.msra.gmra.mxu0 %vm1475_vm6, %v3517_v44  ;;  %v845_v29 = vpop.permute.xlu1 %844  ;;  %v1094_v35 = vsel %vm1029_vm3, %v2620_v42, %v861_v30  ;;  %v2601_v14 = vcombine.low %v499_v62, %v3226_v20  ;;  %v1358_v1 = vrot.slane %v1356_v36, 3 }
  0xc3   : > { %v1354_v43 = vor.u32 %v1353_v13, %v1350_v26  ;;  %v1016_v57 = vpop.permute.xlu0 %1015  ;;  %2938 = vmatpush3.bf16.msra.mxu0 %v3420_v0  ;;  %v1361_v4 = vrot.slane %v1359_v48, 4  ;;  %v1049_v23 = vsel %vm1029_vm3, %v2602_v54, %v843_v56  ;;  %v2603_v30 = vcombine.low %v503_v16, %v3269_v6 }
  0xc4   : > { %v1162_v17 = vsel %vm1110_vm4, %v1094_v35, %v1016_v57  ;;  %v2604_v20 = vcombine.low %v3274_v11, %v3274_v11  ;;  %v1047_v42 = vsel %vm1029_vm3, %v2601_v14, %v843_v56 }
  0xc5   : > { %v1363_v19 = vshrl.u32 %v1162_v17, 16  ;;  %v1366_v28 = vshll.u32 %v1162_v17, 16  ;;  %v3535_v53 = vsel %vm1175_vm5, %v1347_v34, %v1354_v43  ;;  %v1362_v51 = vor.u32 %v1361_v4, %v1358_v1 }
  0xc6   : > { %2891 = vmatprep.mubr.msk.bf16.mxu1 %vm1475_vm6, %v3535_v53  ;;  %v980_v0 = vpop.permute.xlu1 %979  ;;  %v1052_v11 = vsel %vm1029_vm3, %v2603_v30, %v845_v29  ;;  %v1054_v39 = vsel %vm1029_vm3, %v2604_v20, %v845_v29  ;;  %v539_v29 = vld [vmem:[#allocation2 + $0x13c] sm:$0xf]  ;;  %v543_v30 = vld [vmem:[#allocation2 + $0x154] sm:$0xf] }
  0xc7   : > { %v1365_v31 = vrot.slane %v1363_v19, 3  ;;  %v1368_v10 = vrot.slane %v1366_v28, 4  ;;  %v1126_v9 = vsel %vm1110_vm4, %v1049_v23, %v980_v0  ;;  %v978_v55 = vpop.permute.xlu0 %977  ;;  %v2622_v19 = vcombine.low %v3309_v50, %v3309_v50 }
  0xc8   : > { %v1228_v45 = vshrl.u32 %v1126_v9, 16  ;;  %v1231_v58 = vshll.u32 %v1126_v9, 16  ;;  %v1124_v63 = vsel %vm1110_vm4, %v1047_v42, %v978_v55  ;;  %v2621_v20 = vcombine.low %v539_v29, %v3307_v49 }
  0xc9   : > { %v1369_v6 = vor.u32 %v1368_v10, %v1365_v31  ;;  %v1221_v40 = vshrl.u32 %v1124_v63, 16  ;;  %v1224_v12 = vshll.u32 %v1124_v63, 16  ;;  %v2623_v9 = vcombine.low %v543_v30, %v3303_v46 }
  0xca   : > { %v1230_v15 = vrot.slane %v1228_v45, 3  ;;  %v1233_v61 = vrot.slane %v1231_v58, 4  ;;  %v984_v56 = vpop.permute.xlu1 %983 }
  0xcb   : > { %v1223_v36 = vrot.slane %v1221_v40, 3  ;;  %v1226_v62 = vrot.slane %v1224_v12, 4  ;;  %v1130_v26 = vsel %vm1110_vm4, %v1054_v39, %v984_v56  ;;  %v982_v13 = vpop.permute.xlu0 %981  ;;  %v3550_v48 = vsel %vm1175_vm5, %v1362_v51, %v1369_v6 }
  0xcc   : > { %v1234_v34 = vor.u32 %v1233_v61, %v1230_v15  ;;  %v1243_v54 = vshrl.u32 %v1130_v26, 16  ;;  %v1246_v35 = vshll.u32 %v1130_v26, 16  ;;  %v1128_v43 = vsel %vm1110_vm4, %v1052_v11, %v982_v13  ;;  %2892 = vmatmul.mubr.msk.bf16.gmra.mxu1 %vm1475_vm6, %v3550_v48 }
  0xcd   : > { %v1227_v14 = vor.u32 %v1226_v62, %v1223_v36  ;;  %v1236_v16 = vshrl.u32 %v1128_v43, 16  ;;  %v1239_v57 = vshll.u32 %v1128_v43, 16  ;;  %v2624_v56 = vcombine.low %v3305_v47, %v3305_v47 }
  0xce   : > { %v1245_v1 = vrot.slane %v1243_v54, 3  ;;  %v1248_v17 = vrot.slane %v1246_v35, 4  ;;  %v865_v4 = vpop.permute.xlu1 %864  ;;  %v507_v54 = vld [vmem:[#allocation2 + $0x7c] sm:$0xf] }
  0xcf   : > { %v1238_v28 = vrot.slane %v1236_v16, 3  ;;  %v1241_v23 = vrot.slane %v1239_v57, 4  ;;  %v863_v0 = vpop.permute.xlu0 %862  ;;  %v3559_v31 = vsel %vm1175_vm5, %v1227_v14, %v1234_v34  ;;  %v1102_v11 = vsel %vm1029_vm3, %v2623_v9, %v865_v4 }
  0xd0   : > { %v1249_v42 = vor.u32 %v1248_v17, %v1245_v1  ;;  %2875 = vmatprep.mubr.msk.bf16.mxu0 %vm1475_vm6, %v3559_v31  ;;  %v1099_v55 = vsel %vm1029_vm3, %v2622_v19, %v863_v0  ;;  %v1097_v50 = vsel %vm1029_vm3, %v2621_v20, %v863_v0  ;;  %v2606_v14 = vcombine.low %v3335_v8, %v3335_v8  ;;  %v511_v17 = vld [vmem:[#allocation2 + $0x94] sm:$0xf]  ;;  %v547_v8 = vld [vmem:[#allocation2 + $0x16c] sm:$0xf] }
  0xd1   : > { %v1242_v10 = vor.u32 %v1241_v23, %v1238_v28  ;;  %v1104_v57 = vsel %vm1029_vm3, %v2624_v56, %v865_v4  ;;  %v2605_v1 = vcombine.low %v507_v54, %v3333_v7  ;;  %v2607_v4 = vcombine.low %v511_v17, %v3342_v18 }
  0xd2   : > { %v1020_v45 = vpop.permute.xlu1 %1019  ;;  %v2608_v7 = vcombine.low %v3347_v24, %v3347_v24 }
  0xd3   : > { %v1166_v58 = vsel %vm1110_vm4, %v1099_v55, %v1020_v45  ;;  %v1018_v63 = vpop.permute.xlu0 %1017  ;;  %v3568_v49 = vsel %vm1175_vm5, %v1242_v10, %v1249_v42 }
  0xd4   : > { %v1378_v51 = vshrl.u32 %v1166_v58, 16  ;;  %v1381_v6 = vshll.u32 %v1166_v58, 16  ;;  %v1164_v40 = vsel %vm1110_vm4, %v1097_v50, %v1018_v63  ;;  %2876 = vmatmul.mubr.msk.bf16.gmra.mxu0 %vm1475_vm6, %v3568_v49 }
  0xd5   : > { %v1371_v12 = vshrl.u32 %v1164_v40, 16  ;;  %v1374_v46 = vshll.u32 %v1164_v40, 16  ;;  %v2625_v40 = vcombine.low %v547_v8, %v3370_v59 }
  0xd6   : > { %v1380_v39 = vrot.slane %v1378_v51, 3  ;;  %v1383_v15 = vrot.slane %v1381_v6, 4  ;;  %v1022_v61 = vpop.permute.xlu1 %1021 }
  0xd7   : > { %v1373_v36 = vrot.slane %v1371_v12, 3  ;;  %v1376_v62 = vrot.slane %v1374_v46, 4  ;;  %v1168_v26 = vsel %vm1110_vm4, %v1102_v11, %v1022_v61  ;;  %v847_v13 = vpop.permute.xlu0 %846 }
  0xd8   : > { %v1384_v34 = vor.u32 %v1383_v15, %v1380_v39  ;;  %v1386_v43 = vshrl.u32 %v1168_v26, 16  ;;  %v1389_v29 = vshll.u32 %v1168_v26, 16  ;;  %v1059_v42 = vsel %vm1029_vm3, %v2606_v14, %v847_v13 }
  0xd9   : > { %v1377_v35 = vor.u32 %v1376_v62, %v1373_v36  ;;  %v1057_v9 = vsel %vm1029_vm3, %v2605_v1, %v847_v13 }
  0xda   : > { %v849_v16 = vpop.permute.xlu1 %848  ;;  %v1388_v23 = vrot.slane %v1386_v43, 3  ;;  %v1391_v30 = vrot.slane %v1389_v29, 4 }
  0xdb   : > { %v1024_v47 = vpop.permute.xlu0 %1023  ;;  %v3582_v19 = vsel %vm1175_vm5, %v1377_v35, %v1384_v34  ;;  %v1062_v24 = vsel %vm1029_vm3, %v2607_v4, %v849_v16  ;;  %v1064_v39 = vsel %vm1029_vm3, %v2608_v7, %v849_v16 }
  0xdc   : > { %v1170_v28 = vsel %vm1110_vm4, %v1104_v57, %v1024_v47  ;;  %2895 = vmatprep.mubr.msk.bf16.mxu1 %vm1475_vm6, %v3582_v19  ;;  %v1392_v12 = vor.u32 %v1391_v30, %v1388_v23  ;;  %v551_v57 = vld [vmem:[#allocation2 + $0x184] sm:$0xf]  ;;  %v2626_v30 = vcombine.low %v3372_v60, %v3372_v60 }
  0xdd   : > { %v1393_v20 = vshrl.u32 %v1170_v28, 16  ;;  %v1396_v0 = vshll.u32 %v1170_v28, 16  ;;  %v2659_v4 = vcombine.low %v551_v57, %v3378_v2 }
  0xde   : > { %v988_v10 = vpop.permute.xlu1 %987 }
  0xdf   : > { %v1395_v55 = vrot.slane %v1393_v20, 3  ;;  %v1398_v45 = vrot.slane %v1396_v0, 4  ;;  %v1134_v50 = vsel %vm1110_vm4, %v1059_v42, %v988_v10  ;;  %v986_v58 = vpop.permute.xlu0 %985 }
  0xe0   : > { %v1258_v63 = vshrl.u32 %v1134_v50, 16  ;;  %v1261_v51 = vshll.u32 %v1134_v50, 16  ;;  %v1132_v6 = vsel %vm1110_vm4, %v1057_v9, %v986_v58 }
  0xe1   : > { %v1399_v46 = vor.u32 %v1398_v45, %v1395_v55  ;;  %v1251_v18 = vshrl.u32 %v1132_v6, 16  ;;  %v1254_v11 = vshll.u32 %v1132_v6, 16 }
  0xe2   : > { %v1260_v15 = vrot.slane %v1258_v63, 3  ;;  %v1263_v61 = vrot.slane %v1261_v51, 4  ;;  %v992_v56 = vpop.permute.xlu1 %991 }
  0xe3   : > { %v1253_v36 = vrot.slane %v1251_v18, 3  ;;  %v1256_v62 = vrot.slane %v1254_v11, 4  ;;  %v1138_v26 = vsel %vm1110_vm4, %v1064_v39, %v992_v56  ;;  %v990_v13 = vpop.permute.xlu0 %989  ;;  %v3599_v34 = vsel %vm1175_vm5, %v1392_v12, %v1399_v46 }
  0xe4   : > { %v1264_v59 = vor.u32 %v1263_v61, %v1260_v15  ;;  %v1273_v54 = vshrl.u32 %v1138_v26, 16  ;;  %v1276_v35 = vshll.u32 %v1138_v26, 16  ;;  %v1136_v43 = vsel %vm1110_vm4, %v1062_v24, %v990_v13  ;;  %2896 = vmatmul.mubr.msk.bf16.gmra.mxu1 %vm1475_vm6, %v3599_v34  ;;  %v515_v61 = vld [vmem:[#allocation2 + $0xac] sm:$0xf] }
  0xe5   : > { %v1257_v29 = vor.u32 %v1256_v62, %v1253_v36  ;;  %v1266_v14 = vshrl.u32 %v1136_v43, 16  ;;  %v1269_v16 = vshll.u32 %v1136_v43, 16  ;;  %v2660_v18 = vcombine.low %v3380_v5, %v3380_v5  ;;  %v519_v43 = vld [vmem:[#allocation2 + $0xc4] sm:$0xf] }
  0xe6   : > { %v1275_v1 = vrot.slane %v1273_v54, 3  ;;  %v1278_v17 = vrot.slane %v1276_v35, 4  ;;  %v1026_v47 = vpop.permute.xlu1 %1025  ;;  %v2610_v13 = vcombine.low %v3393_v22, %v3393_v22  ;;  %v2609_v35 = vcombine.low %v515_v61, %v3391_v21  ;;  %v487_v22 = vld [vmem:[#allocation2 + $0x4] sm:$0xf] }
  0xe7   : > { %v1268_v28 = vrot.slane %v1266_v14, 3  ;;  %v1271_v23 = vrot.slane %v1269_v16, 4  ;;  %v867_v20 = vpop.permute.xlu0 %866  ;;  %v3607_v0 = vsel %vm1175_vm5, %v1257_v29, %v1264_v59  ;;  %v2612_v21 = vcombine.low %v3404_v33, %v3404_v33 }
  0xe8   : > { %v1279_v8 = vor.u32 %v1278_v17, %v1275_v1  ;;  %v1107_v42 = vsel %vm1029_vm3, %v2625_v40, %v867_v20  ;;  %2879 = vmatprep.mubr.msk.bf16.mxu0 %vm1475_vm6, %v3607_v0  ;;  %v1109_v60 = vsel %vm1029_vm3, %v2626_v30, %v867_v20 }
  0xe9   : > { %v1272_v7 = vor.u32 %v1271_v23, %v1268_v28  ;;  %v1172_v10 = vsel %vm1110_vm4, %v1107_v42, %v1026_v47  ;;  %v2611_v28 = vcombine.low %v519_v43, %v3402_v32 }
  0xea   : > { %v1401_v9 = vshrl.u32 %v1172_v10, 16  ;;  %v1404_v55 = vshll.u32 %v1172_v10, 16  ;;  %v1434_v45 = vpop.permute.xlu1 %1433 }
  0xeb   : > { %v1028_v50 = vpop.permute.xlu0 %1027  ;;  %v3616_v58 = vsel %vm1175_vm5, %v1272_v7, %v1279_v8  ;;  %v1447_v63 = vsel %vm1029_vm3, %v2659_v4, %v1434_v45  ;;  %v1449_v54 = vsel %vm1029_vm3, %v2660_v18, %v1434_v45 }
  0xec   : > { %v1174_v51 = vsel %vm1110_vm4, %v1109_v60, %v1028_v50  ;;  %2880 = vmatmul.mubr.msk.bf16.gmra.mxu0 %vm1475_vm6, %v3616_v58  ;;  %v1403_v2 = vrot.slane %v1401_v9, 3  ;;  %v1406_v6 = vrot.slane %v1404_v55, 4  ;;  %v2595_v55 = vcombine.low %v487_v22, %v3427_v25 }
  0xed   : > { %v1408_v40 = vshrl.u32 %v1174_v51, 16  ;;  %v1411_v12 = vshll.u32 %v1174_v51, 16 }
  0xee   : > { %v1442_v46 = vpop.permute.xlu1 %1441  ;;  %v1407_v56 = vor.u32 %v1406_v6, %v1403_v2 }
  0xef   : > { %v1410_v11 = vrot.slane %v1408_v40, 3  ;;  %v1413_v24 = vrot.slane %v1411_v12, 4  ;;  %v1451_v39 = vsel %vm1110_vm4, %v1447_v63, %v1442_v46  ;;  %v851_v15 = vpop.permute.xlu0 %850 }
  0xf0   : > { %v1454_v62 = vshrl.u32 %v1451_v39, 16  ;;  %v1457_v26 = vshll.u32 %v1451_v39, 16  ;;  %v1069_v47 = vsel %vm1029_vm3, %v2610_v13, %v851_v15  ;;  %v1067_v30 = vsel %vm1029_vm3, %v2609_v35, %v851_v15 }
  0xf1   : > { %v1414_v36 = vor.u32 %v1413_v24, %v1410_v11  ;;  %v2596_v35 = vcombine.low %v3429_v27, %v3429_v27 }
  0xf2   : > { %v853_v59 = vpop.permute.xlu1 %852  ;;  %v1456_v16 = vrot.slane %v1454_v62, 3  ;;  %v1459_v57 = vrot.slane %v1457_v26, 4 }
  0xf3   : > { %v1444_v5 = vpop.permute.xlu0 %1443  ;;  %v3630_v29 = vsel %vm1175_vm5, %v1407_v56, %v1414_v36  ;;  %v1072_v33 = vsel %vm1029_vm3, %v2611_v28, %v853_v59  ;;  %v1074_v63 = vsel %vm1029_vm3, %v2612_v21, %v853_v59 }
  0xf4   : > { %v1453_v14 = vsel %vm1110_vm4, %v1449_v54, %v1444_v5  ;;  %2899 = vmatprep.mubr.msk.bf16.mxu1 %vm1475_vm6, %v3630_v29  ;;  %v1460_v45 = vor.u32 %v1459_v57, %v1456_v16 }
  0xf5   : > { %v1461_v1 = vshrl.u32 %v1453_v14, 16  ;;  %v1464_v17 = vshll.u32 %v1453_v14, 16 }
  0xf6   : > { %v996_v23 = vpop.permute.xlu1 %995 }
  0xf7   : > { %v1463_v20 = vrot.slane %v1461_v1, 3  ;;  %v1466_v8 = vrot.slane %v1464_v17, 4  ;;  %v1142_v42 = vsel %vm1110_vm4, %v1069_v47, %v996_v23  ;;  %v994_v4 = vpop.permute.xlu0 %993 }
  0xf8   : > { %v1288_v7 = vshrl.u32 %v1142_v42, 16  ;;  %v1291_v10 = vshll.u32 %v1142_v42, 16  ;;  %v1140_v9 = vsel %vm1110_vm4, %v1067_v30, %v994_v4 }
  0xf9   : > { %v1467_v60 = vor.u32 %v1466_v8, %v1463_v20  ;;  %v1281_v32 = vshrl.u32 %v1140_v9, 16  ;;  %v1284_v50 = vshll.u32 %v1140_v9, 16 }
  0xfa   : > { %v1290_v51 = vrot.slane %v1288_v7, 3  ;;  %v1293_v2 = vrot.slane %v1291_v10, 4  ;;  %v1000_v6 = vpop.permute.xlu1 %999 }
  0xfb   : > { %v1283_v40 = vrot.slane %v1281_v32, 3  ;;  %v1286_v12 = vrot.slane %v1284_v50, 4  ;;  %v1146_v46 = vsel %vm1110_vm4, %v1074_v63, %v1000_v6  ;;  %v998_v18 = vpop.permute.xlu0 %997  ;;  %v3647_v11 = vsel %vm1175_vm5, %v1460_v45, %v1467_v60 }
  0xfc   : > { %v1294_v25 = vor.u32 %v1293_v2, %v1290_v51  ;;  %v1303_v24 = vshrl.u32 %v1146_v46, 16  ;;  %v1306_v39 = vshll.u32 %v1146_v46, 16  ;;  %v1144_v15 = vsel %vm1110_vm4, %v1072_v33, %v998_v18  ;;  %2900 = vmatmul.mubr.msk.bf16.gmra.mxu1 %vm1475_vm6, %v3647_v11 }
  0xfd   : > { %v1287_v61 = vor.u32 %v1286_v12, %v1283_v40  ;;  %v1296_v56 = vshrl.u32 %v1144_v15, 16  ;;  %v1299_v36 = vshll.u32 %v1144_v15, 16 }
  0xfe   : > { %v1305_v62 = vrot.slane %v1303_v24, 3  ;;  %v1308_v26 = vrot.slane %v1306_v39, 4  ;;  %v966_v13 = vpop.permute.xlu1 %965 }
  0xff   : > { %v1298_v59 = vrot.slane %v1296_v56, 3  ;;  %v1301_v54 = vrot.slane %v1299_v36, 4  ;;  %v837_v43 = vpop.permute.xlu0 %836  ;;  %v1295_v5 = vsel %vm1175_vm5, %v1287_v61, %v1294_v25 }
 0x100   : > { %v1309_v14 = vor.u32 %v1308_v26, %v1305_v62  ;;  %v1032_v16 = vsel %vm1029_vm3, %v2595_v55, %v837_v43  ;;  %2883 = vmatprep.mubr.msk.bf16.mxu0 %vm1475_vm6, %v1295_v5  ;;  %v1034_v47 = vsel %vm1029_vm3, %v2596_v35, %v837_v43 }
 0x101   : > { %v1302_v57 = vor.u32 %v1301_v54, %v1298_v59  ;;  %v1112_v1 = vsel %vm1110_vm4, %v1032_v16, %v966_v13 }
 0x102   : > { %v1176_v17 = vshrl.u32 %v1112_v1, 16  ;;  %v1179_v22 = vshll.u32 %v1112_v1, 16 }
 0x103   : > { %v968_v28 = vpop.permute.xlu0 %967  ;;  %v1310_v21 = vsel %vm1175_vm5, %v1302_v57, %v1309_v14 }
 0x104   : > { %v1114_v27 = vsel %vm1110_vm4, %v1034_v47, %v968_v28  ;;  %2884 = vmatmul.mubr.msk.bf16.gmra.mxu0 %vm1475_vm6, %v1310_v21  ;;  %v1178_v23 = vrot.slane %v1176_v17, 3  ;;  %v1181_v30 = vrot.slane %v1179_v22, 4 }
 0x105   : > { %v1183_v20 = vshrl.u32 %v1114_v27, 16  ;;  %v1186_v8 = vshll.u32 %v1114_v27, 16  ;;  %2939 = vmatprep.mubr.msk.bf16.mxu0 %vm1475_vm6, %v3517_v44 }
 0x106   : > { %v1182_v7 = vor.u32 %v1181_v30, %v1178_v23 }
 0x107   : > { %v1185_v42 = vrot.slane %v1183_v20, 3  ;;  %v1188_v4 = vrot.slane %v1186_v8, 4  ;;  %v1885_v55 = vpop.permute.xlu0 %1884 }
 0x109   : > { %v1189_v10 = vor.u32 %v1188_v4, %v1185_v42 }
 0x10b   : > { %v1190_v9 = vsel %vm1175_vm5, %v1182_v7, %v1189_v10 }
 0x10c   : > { %2905 = vmatprep.mubr.msk.bf16.mxu1 %vm1475_vm6, %v1190_v9  ;;  %2940 = vmatmul.mubr.msk.bf16.vlgmr.msra.gmra.mxu0 %vm1475_vm6, %v3559_v31 }
 0x10d   : > { %2906 = vmatmul.mubr.msk.bf16.vlgmr.msra.gmra.mxu1 %vm1475_vm6, %v3522_v52  ;;  %2943 = vmatprep.mubr.msk.bf16.mxu0 %vm1475_vm6, %v3568_v49  ;;  %v1877_v52 = vpop.permute.xlu1 %1876 }
 0x10e   : > { %2909 = vmatprep.mubr.msk.bf16.mxu1 %vm1475_vm6, %v3517_v44  ;;  %v555_v44 = vld [vmem:[#allocation2 + $0x19c] sm:$0xf] }
 0x114   : > { %2944 = vmatmul.mubr.msk.bf16.gmra.mxu0 %vm1475_vm6, %v3607_v0 }
 0x115   : > { %2910 = vmatmul.mubr.msk.bf16.gmra.mxu1 %vm1475_vm6, %v3559_v31  ;;  %2947 = vmatprep.mubr.msk.bf16.mxu0 %vm1475_vm6, %v3616_v58  ;;  %v2697_v31 = vcombine.low %v555_v44, %v3435_v37  ;;  %v1887_v37 = vpop.permute.xlu1 %1886 }
 0x116   : > { %2913 = vmatprep.mubr.msk.bf16.mxu1 %vm1475_vm6, %v3568_v49  ;;  %v2698_v49 = vcombine.low %v3437_v38, %v3437_v38 }
 0x11c   : > { %2948 = vmatmul.mubr.msk.bf16.gmra.mxu0 %vm1475_vm6, %v1295_v5 }
 0x11d   : > { %2914 = vmatmul.mubr.msk.bf16.gmra.mxu1 %vm1475_vm6, %v3607_v0  ;;  %2951 = vmatprep.mubr.msk.bf16.mxu0 %vm1475_vm6, %v1310_v21  ;;  %v1890_v0 = vsel %vm1029_vm3, %v2697_v31, %v1877_v52 }
 0x11e   : > { %2917 = vmatprep.mubr.msk.bf16.mxu1 %vm1475_vm6, %v3616_v58  ;;  %v1892_v58 = vsel %vm1029_vm3, %v2698_v49, %v1877_v52  ;;  %v1894_v45 = vsel %vm1110_vm4, %v1890_v0, %v1885_v55 }
 0x11f   : > { %v1896_v38 = vsel %vm1110_vm4, %v1892_v58, %v1887_v37  ;;  %v1897_v60 = vshrl.u32 %v1894_v45, 16  ;;  %v1900_v32 = vshll.u32 %v1894_v45, 16 }
 0x121   : > { %v1899_v63 = vrot.slane %v1897_v60, 3  ;;  %v1902_v51 = vrot.slane %v1900_v32, 4 }
 0x123   : > { %v1903_v6 = vor.u32 %v1902_v51, %v1899_v63 }
 0x124   : > { %2952 = vmatmul.mubr.msk.bf16.gmra.mxu0 %vm1475_vm6, %v3500_v3 }
 0x125   : > { %2918 = vmatmul.mubr.msk.bf16.gmra.mxu1 %vm1475_vm6, %v1295_v5  ;;  %2955 = vmatprep.mubr.msk.bf16.mxu0 %vm1475_vm6, %v3510_v41 }
 0x126   : > { %2921 = vmatprep.mubr.msk.bf16.mxu1 %vm1475_vm6, %v1310_v21 }
 0x12c   : > { %2956 = vmatmul.mubr.msk.bf16.gmra.mxu0 %vm1475_vm6, %v3535_v53 }
 0x12d   : > { %2922 = vmatmul.mubr.msk.bf16.gmra.mxu1 %vm1475_vm6, %v3500_v3  ;;  %2959 = vmatprep.mubr.msk.bf16.mxu0 %vm1475_vm6, %v3550_v48  ;;  %v1904_v3 = vshrl.u32 %v1896_v38, 16 }
 0x12e   : > { %2925 = vmatprep.mubr.msk.bf16.mxu1 %vm1475_vm6, %v3510_v41  ;;  %v1907_v41 = vshll.u32 %v1896_v38, 16 }
 0x12f   : > { %v1906_v50 = vrot.slane %v1904_v3, 3 }
 0x130   : > { %v1909_v33 = vrot.slane %v1907_v41, 4 }
 0x132   : > { %v1910_v2 = vor.u32 %v1909_v33, %v1906_v50 }
 0x134   : > { %2960 = vmatmul.mubr.msk.bf16.gmra.mxu0 %vm1475_vm6, %v3582_v19 }
 0x135   : > { %2926 = vmatmul.mubr.msk.bf16.gmra.mxu1 %vm1475_vm6, %v3535_v53  ;;  %2963 = vmatprep.mubr.msk.bf16.mxu0 %vm1475_vm6, %v3599_v34  ;;  %v1911_v53 = vsel %vm1175_vm5, %v1903_v6, %v1910_v2 }
 0x136   : > { %2929 = vmatprep.mubr.msk.bf16.mxu1 %vm1475_vm6, %v3550_v48 }
 0x13c   : > { %2964 = vmatmul.mubr.msk.bf16.gmra.mxu0 %vm1475_vm6, %v3630_v29 }
 0x13d   : > { %2930 = vmatmul.mubr.msk.bf16.gmra.mxu1 %vm1475_vm6, %v3582_v19  ;;  %2967 = vmatprep.mubr.msk.bf16.mxu0 %vm1475_vm6, %v3647_v11 }
 0x13e   : > { %2933 = vmatprep.mubr.msk.bf16.mxu1 %vm1475_vm6, %v3599_v34 }
 0x144   : > { %2968 = vmatmul.mubr.msk.bf16.gmra.mxu0 %vm1475_vm6, %v1911_v53 }
 0x145   : > { %2934 = vmatmul.mubr.msk.bf16.gmra.mxu1 %vm1475_vm6, %v3630_v29 }
 0x17e   : > { %v3729_v48 = vpop.f32.mrf.mxu1 }
 0x180   : > { %v3731_v40 = vpop.f32.mrf.mxu1 }
 0x182   : > { %v2873_v12 = vpop.f32.mrf.mxu0  ;;  %v3733_v46 = vpop.f32.mrf.mxu1 }
 0x184   : > { %v1562_v19 = vpop.f32.mrf.mxu0  ;;  %v3735_v18 = vpop.f32.mrf.mxu1 }
 0x186   : > { %v2874_v11 = vpop.f32.mrf.mxu0 }
 0x188   : > { %v1565_v34 = vpop.f32.mrf.mxu0 }
 0x18c   : > { %v3737_v25 = vpop.f32.mrf.mxu1 }
 0x18e   : > { %v3739_v24 = vpop.f32.mrf.mxu1 }
 0x190   : > { %v3741_v15 = vpop.f32.mrf.mxu1 }
 0x192   : > { %v3743_v61 = vpop.f32.mrf.mxu1 }
 0x194   : > { %v2877_v39 = vpop.f32.mrf.mxu0 }
 0x196   : > { %v1578_v29 = vpop.f32.mrf.mxu0 }
 0x198   : > { %v3745_v56 = vpop.f32.mrf.mxu0 }
 0x19a   : > { %v3749_v62 = vpop.f32.mrf.mxu0 }
 0x1a4   : > { %v3747_v36 = vpop.f32.mrf.mxu1 }
 0x1a6   : > { %v3751_v26 = vpop.f32.mrf.mxu1 }
 0x1a8   : > { %v3755_v59 = vpop.f32.mrf.mxu1 }
 0x1aa   : > { %v3759_v35 = vpop.f32.mrf.mxu1 }
 0x1ac   : > { %v3753_v13 = vpop.f32.mrf.mxu0 }
 0x1ae   : > { %v3757_v54 = vpop.f32.mrf.mxu0 }
 0x1b0   : > { %v3761_v43 = vpop.f32.mrf.mxu0 }
 0x1b2   : > { %v3765_v14 = vpop.f32.mrf.mxu0 }
 0x1bc   : > { %v3763_v5 = vpop.f32.mrf.mxu1 }
 0x1be   : > { %v3767_v16 = vpop.f32.mrf.mxu1 }
 0x1c0   : > { %v3773_v17 = vpop.f32.mrf.mxu1 }
 0x1c2   : > { %v3779_v28 = vpop.f32.mrf.mxu1 }
 0x1c4   : > { %v3769_v57 = vpop.f32.mrf.mxu0 }
 0x1c6   : > { %v3771_v1 = vpop.f32.mrf.mxu0 }
 0x1c8   : > { %v3775_v22 = vpop.f32.mrf.mxu0 }
 0x1ca   : > { %v3777_v47 = vpop.f32.mrf.mxu0 }
 0x1cc   : > { %v2941_v21 = vpop.f32.mrf.mxu0 }
 0x1cd   : > { %v2907_v27 = vpop.f32.mrf.mxu1 }
 0x1ce   : > { %v1741_v23 = vadd.f32 %v2907_v27, %v2873_v12  ;;  %v1957_v30 = vpop.f32.mrf.mxu0 }
 0x1cf   : > { %v1732_v20 = vpop.f32.mrf.mxu1 }
 0x1d0   : > { %v2086_v8 = vadd.f32 %v2941_v21, %v1741_v23  ;;  %v1733_v42 = vadd.f32 %v1732_v20, %v1562_v19  ;;  %v2942_v4 = vpop.f32.mrf.mxu0 }
 0x1d1   : > { %v2908_v7 = vpop.f32.mrf.mxu1 }
 0x1d2   : > { %v2788_v10 = vpack.c.bf16 %v2086_v8, %v2086_v8  ;;  %v2084_v9 = vadd.f32 %v1957_v30, %v1733_v42  ;;  %v1960_v44 = vpop.f32.mrf.mxu0  ;;  %v1744_v52 = vadd.f32 %v2908_v7, %v2874_v11  ;;  %v2349_v50 = vmul.f32 %v2086_v8, %v2086_v8 }
 0x1d3   : > { %v1735_v31 = vpop.f32.mrf.mxu1  ;;  %v2279_v11 = vsel %vm1029_vm3, %v2086_v8, 0.0 }
 0x1d4   : > { %2246 = vst.msk [vmem:[%s3785_s9 + $0x8] sm:$0xf] %vm216_vm0, %v2788_v10  ;;  %v2786_v49 = vpack.c.bf16 %v2084_v9, %v2084_v9  ;;  %v2945_v0 = vpop.f32.mrf.mxu0  ;;  %v2087_v58 = vadd.f32 %v2942_v4, %v1744_v52  ;;  %v1736_v37 = vadd.f32 %v1735_v31, %v1565_v34  ;;  %v2347_v38 = vmul.f32 %v2084_v9, %v2084_v9 }
 0x1d5   : > { %v2911_v55 = vpop.f32.mrf.mxu1  ;;  %v2276_v2 = vsel %vm1029_vm3, %v2084_v9, 0.0  ;;  %v2382_v4 = vsel %vm1029_vm3, %v2349_v50, 0.0 }
 0x1d6   : > { %2244 = vst.msk [vmem:[%s3785_s9] sm:$0xf] %vm216_vm0, %v2786_v49  ;;  %v1757_v45 = vadd.f32 %v2911_v55, %v2877_v39  ;;  %v1973_v3 = vpop.f32.mrf.mxu0  ;;  %v2789_v41 = vpack.c.bf16 %v2087_v58, %v2087_v58  ;;  %v2085_v60 = vadd.f32 %v1960_v44, %v1736_v37  ;;  %v2379_v34 = vsel %vm1029_vm3, %v2347_v38, 0.0 }
 0x1d7   : > { %v1748_v32 = vpop.f32.mrf.mxu1  ;;  %v2350_v23 = vmul.f32 %v2087_v58, %v2087_v58  ;;  %v2281_v44 = vsel %vm1029_vm3, %v2087_v58, 0.0 }
 0x1d8   : > { %v2090_v33 = vadd.f32 %v2945_v0, %v1757_v45  ;;  %v1749_v63 = vadd.f32 %v1748_v32, %v1578_v29  ;;  %v2946_v51 = vpop.f32.mrf.mxu0  ;;  %2247 = vst.msk [vmem:[%s3785_s9 + $0xc] sm:$0xf] %vm216_vm0, %v2789_v41  ;;  %v2787_v6 = vpack.c.bf16 %v2085_v60, %v2085_v60  ;;  %v2277_v53 = vsel %vm1029_vm3, %v2085_v60, 0.0 }
 0x1d9   : > { %v2348_v12 = vmul.f32 %v2085_v60, %v2085_v60  ;;  %v2912_v19 = vpop.f32.mrf.mxu1  ;;  %v2278_v39 = vadd.f32 %v2277_v53, %v2276_v2 }
 0x1da   : > { %v2792_v21 = vpack.c.bf16 %v2090_v33, %v2090_v33  ;;  %v1976_v27 = vpop.f32.mrf.mxu0  ;;  %2245 = vst.msk [vmem:[%s3785_s9 + $0x4] sm:$0xf] %vm216_vm0, %v2787_v6  ;;  %v2088_v30 = vadd.f32 %v1973_v3, %v1749_v63  ;;  %v1760_v20 = vadd.f32 %v2912_v19, %v3745_v56  ;;  %v2384_v3 = vsel %vm1029_vm3, %v2350_v23, 0.0 }
 0x1db   : > { %v2380_v29 = vsel %vm1029_vm3, %v2348_v12, 0.0  ;;  %v1751_v42 = vpop.f32.mrf.mxu1  ;;  %v2280_v7 = vadd.f32 %v2279_v11, %v2278_v39  ;;  %v2353_v41 = vmul.f32 %v2090_v33, %v2090_v33 }
 0x1dc   : > { %v2381_v10 = vadd.f32 %v2380_v29, %v2379_v34  ;;  %2250 = vst.msk [vmem:[%s3785_s9 + $0x18] sm:$0xf] %vm216_vm0, %v2792_v21  ;;  %v1752_v8 = vadd.f32 %v1751_v42, %v3749_v62  ;;  %v2949_v9 = vpop.f32.mrf.mxu0  ;;  %v2790_v52 = vpack.c.bf16 %v2088_v30, %v2088_v30  ;;  %v2351_v31 = vmul.f32 %v2088_v30, %v2088_v30 }
 0x1dd   : > { %v2091_v49 = vadd.f32 %v2946_v51, %v1760_v20  ;;  %v2915_v0 = vpop.f32.mrf.mxu1  ;;  %v2282_v55 = vadd.f32 %v2281_v44, %v2280_v7  ;;  %v2283_v62 = vsel %vm1029_vm3, %v2088_v30, 0.0 }
 0x1de   : > { %v2383_v37 = vadd.f32 %v2382_v4, %v2381_v10  ;;  %v2089_v56 = vadd.f32 %v1976_v27, %v1752_v8  ;;  %v1773_v38 = vadd.f32 %v2915_v0, %v3753_v13  ;;  %v1989_v45 = vpop.f32.mrf.mxu0  ;;  %2248 = vst.msk [vmem:[%s3785_s9 + $0x10] sm:$0xf] %vm216_vm0, %v2790_v52  ;;  %v2386_v6 = vsel %vm1029_vm3, %v2351_v31, 0.0 }
 0x1df   : > { %v2793_v58 = vpack.c.bf16 %v2091_v49, %v2091_v49  ;;  %v1764_v60 = vpop.f32.mrf.mxu1  ;;  %v2284_v32 = vadd.f32 %v2283_v62, %v2282_v55  ;;  %v2287_v27 = vsel %vm1029_vm3, %v2090_v33, 0.0  ;;  %v2354_v23 = vmul.f32 %v2091_v49, %v2091_v49 }
 0x1e0   : > { %v2385_v50 = vadd.f32 %v2384_v3, %v2383_v37  ;;  %v2791_v63 = vpack.c.bf16 %v2089_v56, %v2089_v56  ;;  %v2285_v51 = vsel %vm1029_vm3, %v2089_v56, 0.0  ;;  %v2950_v2 = vpop.f32.mrf.mxu0  ;;  %v2352_v13 = vmul.f32 %v2089_v56, %v2089_v56 }
 0x1e1   : > { %2251 = vst.msk [vmem:[%s3785_s9 + $0x1c] sm:$0xf] %vm216_vm0, %v2793_v58  ;;  %v2094_v53 = vadd.f32 %v2949_v9, %v1773_v38  ;;  %v1765_v12 = vadd.f32 %v1764_v60, %v3757_v54  ;;  %v2916_v19 = vpop.f32.mrf.mxu1  ;;  %v2286_v34 = vadd.f32 %v2285_v51, %v2284_v32  ;;  %v2390_v8 = vsel %vm1029_vm3, %v2353_v41, 0.0 }
 0x1e2   : > { %v2387_v11 = vadd.f32 %v2386_v6, %v2385_v50  ;;  %2249 = vst.msk [vmem:[%s3785_s9 + $0x14] sm:$0xf] %vm216_vm0, %v2791_v63  ;;  %v1776_v39 = vadd.f32 %v2916_v19, %v3761_v43  ;;  %v1992_v21 = vpop.f32.mrf.mxu0  ;;  %v2388_v29 = vsel %vm1029_vm3, %v2352_v13, 0.0  ;;  %v2289_v9 = vsel %vm1029_vm3, %v2091_v49, 0.0 }
 0x1e3   : > { %v2796_v30 = vpack.c.bf16 %v2094_v53, %v2094_v53  ;;  %v1767_v20 = vpop.f32.mrf.mxu1  ;;  %v2288_v42 = vadd.f32 %v2287_v27, %v2286_v34  ;;  %v2092_v7 = vadd.f32 %v1989_v45, %v1765_v12  ;;  %v2392_v37 = vsel %vm1029_vm3, %v2354_v23, 0.0 }
 0x1e4   : > { %v2389_v4 = vadd.f32 %v2388_v29, %v2387_v11  ;;  %v2095_v54 = vadd.f32 %v2950_v2, %v1776_v39  ;;  %v2953_v10 = vpop.f32.mrf.mxu0  ;;  %v1768_v43 = vadd.f32 %v1767_v20, %v3765_v14  ;;  %v2357_v58 = vmul.f32 %v2094_v53, %v2094_v53 }
 0x1e5   : > { %2254 = vst.msk [vmem:[%s3785_s9 + $0x28] sm:$0xf] %vm216_vm0, %v2796_v30  ;;  %v2919_v33 = vpop.f32.mrf.mxu1  ;;  %v2794_v52 = vpack.c.bf16 %v2092_v7, %v2092_v7  ;;  %v2290_v31 = vadd.f32 %v2289_v9, %v2288_v42  ;;  %v2291_v55 = vsel %vm1029_vm3, %v2092_v7, 0.0  ;;  %v2355_v56 = vmul.f32 %v2092_v7, %v2092_v7 }
 0x1e6   : > { %v2391_v44 = vadd.f32 %v2390_v8, %v2389_v4  ;;  %v2005_v0 = vpop.f32.mrf.mxu0  ;;  %v2797_v38 = vpack.c.bf16 %v2095_v54, %v2095_v54  ;;  %v2093_v41 = vadd.f32 %v1992_v21, %v1768_v43  ;;  %v1789_v14 = vadd.f32 %v2919_v33, %v3769_v57 }
 0x1e7   : > { %v1780_v45 = vpop.f32.mrf.mxu1  ;;  %2252 = vst.msk [vmem:[%s3785_s9 + $0x20] sm:$0xf] %vm216_vm0, %v2794_v52  ;;  %v2292_v49 = vadd.f32 %v2291_v55, %v2290_v31  ;;  %v2394_v60 = vsel %vm1029_vm3, %v2355_v56, 0.0  ;;  %v2358_v32 = vmul.f32 %v2095_v54, %v2095_v54  ;;  %v2295_v21 = vsel %vm1029_vm3, %v2094_v53, 0.0 }
 0x1e8   : > { %v2393_v3 = vadd.f32 %v2392_v37, %v2391_v44  ;;  %v2954_v62 = vpop.f32.mrf.mxu0  ;;  %2255 = vst.msk [vmem:[%s3785_s9 + $0x2c] sm:$0xf] %vm216_vm0, %v2797_v38  ;;  %v1781_v50 = vadd.f32 %v1780_v45, %v3771_v1  ;;  %v2795_v2 = vpack.c.bf16 %v2093_v41, %v2093_v41  ;;  %v2293_v6 = vsel %vm1029_vm3, %v2093_v41, 0.0 }
 0x1e9   : > { %v2920_v63 = vpop.f32.mrf.mxu1  ;;  %v2356_v13 = vmul.f32 %v2093_v41, %v2093_v41  ;;  %v2294_v19 = vadd.f32 %v2293_v6, %v2292_v49  ;;  %v2098_v11 = vadd.f32 %v2953_v10, %v1789_v14  ;;  %v2398_v29 = vsel %vm1029_vm3, %v2357_v58, 0.0 }
 0x1ea   : > { %v2395_v51 = vadd.f32 %v2394_v60, %v2393_v3  ;;  %v2008_v12 = vpop.f32.mrf.mxu0  ;;  %v2096_v57 = vadd.f32 %v2005_v0, %v1781_v50  ;;  %v1792_v34 = vadd.f32 %v2920_v63, %v3775_v22  ;;  %2253 = vst.msk [vmem:[%s3785_s9 + $0x24] sm:$0xf] %vm216_vm0, %v2795_v2  ;;  %v2297_v22 = vsel %vm1029_vm3, %v2095_v54, 0.0 }
 0x1eb   : > { %v1783_v39 = vpop.f32.mrf.mxu1  ;;  %v2396_v1 = vsel %vm1029_vm3, %v2356_v13, 0.0  ;;  %v2296_v30 = vadd.f32 %v2295_v21, %v2294_v19  ;;  %v2800_v42 = vpack.c.bf16 %v2098_v11, %v2098_v11  ;;  %v2400_v7 = vsel %vm1029_vm3, %v2358_v32, 0.0 }
 0x1ec   : > { %v1784_v27 = vadd.f32 %v1783_v39, %v3777_v47  ;;  %v2957_v23 = vpop.f32.mrf.mxu0  ;;  %v2397_v20 = vadd.f32 %v2396_v1, %v2395_v51  ;;  %v2798_v53 = vpack.c.bf16 %v2096_v57, %v2096_v57  ;;  %v2359_v10 = vmul.f32 %v2096_v57, %v2096_v57 }
 0x1ed   : > { %v2923_v4 = vpop.f32.mrf.mxu1  ;;  %2258 = vst.msk [vmem:[%s3785_s9 + $0x38] sm:$0xf] %vm216_vm0, %v2800_v42  ;;  %v2298_v43 = vadd.f32 %v2297_v22, %v2296_v30  ;;  %v2099_v47 = vadd.f32 %v2954_v62, %v1792_v34  ;;  %v2361_v52 = vmul.f32 %v2098_v11, %v2098_v11  ;;  %v2299_v31 = vsel %vm1029_vm3, %v2096_v57, 0.0 }
 0x1ee   : > { %v2021_v8 = vpop.f32.mrf.mxu0  ;;  %v2399_v9 = vadd.f32 %v2398_v29, %v2397_v20  ;;  %v2097_v33 = vadd.f32 %v2008_v12, %v1784_v27  ;;  %2256 = vst.msk [vmem:[%s3785_s9 + $0x30] sm:$0xf] %vm216_vm0, %v2798_v53  ;;  %v1805_v54 = vadd.f32 %v2923_v4, %v3729_v48  ;;  %v2402_v38 = vsel %vm1029_vm3, %v2359_v10, 0.0 }
 0x1ef   : > { %v1796_v44 = vpop.f32.mrf.mxu1  ;;  %v2300_v55 = vadd.f32 %v2299_v31, %v2298_v43  ;;  %v2801_v45 = vpack.c.bf16 %v2099_v47, %v2099_v47  ;;  %v2362_v3 = vmul.f32 %v2099_v47, %v2099_v47  ;;  %v2303_v63 = vsel %vm1029_vm3, %v2098_v11, 0.0 }
 0x1f0   : > { %v1797_v0 = vadd.f32 %v1796_v44, %v3731_v40  ;;  %v2958_v37 = vpop.f32.mrf.mxu0  ;;  %v2401_v56 = vadd.f32 %v2400_v7, %v2399_v9  ;;  %v2799_v41 = vpack.c.bf16 %v2097_v33, %v2097_v33  ;;  %v2301_v14 = vsel %vm1029_vm3, %v2097_v33, 0.0 }
 0x1f1   : > { %v2924_v49 = vpop.f32.mrf.mxu1  ;;  %v2360_v62 = vmul.f32 %v2097_v33, %v2097_v33  ;;  %2259 = vst.msk [vmem:[%s3785_s9 + $0x3c] sm:$0xf] %vm216_vm0, %v2801_v45  ;;  %v2302_v48 = vadd.f32 %v2301_v14, %v2300_v55  ;;  %v2102_v32 = vadd.f32 %v2957_v23, %v1805_v54  ;;  %v2406_v12 = vsel %vm1029_vm3, %v2361_v52, 0.0 }
 0x1f2   : > { %v2024_v58 = vpop.f32.mrf.mxu0  ;;  %v2403_v60 = vadd.f32 %v2402_v38, %v2401_v56  ;;  %v2100_v40 = vadd.f32 %v2021_v8, %v1797_v0  ;;  %2257 = vst.msk [vmem:[%s3785_s9 + $0x34] sm:$0xf] %vm216_vm0, %v2799_v41  ;;  %v1808_v2 = vadd.f32 %v2924_v49, %v3733_v46  ;;  %v2305_v21 = vsel %vm1029_vm3, %v2099_v47, 0.0 }
 0x1f3   : > { %v1799_v50 = vpop.f32.mrf.mxu1  ;;  %v2404_v51 = vsel %vm1029_vm3, %v2360_v62, 0.0  ;;  %v2304_v19 = vadd.f32 %v2303_v63, %v2302_v48  ;;  %v2804_v34 = vpack.c.bf16 %v2102_v32, %v2102_v32  ;;  %v2408_v11 = vsel %vm1029_vm3, %v2362_v3, 0.0 }
 0x1f4   : > { %v1800_v6 = vadd.f32 %v1799_v50, %v3735_v18  ;;  %v2961_v13 = vpop.f32.mrf.mxu0  ;;  %v2405_v57 = vadd.f32 %v2404_v51, %v2403_v60  ;;  %v2802_v1 = vpack.c.bf16 %v2100_v40, %v2100_v40  ;;  %v2363_v27 = vmul.f32 %v2100_v40, %v2100_v40 }
 0x1f5   : > { %v2927_v39 = vpop.f32.mrf.mxu1  ;;  %2262 = vst.msk [vmem:[%s3785_s9 + $0x48] sm:$0xf] %vm216_vm0, %v2804_v34  ;;  %v2306_v46 = vadd.f32 %v2305_v21, %v2304_v19  ;;  %v2103_v18 = vadd.f32 %v2958_v37, %v1808_v2  ;;  %v2365_v42 = vmul.f32 %v2102_v32, %v2102_v32  ;;  %v2307_v4 = vsel %vm1029_vm3, %v2100_v40, 0.0 }
 0x1f6   : > { %v2037_v23 = vpop.f32.mrf.mxu0  ;;  %v2407_v29 = vadd.f32 %v2406_v12, %v2405_v57  ;;  %v2101_v30 = vadd.f32 %v2024_v58, %v1800_v6  ;;  %2260 = vst.msk [vmem:[%s3785_s9 + $0x40] sm:$0xf] %vm216_vm0, %v2802_v1  ;;  %v1821_v22 = vadd.f32 %v2927_v39, %v3737_v25  ;;  %v2410_v9 = vsel %vm1029_vm3, %v2363_v27, 0.0 }
 0x1f7   : > { %v1812_v20 = vpop.f32.mrf.mxu1  ;;  %v2308_v10 = vadd.f32 %v2307_v4, %v2306_v46  ;;  %v2805_v43 = vpack.c.bf16 %v2103_v18, %v2103_v18  ;;  %v2366_v33 = vmul.f32 %v2103_v18, %v2103_v18  ;;  %v2311_v56 = vsel %vm1029_vm3, %v2102_v32, 0.0 }
 0x1f8   : > { %v1813_v7 = vadd.f32 %v1812_v20, %v3739_v24  ;;  %v2962_v53 = vpop.f32.mrf.mxu0  ;;  %v2409_v8 = vadd.f32 %v2408_v11, %v2407_v29  ;;  %v2803_v44 = vpack.c.bf16 %v2101_v30, %v2101_v30  ;;  %v2309_v52 = vsel %vm1029_vm3, %v2101_v30, 0.0 }
 0x1f9   : > { %v2928_v47 = vpop.f32.mrf.mxu1  ;;  %v2364_v31 = vmul.f32 %v2101_v30, %v2101_v30  ;;  %2263 = vst.msk [vmem:[%s3785_s9 + $0x4c] sm:$0xf] %vm216_vm0, %v2805_v43  ;;  %v2310_v25 = vadd.f32 %v2309_v52, %v2308_v10  ;;  %v2106_v37 = vadd.f32 %v2961_v13, %v1821_v22  ;;  %v2414_v41 = vsel %vm1029_vm3, %v2365_v42, 0.0 }
 0x1fa   : > { %v2040_v54 = vpop.f32.mrf.mxu0  ;;  %v2411_v0 = vadd.f32 %v2410_v9, %v2409_v8  ;;  %v2104_v24 = vadd.f32 %v2037_v23, %v1813_v7  ;;  %2261 = vst.msk [vmem:[%s3785_s9 + $0x44] sm:$0xf] %vm216_vm0, %v2803_v44  ;;  %v1824_v45 = vadd.f32 %v2928_v47, %v3741_v15  ;;  %v2313_v48 = vsel %vm1029_vm3, %v2103_v18, 0.0 }
 0x1fb   : > { %v1815_v55 = vpop.f32.mrf.mxu1  ;;  %v2412_v38 = vsel %vm1029_vm3, %v2364_v31, 0.0  ;;  %v2312_v14 = vadd.f32 %v2311_v56, %v2310_v25  ;;  %v2808_v58 = vpack.c.bf16 %v2106_v37, %v2106_v37  ;;  %v2416_v32 = vsel %vm1029_vm3, %v2366_v33, 0.0 }
 0x1fc   : > { %v1816_v49 = vadd.f32 %v1815_v55, %v3743_v61  ;;  %v2965_v3 = vpop.f32.mrf.mxu0  ;;  %v2413_v62 = vadd.f32 %v2412_v38, %v2411_v0  ;;  %v2806_v40 = vpack.c.bf16 %v2104_v24, %v2104_v24  ;;  %v2367_v50 = vmul.f32 %v2104_v24, %v2104_v24 }
 0x1fd   : > { %v2931_v60 = vpop.f32.mrf.mxu1  ;;  %2266 = vst.msk [vmem:[%s3785_s9 + $0x58] sm:$0xf] %vm216_vm0, %v2808_v58  ;;  %v2314_v15 = vadd.f32 %v2313_v48, %v2312_v14  ;;  %v2107_v61 = vadd.f32 %v2962_v53, %v1824_v45  ;;  %v2369_v13 = vmul.f32 %v2106_v37, %v2106_v37  ;;  %v2315_v12 = vsel %vm1029_vm3, %v2104_v24, 0.0 }
 0x1fe   : > { %v2053_v63 = vpop.f32.mrf.mxu0  ;;  %v2415_v51 = vadd.f32 %v2414_v41, %v2413_v62  ;;  %v2105_v2 = vadd.f32 %v2040_v54, %v1816_v49  ;;  %2264 = vst.msk [vmem:[%s3785_s9 + $0x50] sm:$0xf] %vm216_vm0, %v2806_v40  ;;  %v1837_v19 = vadd.f32 %v2931_v60, %v3747_v36  ;;  %v2418_v11 = vsel %vm1029_vm3, %v2367_v50, 0.0 }
 0x1ff   : > { %v1828_v6 = vpop.f32.mrf.mxu1  ;;  %v2316_v39 = vadd.f32 %v2315_v12, %v2314_v15  ;;  %v2809_v1 = vpack.c.bf16 %v2107_v61, %v2107_v61  ;;  %v2370_v23 = vmul.f32 %v2107_v61, %v2107_v61  ;;  %v2319_v22 = vsel %vm1029_vm3, %v2106_v37, 0.0 }
 0x200   : > { %v1829_v57 = vadd.f32 %v1828_v6, %v3751_v26  ;;  %v2966_v34 = vpop.f32.mrf.mxu0  ;;  %v2417_v21 = vadd.f32 %v2416_v32, %v2415_v51  ;;  %v2807_v29 = vpack.c.bf16 %v2105_v2, %v2105_v2  ;;  %v2317_v46 = vsel %vm1029_vm3, %v2105_v2, 0.0 }
 0x201   : > { %v2932_v27 = vpop.f32.mrf.mxu1  ;;  %v2368_v18 = vmul.f32 %v2105_v2, %v2105_v2  ;;  %2267 = vst.msk [vmem:[%s3785_s9 + $0x5c] sm:$0xf] %vm216_vm0, %v2809_v1  ;;  %v2318_v36 = vadd.f32 %v2317_v46, %v2316_v39  ;;  %v2110_v42 = vadd.f32 %v2965_v3, %v1837_v19  ;;  %v2422_v9 = vsel %vm1029_vm3, %v2369_v13, 0.0 }
 0x202   : > { %v2056_v30 = vpop.f32.mrf.mxu0  ;;  %v2419_v20 = vadd.f32 %v2418_v11, %v2417_v21  ;;  %v2108_v26 = vadd.f32 %v2053_v63, %v1829_v57  ;;  %2265 = vst.msk [vmem:[%s3785_s9 + $0x54] sm:$0xf] %vm216_vm0, %v2807_v29  ;;  %v1840_v53 = vadd.f32 %v2932_v27, %v3755_v59  ;;  %v2321_v52 = vsel %vm1029_vm3, %v2107_v61, 0.0 }
 0x203   : > { %v1831_v4 = vpop.f32.mrf.mxu1  ;;  %v2420_v7 = vsel %vm1029_vm3, %v2368_v18, 0.0  ;;  %v2320_v43 = vadd.f32 %v2319_v22, %v2318_v36  ;;  %v2812_v33 = vpack.c.bf16 %v2110_v42, %v2110_v42  ;;  %v2424_v31 = vsel %vm1029_vm3, %v2370_v23, 0.0 }
 0x204   : > { %v1832_v10 = vadd.f32 %v1831_v4, %v3759_v35  ;;  %v2969_v8 = vpop.f32.mrf.mxu0  ;;  %v2421_v47 = vadd.f32 %v2420_v7, %v2419_v20  ;;  %v2810_v54 = vpack.c.bf16 %v2108_v26, %v2108_v26  ;;  %v2371_v0 = vmul.f32 %v2108_v26, %v2108_v26 }
 0x205   : > { %v2935_v44 = vpop.f32.mrf.mxu1  ;;  %2270 = vst.msk [vmem:[%s3785_s9 + $0x68] sm:$0xf] %vm216_vm0, %v2812_v33  ;;  %v2322_v59 = vadd.f32 %v2321_v52, %v2320_v43  ;;  %v2111_v35 = vadd.f32 %v2966_v34, %v1840_v53  ;;  %v2327_v56 = vsel %vm1029_vm3, %v2110_v42, 0.0  ;;  %v2323_v38 = vsel %vm1029_vm3, %v2108_v26, 0.0 }
 0x206   : > { %v2069_v25 = vpop.f32.mrf.mxu0  ;;  %v2423_v37 = vadd.f32 %v2422_v9, %v2421_v47  ;;  %v2109_v24 = vadd.f32 %v2056_v30, %v1832_v10  ;;  %2268 = vst.msk [vmem:[%s3785_s9 + $0x60] sm:$0xf] %vm216_vm0, %v2810_v54  ;;  %v1853_v45 = vadd.f32 %v2935_v44, %v3763_v5  ;;  %v2373_v3 = vmul.f32 %v2110_v42, %v2110_v42 }
 0x207   : > { %v1844_v55 = vpop.f32.mrf.mxu1  ;;  %v2324_v41 = vadd.f32 %v2323_v38, %v2322_v59  ;;  %v2813_v62 = vpack.c.bf16 %v2111_v35, %v2111_v35  ;;  %v2426_v60 = vsel %vm1029_vm3, %v2371_v0, 0.0  ;;  %v2374_v61 = vmul.f32 %v2111_v35, %v2111_v35 }
 0x208   : > { %v1845_v49 = vadd.f32 %v1844_v55, %v3767_v16  ;;  %v2425_v14 = vadd.f32 %v2424_v31, %v2423_v37  ;;  %v2811_v48 = vpack.c.bf16 %v2109_v24, %v2109_v24  ;;  %v2325_v32 = vsel %vm1029_vm3, %v2109_v24, 0.0  ;;  %v2970_v50 = vpop.f32.mrf.mxu0 }
 0x209   : > { %v2936_v58 = vpop.f32.mrf.mxu1  ;;  %v2372_v40 = vmul.f32 %v2109_v24, %v2109_v24  ;;  %2271 = vst.msk [vmem:[%s3785_s9 + $0x6c] sm:$0xf] %vm216_vm0, %v2813_v62  ;;  %v2326_v51 = vadd.f32 %v2325_v32, %v2324_v41  ;;  %v2114_v5 = vadd.f32 %v2969_v8, %v1853_v45  ;;  %v2430_v34 = vsel %vm1029_vm3, %v2373_v3, 0.0 }
 0x20a   : > { %v2427_v63 = vadd.f32 %v2426_v60, %v2425_v14  ;;  %v2112_v15 = vadd.f32 %v2069_v25, %v1845_v49  ;;  %2269 = vst.msk [vmem:[%s3785_s9 + $0x64] sm:$0xf] %vm216_vm0, %v2811_v48  ;;  %v1856_v6 = vadd.f32 %v2936_v58, %v3773_v17  ;;  %v2329_v39 = vsel %vm1029_vm3, %v2111_v35, 0.0  ;;  %v2072_v1 = vpop.f32.mrf.mxu0 }
 0x20b   : > { %v1847_v16 = vpop.f32.mrf.mxu1  ;;  %v2428_v2 = vsel %vm1029_vm3, %v2372_v40, 0.0  ;;  %v2328_v12 = vadd.f32 %v2327_v56, %v2326_v51  ;;  %v2816_v57 = vpack.c.bf16 %v2114_v5, %v2114_v5  ;;  %v2432_v46 = vsel %vm1029_vm3, %v2374_v61, 0.0 }
 0x20c   : > { %v1848_v13 = vadd.f32 %v1847_v16, %v3779_v28  ;;  %v2429_v19 = vadd.f32 %v2428_v2, %v2427_v63  ;;  %v2814_v21 = vpack.c.bf16 %v2112_v15, %v2112_v15  ;;  %v2375_v11 = vmul.f32 %v2112_v15, %v2112_v15 }
 0x20d   : > { %2274 = vst.msk [vmem:[%s3785_s9 + $0x78] sm:$0xf] %vm216_vm0, %v2816_v57  ;;  %v2330_v23 = vadd.f32 %v2329_v39, %v2328_v12  ;;  %v2115_v29 = vadd.f32 %v2970_v50, %v1856_v6  ;;  %v2331_v28 = vsel %vm1029_vm3, %v2112_v15, 0.0  ;;  %v2377_v18 = vmul.f32 %v2114_v5, %v2114_v5 }
 0x20e   : > { %v2431_v27 = vadd.f32 %v2430_v34, %v2429_v19  ;;  %v2113_v17 = vadd.f32 %v2072_v1, %v1848_v13  ;;  %2272 = vst.msk [vmem:[%s3785_s9 + $0x70] sm:$0xf] %vm216_vm0, %v2814_v21  ;;  %v2434_v42 = vsel %vm1029_vm3, %v2375_v11, 0.0  ;;  %v2335_v10 = vsel %vm1029_vm3, %v2114_v5, 0.0 }
 0x20f   : > { %v2332_v30 = vadd.f32 %v2331_v28, %v2330_v23  ;;  %v2817_v36 = vpack.c.bf16 %v2115_v29, %v2115_v29  ;;  %v2378_v8 = vmul.f32 %v2115_v29, %v2115_v29  ;;  %v2438_v33 = vsel %vm1029_vm3, %v2377_v18, 0.0 }
 0x210   : > { %v2433_v20 = vadd.f32 %v2432_v46, %v2431_v27  ;;  %v2815_v26 = vpack.c.bf16 %v2113_v17, %v2113_v17  ;;  %v2333_v4 = vsel %vm1029_vm3, %v2113_v17, 0.0  ;;  %v2376_v22 = vmul.f32 %v2113_v17, %v2113_v17 }
 0x211   : > { %2275 = vst.msk [vmem:[%s3785_s9 + $0x7c] sm:$0xf] %vm216_vm0, %v2817_v36  ;;  %v2334_v53 = vadd.f32 %v2333_v4, %v2332_v30  ;;  %v2337_v44 = vsel %vm1029_vm3, %v2115_v29, 0.0  ;;  %v2440_v54 = vsel %vm1029_vm3, %v2378_v8, 0.0 }
 0x212   : > { %v2435_v7 = vadd.f32 %v2434_v42, %v2433_v20  ;;  %2273 = vst.msk [vmem:[%s3785_s9 + $0x74] sm:$0xf] %vm216_vm0, %v2815_v26  ;;  %v2436_v9 = vsel %vm1029_vm3, %v2376_v22, 0.0 }
 0x213   : > { %v2336_v43 = vadd.f32 %v2335_v10, %v2334_v53 }
 0x214   : > { %v2437_v47 = vadd.f32 %v2436_v9, %v2435_v7 }
 0x215   : > { %v2338_v52 = vadd.f32 %v2337_v44, %v2336_v43 }
 0x216   : > { %v2439_v31 = vadd.f32 %v2438_v33, %v2437_v47 }
 0x217   : > { %v2339_v0 = vrot.slane %v2338_v52, 4 }
 0x218   : > { %v2441_v25 = vadd.f32 %v2440_v54, %v2439_v31 }
 0x219   : > { %v2340_v37 = vadd.f32 %v2339_v0, %v2338_v52 }
 0x21a   : > { %v2442_v59 = vrot.slane %v2441_v25, 4 }
 0x21b   : > { %v2341_v35 = vrot.slane %v2340_v37, 2 }
 0x21c   : > { %v2443_v24 = vadd.f32 %v2442_v59, %v2441_v25 }
 0x21d   : > { %v2342_v55 = vadd.f32 %v2341_v35, %v2340_v37 }
 0x21e   : > { %v2444_v56 = vrot.slane %v2443_v24, 2 }
 0x21f   : > { %v2343_v38 = vrot.slane %v2342_v55, 1 }
 0x220   : > { %v2445_v45 = vadd.f32 %v2444_v56, %v2443_v24 }
 0x221   : > { %v2344_v49 = vadd.f32 %v2343_v38, %v2342_v55 }
 0x222   : > { %v2446_v3 = vrot.slane %v2445_v45, 1 }
 0x223   : > { %2346 = vst.msk [vmem:[%s211_s12] sm:$0x1] %vm2345_vm7, %v2344_v49 }
 0x224   : > { %v2447_v41 = vadd.f32 %v2446_v3, %v2445_v45 }
 0x226   : > { %2448 = vst.msk [vmem:[%s214_s17] sm:$0x1] %vm2345_vm7, %v2447_v41 }
 0x227 PF: > { %s15_s15 = sadd.s32 1, %s3039_s15  }
 0x228   : > { %p12_p4 = scmp.ge.s32.totalorder %s15_s15, 4  }
 0x22a   :  { %14 = sbr.rel (!%p12_p4) target bundleno = 1 (0x1), region = 84 }

// kernel: residual_block_forward.4
= control target key start
LH: loop header
LB: loop body
LE: loop exit
PB: predicated region body
PF: predicated region fallthrough
CT: control target
= control target key end

     0   :  { %s3469_s26 = smov 0   ;;  %s5090_s0 = inlined_call_operand.vmem [shape: bf16[2,16,16,4], index: 0, kind: input, shape index: {}]   ;;  %s5091_s1 = inlined_call_operand.vmem [shape: f32[1,4], index: 1, kind: input, shape index: {}]   ;;  %s5092_s2 = inlined_call_operand.vmem [shape: f32[1,4], index: 2, kind: input, shape index: {}]   ;;  %s5093_s3 = inlined_call_operand.<no memory space> [shape: f32[1,1], index: 3, kind: input, shape index: {}]   ;;  %s5094_s4 = inlined_call_operand.vmem [shape: bf16[36,4], index: 4, kind: input, shape index: {}]   ;;  %s5095_s5 = inlined_call_operand.vmem [shape: bf16[2,16,16,4], index: 5, kind: output, shape index: {0}]   ;;  %s5096_s6 = inlined_call_operand.vmem [shape: f32[2,1,4], index: 6, kind: output, shape index: {1}]   ;;  %s5097_s7 = inlined_call_operand.vmem [shape: f32[2,1,4], index: 7, kind: output, shape index: {2}]  }
   0x1   :  { %v13_v0 = vstv %s5093_s3 }
   0x2   :  { %14 = vst [vmem:[#allocation3] sm:$0x1] %v13_v0 }
   0x3 LB: > { %s2853_s27 = sadd.s32 4294967295, %s3421_s26   ;;  %p2857_p0 = scmp.ge.s32.totalorder %s3421_s26, 1  ;;  %s3421_s26 = sphi %s3469_s26, %s20_s26  }
   0x4   : > { %p244_p1 = scmp.lt.s32.totalorder %s3421_s26, 3 }
   0x6   : > { %p245_p2 = pnand %p2857_p0, %p244_p1 }
   0x8   : > { %248 = sbr.rel (%p245_p2) target bundleno = 696 (0x2b8), region = 40 }
   0xd   : > { %v2864_v1 = vld [vmem:[#allocation3] ss:$0 sm:$0xff]  ;;  %vm299_vm0 = vcmask 27648   ;;  %v3423_v2 = vmov 0   ;;  %p282_p3 = scmp.lt.s32.totalorder %s2853_s27, 1  ;;  %s3424_s12 = smov 8  }
   0xe   : > { %3369 = vset.pattern.permute.xlu0 %v3423_v2  ;;  %301 = vst.msk [vmem:[#allocation2 + $0x4] sm:$0xf] %vm299_vm0, %v3423_v2  ;;  %302 = vst.msk [vmem:[#allocation2 + $0x8] sm:$0xf] %vm299_vm0, %v3423_v2  ;;  %v3541_v14 = vld [vmem:[%s5091_s1] ss:$0 sm:$0xff] }
   0xf   : > { %303 = vst.msk [vmem:[#allocation2 + $0xc] sm:$0xf] %vm299_vm0, %v3423_v2  ;;  %304 = vst.msk [vmem:[#allocation2 + $0x10] sm:$0xf] %vm299_vm0, %v3423_v2  ;;  %559 = vperm.xlu0 %3369, %v2864_v1   ;;  %s5240_s27 = smov (!%p282_p3, %s2853_s27), 1  ;;  %s3425_s13 = smov 4  }
  0x10   : > { %308 = vst.msk [vmem:[#allocation2 + $0x19c] sm:$0xf] %vm299_vm0, %v3423_v2  ;;  %309 = vst.msk [vmem:[#allocation2 + $0x1a0] sm:$0xf] %vm299_vm0, %v3423_v2  ;;  %s3054_s3 = sshll.u32 %s5240_s27, 7  ;;  %s294_s28 = scalar_lea.vmem %s5096_s6, %s5240_s27 }
  0x11   : > { %310 = vst.msk [vmem:[#allocation2 + $0x1a4] sm:$0xf] %vm299_vm0, %v3423_v2  ;;  %311 = vst.msk [vmem:[#allocation2 + $0x1a8] sm:$0xf] %vm299_vm0, %v3423_v2  ;;  %s3529_s30 = scalar_lea.vmem %s5090_s0, %s3054_s3  ;;  %v3551_v29 = vld [vmem:[%s5092_s2] ss:$0 sm:$0xff]  ;;  %s4924_s24 = scalar_lea.vmem %s5095_s5, %s3054_s3 }
  0x12   : > { %315 = vst.msk [vmem:[#allocation2 + $0x1c] sm:$0xf] %vm299_vm0, %v3423_v2  ;;  %317 = vst.msk [vmem:[#allocation2 + $0x34] sm:$0xf] %vm299_vm0, %v3423_v2  ;;  %v3192_v3 = vld [vmem:[%s3529_s30 + $0x48] sm:$0xff]   ;;  %v3191_v4 = vld [vmem:[%s3529_s30 + $0x40] sm:$0xff]   ;;  %s297_s8 = scalar_lea.vmem %s5097_s7, %s5240_s27 }
  0x13   : > { %319 = vst.msk [vmem:[#allocation2 + $0x4c] sm:$0xf] %vm299_vm0, %v3423_v2  ;;  %321 = vst.msk [vmem:[#allocation2 + $0x64] sm:$0xf] %vm299_vm0, %v3423_v2  ;;  %v3194_v5 = vld [vmem:[%s3529_s30 + $0x58] sm:$0xff]   ;;  %v3121_v6 = vld [vmem:[%s3529_s30] sm:$0xff]   ;;  %v3158_v8 = vunpack.c.l.bf16 %v3192_v3  ;;  %v3159_v9 = vunpack.c.h.bf16 %v3192_v3  ;;  %v3154_v10 = vunpack.c.l.bf16 %v3191_v4  ;;  %v3155_v11 = vunpack.c.h.bf16 %v3191_v4 }
  0x14   : > { %323 = vst.msk [vmem:[#allocation2 + $0x7c] sm:$0xf] %vm299_vm0, %v3423_v2  ;;  %325 = vst.msk [vmem:[#allocation2 + $0x94] sm:$0xf] %vm299_vm0, %v3423_v2  ;;  %v3196_v7 = vld [vmem:[%s3529_s30 + $0x68] sm:$0xff]   ;;  %v3197_v13 = vld [vmem:[%s3529_s30 + $0x70] sm:$0xff]   ;;  %v3166_v15 = vunpack.c.l.bf16 %v3194_v5  ;;  %v3167_v16 = vunpack.c.h.bf16 %v3194_v5  ;;  %v3122_v17 = vunpack.c.l.bf16 %v3121_v6  ;;  %v3123_v18 = vunpack.c.h.bf16 %v3121_v6 }
  0x15   : > { %327 = vst.msk [vmem:[#allocation2 + $0xac] sm:$0xf] %vm299_vm0, %v3423_v2  ;;  %329 = vst.msk [vmem:[#allocation2 + $0xc4] sm:$0xf] %vm299_vm0, %v3423_v2  ;;  %v3184_v12 = vld [vmem:[%s3529_s30 + $0x8] sm:$0xff]   ;;  %v3174_v19 = vunpack.c.l.bf16 %v3196_v7  ;;  %v3175_v20 = vunpack.c.h.bf16 %v3196_v7  ;;  %v3178_v23 = vunpack.c.l.bf16 %v3197_v13  ;;  %v3193_v24 = vld [vmem:[%s3529_s30 + $0x50] sm:$0xff]   ;;  %v467_v25 = vmul.f32 %v3158_v8, %v3541_v14 }
  0x16   : > { %331 = vst.msk [vmem:[#allocation2 + $0xdc] sm:$0xf] %vm299_vm0, %v3423_v2  ;;  %333 = vst.msk [vmem:[#allocation2 + $0xf4] sm:$0xf] %vm299_vm0, %v3423_v2  ;;  %v3126_v21 = vunpack.c.l.bf16 %v3184_v12  ;;  %v3127_v22 = vunpack.c.h.bf16 %v3184_v12  ;;  %v468_v26 = vmul.f32 %v3159_v9, %v3541_v14  ;;  %v465_v27 = vmul.f32 %v3154_v10, %v3541_v14  ;;  %v3198_v50 = vld [vmem:[%s3529_s30 + $0x78] sm:$0xff]   ;;  %v3185_v51 = vld [vmem:[%s3529_s30 + $0x10] sm:$0xff]  }
  0x17   : > { %335 = vst.msk [vmem:[#allocation2 + $0x10c] sm:$0xf] %vm299_vm0, %v3423_v2  ;;  %337 = vst.msk [vmem:[#allocation2 + $0x124] sm:$0xf] %vm299_vm0, %v3423_v2  ;;  %v466_v28 = vmul.f32 %v3155_v11, %v3541_v14  ;;  %v471_v30 = vmul.f32 %v3166_v15, %v3541_v14  ;;  %v472_v31 = vmul.f32 %v3167_v16, %v3541_v14  ;;  %v3179_v35 = vunpack.c.h.bf16 %v3197_v13  ;;  %v3186_v56 = vld [vmem:[%s3529_s30 + $0x18] sm:$0xff]   ;;  %v3195_v57 = vld [vmem:[%s3529_s30 + $0x60] sm:$0xff]  }
  0x18   : > { %339 = vst.msk [vmem:[#allocation2 + $0x13c] sm:$0xf] %vm299_vm0, %v3423_v2  ;;  %341 = vst.msk [vmem:[#allocation2 + $0x154] sm:$0xf] %vm299_vm0, %v3423_v2  ;;  %v449_v32 = vmul.f32 %v3122_v17, %v3541_v14  ;;  %v450_v33 = vmul.f32 %v3123_v18, %v3541_v14  ;;  %v475_v34 = vmul.f32 %v3174_v19, %v3541_v14  ;;  %v3162_v36 = vunpack.c.l.bf16 %v3193_v24  ;;  %v3187_v62 = vld [vmem:[%s3529_s30 + $0x20] sm:$0xff]   ;;  %v3188_v63 = vld [vmem:[%s3529_s30 + $0x28] sm:$0xff]  }
  0x19   : > { %343 = vst.msk [vmem:[#allocation2 + $0x16c] sm:$0xf] %vm299_vm0, %v3423_v2  ;;  %345 = vst.msk [vmem:[#allocation2 + $0x184] sm:$0xf] %vm299_vm0, %v3423_v2  ;;  %v3163_v37 = vunpack.c.h.bf16 %v3193_v24  ;;  %v476_v38 = vmul.f32 %v3175_v20, %v3541_v14  ;;  %v451_v39 = vmul.f32 %v3126_v21, %v3541_v14  ;;  %v452_v40 = vmul.f32 %v3127_v22, %v3541_v14  ;;  %v3189_v4 = vld [vmem:[%s3529_s30 + $0x30] sm:$0xff]   ;;  %v3626_v22 = vld [vmem:[%s3529_s30 + $0x38] sm:$0xff]  }
  0x1a   : > { %346 = vst.msk [vmem:[#allocation2 + $0x28] sm:$0xf] %vm299_vm0, %v3423_v2  ;;  %348 = vst.msk [vmem:[#allocation2 + $0x40] sm:$0xf] %vm299_vm0, %v3423_v2  ;;  %v477_v41 = vmul.f32 %v3178_v23, %v3541_v14  ;;  %v3563_v42 = vadd.f32 %v3551_v29, %v467_v25  ;;  %v3566_v43 = vadd.f32 %v3551_v29, %v468_v26  ;;  %v3182_v0 = vunpack.c.l.bf16 %v3198_v50 }
  0x1b   : > { %350 = vst.msk [vmem:[#allocation2 + $0x58] sm:$0xf] %vm299_vm0, %v3423_v2  ;;  %352 = vst.msk [vmem:[#allocation2 + $0x70] sm:$0xf] %vm299_vm0, %v3423_v2  ;;  %v3569_v44 = vadd.f32 %v3551_v29, %v465_v27  ;;  %v3572_v45 = vadd.f32 %v3551_v29, %v466_v28  ;;  %v3575_v46 = vadd.f32 %v3551_v29, %v471_v30  ;;  %v3183_v1 = vunpack.c.h.bf16 %v3198_v50 }
  0x1c   : > { %354 = vst.msk [vmem:[#allocation2 + $0x88] sm:$0xf] %vm299_vm0, %v3423_v2  ;;  %356 = vst.msk [vmem:[#allocation2 + $0xa0] sm:$0xf] %vm299_vm0, %v3423_v2  ;;  %v3578_v47 = vadd.f32 %v3551_v29, %v472_v31  ;;  %v3581_v48 = vadd.f32 %v3551_v29, %v449_v32  ;;  %v3584_v49 = vadd.f32 %v3551_v29, %v450_v33  ;;  %v3131_v3 = vunpack.c.h.bf16 %v3185_v51 }
  0x1d   : > { %358 = vst.msk [vmem:[#allocation2 + $0xb8] sm:$0xf] %vm299_vm0, %v3423_v2  ;;  %360 = vst.msk [vmem:[#allocation2 + $0xd0] sm:$0xf] %vm299_vm0, %v3423_v2  ;;  %v3589_v52 = vadd.f32 %v3551_v29, %v475_v34  ;;  %v478_v53 = vmul.f32 %v3179_v35, %v3541_v14  ;;  %v469_v54 = vmul.f32 %v3162_v36, %v3541_v14  ;;  %v3134_v5 = vunpack.c.l.bf16 %v3186_v56 }
  0x1e   : > { %362 = vst.msk [vmem:[#allocation2 + $0xe8] sm:$0xf] %vm299_vm0, %v3423_v2  ;;  %364 = vst.msk [vmem:[#allocation2 + $0x100] sm:$0xf] %vm299_vm0, %v3423_v2  ;;  %v470_v55 = vmul.f32 %v3163_v37, %v3541_v14  ;;  %v3597_v58 = vadd.f32 %v3551_v29, %v476_v38  ;;  %v3600_v59 = vadd.f32 %v3551_v29, %v451_v39  ;;  %v3135_v6 = vunpack.c.h.bf16 %v3186_v56 }
  0x1f   : > { %366 = vst.msk [vmem:[#allocation2 + $0x118] sm:$0xf] %vm299_vm0, %v3423_v2  ;;  %368 = vst.msk [vmem:[#allocation2 + $0x130] sm:$0xf] %vm299_vm0, %v3423_v2  ;;  %v3603_v60 = vadd.f32 %v3551_v29, %v452_v40  ;;  %v3606_v61 = vadd.f32 %v3551_v29, %v477_v41  ;;  %v3170_v7 = vunpack.c.l.bf16 %v3195_v57  ;;  %v3171_v8 = vunpack.c.h.bf16 %v3195_v57 }
  0x20   : > { %370 = vst.msk [vmem:[#allocation2 + $0x148] sm:$0xf] %vm299_vm0, %v3423_v2  ;;  %372 = vst.msk [vmem:[#allocation2 + $0x160] sm:$0xf] %vm299_vm0, %v3423_v2  ;;  %v3612_v9 = vadd.f32 %v3551_v29, %v478_v53  ;;  %v3138_v10 = vunpack.c.l.bf16 %v3187_v62  ;;  %v3139_v11 = vunpack.c.h.bf16 %v3187_v62  ;;  %v3142_v12 = vunpack.c.l.bf16 %v3188_v63 }
  0x21   : > { %374 = vst.msk [vmem:[#allocation2 + $0x178] sm:$0xf] %vm299_vm0, %v3423_v2  ;;  %376 = vst.msk [vmem:[#allocation2 + $0x190] sm:$0xf] %vm299_vm0, %v3423_v2  ;;  %v3130_v2 = vunpack.c.l.bf16 %v3185_v51  ;;  %vm539_vm1 = vcmp.ge.f32.partialorder %v3563_v42, 0.0  ;;  %vm540_vm2 = vcmp.ge.f32.partialorder %v3566_v43, 0.0  ;;  %v3619_v13 = vadd.f32 %v3551_v29, %v469_v54 }
  0x22   : > { %vm537_vm3 = vcmp.ge.f32.partialorder %v3569_v44, 0.0  ;;  %vm538_vm4 = vcmp.ge.f32.partialorder %v3572_v45, 0.0  ;;  %v3143_v15 = vunpack.c.h.bf16 %v3188_v63  ;;  %v3146_v16 = vunpack.c.l.bf16 %v3189_v4 }
  0x23   : > { %v3147_v17 = vunpack.c.h.bf16 %v3189_v4  ;;  %v479_v18 = vmul.f32 %v3182_v0, %v3541_v14  ;;  %v480_v19 = vmul.f32 %v3183_v1, %v3541_v14  ;;  %v453_v20 = vmul.f32 %v3130_v2, %v3541_v14 }
  0x24   : > { %v454_v21 = vmul.f32 %v3131_v3, %v3541_v14  ;;  %vm543_vm5 = vcmp.ge.f32.partialorder %v3575_v46, 0.0  ;;  %vm544_vm6 = vcmp.ge.f32.partialorder %v3578_v47, 0.0  ;;  %vm521_vm7 = vcmp.ge.f32.partialorder %v3581_v48, 0.0 }
  0x25   : > { %vm522_vm8 = vcmp.ge.f32.partialorder %v3584_v49, 0.0  ;;  %v455_v23 = vmul.f32 %v3134_v5, %v3541_v14  ;;  %v456_v24 = vmul.f32 %v3135_v6, %v3541_v14  ;;  %v473_v25 = vmul.f32 %v3170_v7, %v3541_v14 }
  0x26   : > { %v474_v26 = vmul.f32 %v3171_v8, %v3541_v14  ;;  %v3637_v27 = vadd.f32 %v3551_v29, %v470_v55  ;;  %v457_v28 = vmul.f32 %v3138_v10, %v3541_v14  ;;  %v458_v30 = vmul.f32 %v3139_v11, %v3541_v14 }
  0x27   : > { %v459_v31 = vmul.f32 %v3142_v12, %v3541_v14  ;;  %v460_v32 = vmul.f32 %v3143_v15, %v3541_v14  ;;  %v461_v33 = vmul.f32 %v3146_v16, %v3541_v14  ;;  %v462_v34 = vmul.f32 %v3147_v17, %v3541_v14 }
  0x28   : > { %v3150_v35 = vunpack.c.l.bf16 %v3626_v22  ;;  %v3647_v36 = vadd.f32 %v3551_v29, %v479_v18  ;;  %v3650_v37 = vadd.f32 %v3551_v29, %v480_v19  ;;  %v3653_v38 = vadd.f32 %v3551_v29, %v453_v20 }
  0x29   : > { %v3656_v39 = vadd.f32 %v3551_v29, %v454_v21  ;;  %vm547_vm9 = vcmp.ge.f32.partialorder %v3589_v52, 0.0  ;;  %vm548_vm10 = vcmp.ge.f32.partialorder %v3597_v58, 0.0  ;;  %vm523_vm11 = vcmp.ge.f32.partialorder %v3600_v59, 0.0 }
  0x2a   : > { %v3663_v40 = vadd.f32 %v3551_v29, %v455_v23  ;;  %v3666_v41 = vadd.f32 %v3551_v29, %v456_v24  ;;  %v3669_v50 = vadd.f32 %v3551_v29, %v473_v25  ;;  %v3672_v51 = vadd.f32 %v3551_v29, %v474_v26 }
  0x2b   : > { %v3675_v53 = vadd.f32 %v3551_v29, %v457_v28  ;;  %v3678_v54 = vadd.f32 %v3551_v29, %v458_v30  ;;  %v3681_v55 = vadd.f32 %v3551_v29, %v459_v31  ;;  %v3151_v56 = vunpack.c.h.bf16 %v3626_v22 }
  0x2c   : > { %vm549_vm13 = vcmp.ge.f32.partialorder %v3606_v61, 0.0  ;;  %vm550_vm14 = vcmp.ge.f32.partialorder %v3612_v9, 0.0  ;;  %v3691_v62 = vadd.f32 %v3551_v29, %v460_v32  ;;  %v3694_v63 = vadd.f32 %v3551_v29, %v461_v33 }
  0x2d   : > { %v3697_v0 = vadd.f32 %v3551_v29, %v462_v34  ;;  %v3700_v1 = vmul.f32 %v3150_v35, %v3541_v14  ;;  %vm551_vm12 = vcmp.ge.f32.partialorder %v3647_v36, 0.0  ;;  %vm525_vm15 = vcmp.ge.f32.partialorder %v3653_v38, 0.0 }
  0x8a   : > { %v3684_v57 = vpop.permute.xlu0 %559 }
  0x8b   : > { %v580_v2 = vmul.f32 %v3684_v57, %v3563_v42  ;;  %v581_v3 = vmul.f32 %v3684_v57, %v3566_v43  ;;  %v578_v4 = vmul.f32 %v3684_v57, %v3569_v44  ;;  %v579_v5 = vmul.f32 %v3684_v57, %v3572_v45 }
  0x8c   : > { %v584_v6 = vmul.f32 %v3684_v57, %v3575_v46  ;;  %v585_v7 = vmul.f32 %v3684_v57, %v3578_v47  ;;  %v562_v8 = vmul.f32 %v3684_v57, %v3581_v48  ;;  %v563_v10 = vmul.f32 %v3684_v57, %v3584_v49 }
  0x8d   : > { %v612_v11 = vsel %vm539_vm1, %v3563_v42, %v580_v2  ;;  %v613_v12 = vsel %vm540_vm2, %v3566_v43, %v581_v3  ;;  %v610_v15 = vsel %vm537_vm3, %v3569_v44, %v578_v4  ;;  %v611_v16 = vsel %vm538_vm4, %v3572_v45, %v579_v5 }
  0x8e   : > { %v3074_v17 = vpack.c.bf16 %v612_v11, %v612_v11  ;;  %v3075_v18 = vpack.c.bf16 %v613_v12, %v613_v12  ;;  %v3072_v19 = vpack.c.bf16 %v610_v15, %v610_v15  ;;  %v3073_v20 = vpack.c.bf16 %v611_v16, %v611_v16 }
  0x8f   : > { %vm552_vm1 = vcmp.ge.f32.partialorder %v3650_v37, 0.0  ;;  %v616_v42 = vsel %vm543_vm5, %v3575_v46, %v584_v6  ;;  %v617_v43 = vsel %vm544_vm6, %v3578_v47, %v585_v7  ;;  %v594_v44 = vsel %vm521_vm7, %v3581_v48, %v562_v8 }
  0x90   : > { %v595_v45 = vsel %vm522_vm8, %v3584_v49, %v563_v10  ;;  %772 = vst.msk [vmem:[#allocation2 + $0xf8] sm:$0xf] %vm299_vm0, %v3074_v17  ;;  %773 = vst.msk [vmem:[#allocation2 + $0xfc] sm:$0xf] %vm299_vm0, %v3075_v18  ;;  %v3078_v46 = vpack.c.bf16 %v616_v42, %v616_v42  ;;  %v3079_v21 = vpack.c.bf16 %v617_v43, %v617_v43  ;;  %vm526_vm2 = vcmp.ge.f32.partialorder %v3656_v39, 0.0 }
  0x91   : > { %770 = vst.msk [vmem:[#allocation2 + $0xe0] sm:$0xf] %vm299_vm0, %v3072_v19  ;;  %771 = vst.msk [vmem:[#allocation2 + $0xe4] sm:$0xf] %vm299_vm0, %v3073_v20  ;;  %v3056_v23 = vpack.c.bf16 %v594_v44, %v594_v44  ;;  %v3057_v47 = vpack.c.bf16 %v595_v45, %v595_v45  ;;  %v588_v48 = vmul.f32 %v3684_v57, %v3589_v52  ;;  %vm527_vm3 = vcmp.ge.f32.partialorder %v3663_v40, 0.0 }
  0x92   : > { %v589_v49 = vmul.f32 %v3684_v57, %v3597_v58  ;;  %v564_v24 = vmul.f32 %v3684_v57, %v3600_v59  ;;  %v565_v25 = vmul.f32 %v3684_v57, %v3603_v60  ;;  %vm528_vm4 = vcmp.ge.f32.partialorder %v3666_v41, 0.0  ;;  %776 = vst.msk [vmem:[#allocation2 + $0x128] sm:$0xf] %vm299_vm0, %v3078_v46  ;;  %777 = vst.msk [vmem:[#allocation2 + $0x12c] sm:$0xf] %vm299_vm0, %v3079_v21 }
  0x93   : > { %754 = vst.msk [vmem:[#allocation2 + $0x20] sm:$0xf] %vm299_vm0, %v3056_v23  ;;  %755 = vst.msk [vmem:[#allocation2 + $0x24] sm:$0xf] %vm299_vm0, %v3057_v47  ;;  %v590_v26 = vmul.f32 %v3684_v57, %v3606_v61  ;;  %v591_v28 = vmul.f32 %v3684_v57, %v3612_v9  ;;  %v582_v30 = vmul.f32 %v3684_v57, %v3619_v13  ;;  %vm5125_vm5 = vcmp.ge.f32.partialorder %v3603_v60, 0.0 }
  0x94   : > { %v583_v31 = vmul.f32 %v3684_v57, %v3637_v27  ;;  %v620_v32 = vsel %vm547_vm9, %v3589_v52, %v588_v48  ;;  %v621_v33 = vsel %vm548_vm10, %v3597_v58, %v589_v49  ;;  %v596_v34 = vsel %vm523_vm11, %v3600_v59, %v564_v24 }
  0x95   : > { %v597_v35 = vsel %vm5125_vm5, %v3603_v60, %v565_v25  ;;  %vm545_vm6 = vcmp.ge.f32.partialorder %v3669_v50, 0.0  ;;  %v3082_v2 = vpack.c.bf16 %v620_v32, %v620_v32  ;;  %v3083_v3 = vpack.c.bf16 %v621_v33, %v621_v33 }
  0x96   : > { %v3058_v4 = vpack.c.bf16 %v596_v34, %v596_v34  ;;  %v3059_v5 = vpack.c.bf16 %v597_v35, %v597_v35  ;;  %v622_v52 = vsel %vm549_vm13, %v3606_v61, %v590_v26  ;;  %v623_v58 = vsel %vm550_vm14, %v3612_v9, %v591_v28 }
  0x97   : > { %vm5126_vm7 = vcmp.ge.f32.partialorder %v3619_v13, 0.0  ;;  %vm5127_vm8 = vcmp.ge.f32.partialorder %v3637_v27, 0.0  ;;  %vm546_vm9 = vcmp.ge.f32.partialorder %v3672_v51, 0.0  ;;  %vm529_vm10 = vcmp.ge.f32.partialorder %v3675_v53, 0.0  ;;  %780 = vst.msk [vmem:[#allocation2 + $0x158] sm:$0xf] %vm299_vm0, %v3082_v2 }
  0x98   : > { %v614_v59 = vsel %vm5126_vm7, %v3619_v13, %v582_v30  ;;  %v615_v60 = vsel %vm5127_vm8, %v3637_v27, %v583_v31  ;;  %781 = vst.msk [vmem:[#allocation2 + $0x15c] sm:$0xf] %vm299_vm0, %v3083_v3  ;;  %756 = vst.msk [vmem:[#allocation2 + $0x38] sm:$0xf] %vm299_vm0, %v3058_v4  ;;  %v3084_v61 = vpack.c.bf16 %v622_v52, %v622_v52  ;;  %vm530_vm11 = vcmp.ge.f32.partialorder %v3678_v54, 0.0 }
  0x99   : > { %757 = vst.msk [vmem:[#allocation2 + $0x3c] sm:$0xf] %vm299_vm0, %v3059_v5  ;;  %v3085_v9 = vpack.c.bf16 %v623_v58, %v623_v58  ;;  %v3076_v6 = vpack.c.bf16 %v614_v59, %v614_v59  ;;  %v3077_v13 = vpack.c.bf16 %v615_v60, %v615_v60  ;;  %v3804_v7 = vld [vmem:[#allocation2 + $0xf8] sm:$0xf]  ;;  %v3806_v27 = vld [vmem:[#allocation2 + $0xfc] sm:$0xf]  ;;  %v592_v10 = vmul.f32 %v3684_v57, %v3647_v36 }
  0x9a   : > { %v3808_v8 = vld [vmem:[#allocation2 + $0xe0] sm:$0xf]  ;;  %v593_v11 = vmul.f32 %v3684_v57, %v3650_v37  ;;  %v566_v12 = vmul.f32 %v3684_v57, %v3653_v38  ;;  %v567_v15 = vmul.f32 %v3684_v57, %v3656_v39  ;;  %v3820_v16 = vcombine.low %v3804_v7, %v3806_v27  ;;  %v3822_v17 = vld [vmem:[#allocation2 + $0xe4] sm:$0xf]  ;;  %782 = vst.msk [vmem:[#allocation2 + $0x170] sm:$0xf] %vm299_vm0, %v3084_v61 }
  0x9b   : > { %783 = vst.msk [vmem:[#allocation2 + $0x174] sm:$0xf] %vm299_vm0, %v3085_v9  ;;  %774 = vst.msk [vmem:[#allocation2 + $0x110] sm:$0xf] %vm299_vm0, %v3076_v6  ;;  %v568_v18 = vmul.f32 %v3684_v57, %v3663_v40  ;;  %v569_v19 = vmul.f32 %v3684_v57, %v3666_v41  ;;  %v586_v20 = vmul.f32 %v3684_v57, %v3669_v50  ;;  %v3838_v43 = vld [vmem:[#allocation2 + $0x128] sm:$0xf] }
  0x9c   : > { %775 = vst.msk [vmem:[#allocation2 + $0x114] sm:$0xf] %vm299_vm0, %v3077_v13  ;;  %v3836_v42 = vcombine.low %v3808_v8, %v3822_v17  ;;  %v3840_v44 = vld [vmem:[#allocation2 + $0x12c] sm:$0xf]  ;;  %v3842_v45 = vld [vmem:[#allocation2 + $0x20] sm:$0xf]  ;;  %v624_v46 = vsel %vm551_vm12, %v3647_v36, %v592_v10  ;;  %v625_v21 = vsel %vm552_vm1, %v3650_v37, %v593_v11  ;;  %v598_v23 = vsel %vm525_vm15, %v3653_v38, %v566_v12 }
  0x9d   : > { %vm531_vm13 = vcmp.ge.f32.partialorder %v3681_v55, 0.0  ;;  %v5102_v47 = vrot.slane %v3820_v16, 5  ;;  %v3857_v48 = vcombine.low %v3838_v43, %v3840_v44  ;;  %v3859_v49 = vld [vmem:[#allocation2 + $0x24] sm:$0xf]  ;;  %v3086_v24 = vpack.c.bf16 %v624_v46, %v624_v46 }
  0x9e   : > { %v3087_v36 = vpack.c.bf16 %v625_v21, %v625_v21  ;;  %vm532_vm12 = vcmp.ge.f32.partialorder %v3691_v62, 0.0  ;;  %vm533_vm14 = vcmp.ge.f32.partialorder %v3694_v63, 0.0  ;;  %v1243_v37 = vrot.slane %v3836_v42, 5  ;;  %v3890_v34 = vld [vmem:[#allocation2 + $0x158] sm:$0xf] }
  0x9f   : > { %v3866_v38 = vcombine.low %v3842_v45, %v3859_v49  ;;  %v599_v25 = vsel %vm526_vm2, %v3656_v39, %v567_v15  ;;  %v3060_v26 = vpack.c.bf16 %v598_v23, %v598_v23  ;;  %1304 = vrot.lane.b32.xlu0 %v5102_v47, %s3424_s12  ;;  %784 = vst.msk [vmem:[#allocation2 + $0x188] sm:$0xf] %vm299_vm0, %v3086_v24  ;;  %v5101_v32 = vrot.slane %v3857_v48, 5  ;;  %v3892_v35 = vld [vmem:[#allocation2 + $0x15c] sm:$0xf] }
  0xa0   : > { %785 = vst.msk [vmem:[#allocation2 + $0x18c] sm:$0xf] %vm299_vm0, %v3087_v36  ;;  %v3061_v28 = vpack.c.bf16 %v599_v25, %v599_v25  ;;  %v600_v30 = vsel %vm527_vm3, %v3663_v40, %v568_v18  ;;  %v601_v31 = vsel %vm528_vm4, %v3666_v41, %v569_v19  ;;  %v464_v39 = vmul.f32 %v3151_v56, %v3541_v14  ;;  %v3899_v14 = vld [vmem:[#allocation2 + $0x38] sm:$0xf]  ;;  %v3901_v56 = vld [vmem:[#allocation2 + $0x3c] sm:$0xf] }
  0xa1   : > { %1300 = vrot.lane.b32.xlu1 %v1243_v37, %s3424_s12  ;;  %v1219_v33 = vrot.slane %v3866_v38, 5  ;;  %758 = vst.msk [vmem:[#allocation2 + $0x50] sm:$0xf] %vm299_vm0, %v3060_v26  ;;  %v3062_v40 = vpack.c.bf16 %v600_v30, %v600_v30  ;;  %v3063_v41 = vpack.c.bf16 %v601_v31, %v601_v31  ;;  %v3897_v22 = vcombine.low %v3890_v34, %v3892_v35  ;;  %v3915_v52 = vld [vmem:[#allocation2 + $0x170] sm:$0xf] }
  0xa2   : > { %759 = vst.msk [vmem:[#allocation2 + $0x54] sm:$0xf] %vm299_vm0, %v3061_v28  ;;  %v587_v2 = vmul.f32 %v3684_v57, %v3672_v51  ;;  %v618_v3 = vsel %vm545_vm6, %v3669_v50, %v586_v20  ;;  %v570_v4 = vmul.f32 %v3684_v57, %v3675_v53  ;;  %v3913_v5 = vcombine.low %v3899_v14, %v3901_v56  ;;  %v3917_v58 = vld [vmem:[#allocation2 + $0x174] sm:$0xf]  ;;  %v3919_v59 = vld [vmem:[#allocation2 + $0x110] sm:$0xf] }
  0xa3   : > { %5128 = vst [vmem:[#allocation4_spill] sm:$0xff] %v3915_v52  ;;  %5129 = vst [vmem:[#allocation5_spill] sm:$0xff] %v3917_v58  ;;  %v3080_v60 = vpack.c.bf16 %v618_v3, %v618_v3  ;;  %v571_v50 = vmul.f32 %v3684_v57, %v3678_v54  ;;  %v502_v61 = vadd.f32 %v3551_v29, %v3700_v1  ;;  %1312 = vrot.lane.b32.xlu0 %v5101_v32, %s3424_s12  ;;  %v3930_v9 = vld [vmem:[#allocation2 + $0x114] sm:$0xf]  ;;  %vm1215_vm3 = vcmask 1042432  }
  0xa4   : > { %760 = vst.msk [vmem:[#allocation2 + $0x68] sm:$0xf] %vm299_vm0, %v3062_v40  ;;  %761 = vst.msk [vmem:[#allocation2 + $0x6c] sm:$0xf] %vm299_vm0, %v3063_v41  ;;  %v619_v6 = vsel %vm546_vm9, %v3672_v51, %v587_v2  ;;  %v602_v13 = vsel %vm529_vm10, %v3675_v53, %v570_v4  ;;  %vm534_vm15 = vcmp.ge.f32.partialorder %v3697_v0, 0.0  ;;  %v503_v10 = vadd.f32 %v3551_v29, %v464_v39 }
  0xa5   : > { %1268 = vrot.lane.b32.xlu1 %v1219_v33, %s3424_s12  ;;  %v5100_v1 = vrot.slane %v3897_v22, 5  ;;  %v3946_v11 = vcombine.low %v3915_v52, %v3917_v58  ;;  %v3081_v12 = vpack.c.bf16 %v619_v6, %v619_v6  ;;  %778 = vst.msk [vmem:[#allocation2 + $0x140] sm:$0xf] %vm299_vm0, %v3080_v60  ;;  %v603_v51 = vsel %vm530_vm11, %v3678_v54, %v571_v50  ;;  %v3395_v47 = vld [vmem:[#allocation2 + $0x88] ss:$0 sps:$4 sm:$0xff]  }
  0xa6   : > { %v3954_v29 = vcombine.low %v3919_v59, %v3930_v9  ;;  %v3064_v53 = vpack.c.bf16 %v602_v13, %v602_v13  ;;  %v3065_v15 = vpack.c.bf16 %v603_v51, %v603_v51  ;;  %v572_v18 = vmul.f32 %v3684_v57, %v3681_v55  ;;  %v3959_v20 = vld [vmem:[#allocation2 + $0x188] sm:$0xf] }
  0xa7   : > { %v1222_v19 = vrot.slane %v3913_v5, 5  ;;  %5130 = vst [vmem:[#allocation6_spill] sm:$0xff] %v3959_v20  ;;  %v3961_v46 = vld [vmem:[#allocation2 + $0x18c] sm:$0xf]  ;;  %779 = vst.msk [vmem:[#allocation2 + $0x144] sm:$0xf] %vm299_vm0, %v3081_v12  ;;  %v573_v54 = vmul.f32 %v3684_v57, %v3691_v62  ;;  %v574_v21 = vmul.f32 %v3684_v57, %v3694_v63  ;;  %1320 = vrot.lane.b32.xlu0 %v5100_v1, %s3424_s12 }
  0xa8   : > { %5131 = vst [vmem:[#allocation7_spill] sm:$0xff] %v3961_v46  ;;  %vm535_vm1 = vcmp.ge.f32.partialorder %v502_v61, 0.0  ;;  %v3971_v23 = vld [vmem:[#allocation2 + $0x50] sm:$0xf]  ;;  %762 = vst.msk [vmem:[#allocation2 + $0x80] sm:$0xf] %vm299_vm0, %v3064_v53  ;;  %v604_v24 = vsel %vm531_vm13, %v3681_v55, %v572_v18  ;;  %v575_v36 = vmul.f32 %v3684_v57, %v3697_v0  ;;  %v576_v25 = vmul.f32 %v3684_v57, %v502_v61 }
  0xa9   : > { %5132 = vst [vmem:[#allocation8_spill] sm:$0xff] %v3971_v23  ;;  %763 = vst.msk [vmem:[#allocation2 + $0x84] sm:$0xf] %vm299_vm0, %v3065_v15  ;;  %vm536_vm2 = vcmp.ge.f32.partialorder %v503_v10, 0.0  ;;  %1272 = vrot.lane.b32.xlu1 %v1222_v19, %s3424_s12  ;;  %v5099_v26 = vrot.slane %v3946_v11, 5  ;;  %v605_v30 = vsel %vm532_vm12, %v3691_v62, %v573_v54  ;;  %v3066_v31 = vpack.c.bf16 %v604_v24, %v604_v24 }
  0xaa   : > { %v3985_v28 = vld [vmem:[#allocation2 + $0x54] sm:$0xf]  ;;  %v606_v55 = vsel %vm533_vm14, %v3694_v63, %v574_v21  ;;  %v1249_v39 = vrot.slane %v3954_v29, 5  ;;  %v3996_v40 = vcombine.low %v3959_v20, %v3961_v46  ;;  %v3067_v41 = vpack.c.bf16 %v605_v30, %v605_v30  ;;  %v3380_v62 = vld [vmem:[#allocation2 + $0xe8] ss:$0 sps:$4 sm:$0xff]  }
  0xab   : > { %5133 = vst [vmem:[#allocation9_spill] sm:$0xff] %v3985_v28  ;;  %v607_v2 = vsel %vm534_vm15, %v3697_v0, %v575_v36  ;;  %v4003_v3 = vcombine.low %v3971_v23, %v3985_v28  ;;  %764 = vst.msk [vmem:[#allocation2 + $0x98] sm:$0xf] %vm299_vm0, %v3066_v31  ;;  %v3068_v4 = vpack.c.bf16 %v606_v55, %v606_v55  ;;  %1324 = vrot.lane.b32.xlu0 %v5099_v26, %s3424_s12  ;;  %v4010_v50 = vld [vmem:[#allocation2 + $0x68] sm:$0xf]  ;;  %vm1823_vm4 = vcmask 1045504  }
  0xac   : > { %v3069_v63 = vpack.c.bf16 %v607_v2, %v607_v2  ;;  %v577_v60 = vmul.f32 %v3684_v57, %v503_v10  ;;  %v4012_v6 = vld [vmem:[#allocation2 + $0x6c] sm:$0xf]  ;;  %765 = vst.msk [vmem:[#allocation2 + $0x9c] sm:$0xf] %vm299_vm0, %v3067_v41  ;;  %v608_v0 = vsel %vm535_vm1, %v502_v61, %v576_v25  ;;  %v5098_v12 = vrot.slane %v3996_v40, 5 }
  0xad   : > { %1308 = vrot.lane.b32.xlu1 %v1249_v39, %s3424_s12  ;;  %766 = vst.msk [vmem:[#allocation2 + $0xb0] sm:$0xf] %vm299_vm0, %v3068_v4  ;;  %v3070_v13 = vpack.c.bf16 %v608_v0, %v608_v0  ;;  %v1225_v53 = vrot.slane %v4003_v3, 5  ;;  %v1244_v15 = vrot.slane %v3380_v62, 5  ;;  %v4024_v18 = vcombine.low %v4010_v50, %v4012_v6  ;;  %v3383_v61 = vld [vmem:[#allocation2 + $0x28] ss:$0 sps:$4 sm:$0xff]  }
  0xae   : > { %767 = vst.msk [vmem:[#allocation2 + $0xb4] sm:$0xf] %vm299_vm0, %v3069_v63  ;;  %v609_v57 = vsel %vm536_vm2, %v503_v10, %v577_v60  ;;  %v4030_v10 = vld [vmem:[#allocation2 + $0x140] sm:$0xf]  ;;  %v4032_v54 = vld [vmem:[#allocation2 + $0x144] sm:$0xf] }
  0xaf   : > { %v3071_v51 = vpack.c.bf16 %v609_v57, %v609_v57  ;;  %768 = vst.msk [vmem:[#allocation2 + $0xc8] sm:$0xf] %vm299_vm0, %v3070_v13  ;;  %1740 = vrot.lane.b32.xlu0 %v5098_v12, %s3424_s12  ;;  %5134 = vst [vmem:[#allocation10_spill] sm:$0xff] %v4030_v10  ;;  %v1245_v21 = vsel %vm1215_vm3, %v1243_v37, %v1244_v15  ;;  %v1228_v24 = vrot.slane %v4024_v18, 5  ;;  %v1220_v25 = vrot.slane %v3383_v61, 5 }
  0xb0   : > { %5135 = vst [vmem:[#allocation11_spill] sm:$0xff] %v4032_v54  ;;  %v4042_v36 = vcombine.low %v4030_v10, %v4032_v54  ;;  %v3385_v30 = vld [vmem:[#allocation2 + $0x40] ss:$0 sps:$4 sm:$0xff]   ;;  %v4047_v55 = vld [vmem:[#allocation2 + $0x84] sm:$0xf]  ;;  %vm1328_vm5 = vcmask 31744  }
  0xb1   : > { %769 = vst.msk [vmem:[#allocation2 + $0xcc] sm:$0xf] %vm299_vm0, %v3071_v51  ;;  %1276 = vrot.lane.b32.xlu1 %v1225_v53, %s3424_s12  ;;  %v4045_v31 = vld [vmem:[#allocation2 + $0x80] sm:$0xf]  ;;  %v1221_v37 = vsel %vm1215_vm3, %v1219_v33, %v1220_v25  ;;  %v1223_v62 = vrot.slane %v3385_v30, 5  ;;  %vm1409_vm6 = vcmask 64512  }
  0xb2   : > { %5136 = vst [vmem:[#allocation12_spill] sm:$0xff] %v4045_v31  ;;  %v1255_v41 = vrot.slane %v4042_v36, 5  ;;  %v4056_v2 = vcombine.low %v4045_v31, %v4047_v55  ;;  %v3387_v4 = vld [vmem:[#allocation2 + $0x118] ss:$0 sps:$4 sm:$0xff]   ;;  %v3393_v26 = vld [vmem:[#allocation2 + $0x148] ss:$0 sps:$4 sm:$0xff]  }
  0xb3   : > { %1302 = vrot.lane.b32.xlu0 %v1245_v21, %s3424_s12  ;;  %v4059_v63 = vld [vmem:[#allocation2 + $0x98] sm:$0xf]  ;;  %v4061_v60 = vld [vmem:[#allocation2 + $0x9c] sm:$0xf]  ;;  %v1224_v33 = vsel %vm1215_vm3, %v1222_v19, %v1223_v62  ;;  %v1250_v13 = vrot.slane %v3387_v4, 5  ;;  %v1256_v32 = vrot.slane %v3393_v26, 5 }
  0xb4   : > { %v1231_v0 = vrot.slane %v4056_v2, 5  ;;  %v4070_v57 = vcombine.low %v4059_v63, %v4061_v60  ;;  %v3389_v51 = vld [vmem:[#allocation2 + $0x58] ss:$0 sps:$4 sm:$0xff]   ;;  %v4073_v15 = vld [vmem:[#allocation2 + $0xb0] sm:$0xf]  ;;  %vm1774_vm8 = vcmask 97280  }
  0xb5   : > { %1280 = vrot.lane.b32.xlu1 %v1228_v24, %s3424_s12  ;;  %5137 = vst [vmem:[#allocation13_spill] sm:$0xff] %v4073_v15  ;;  %v4075_v61 = vld [vmem:[#allocation2 + $0xb4] sm:$0xf]  ;;  %v1251_v25 = vsel %vm1215_vm3, %v1249_v39, %v1250_v13  ;;  %v1226_v30 = vrot.slane %v3389_v51, 5  ;;  %v3392_v51 = vld [vmem:[#allocation2 + $0x100] ss:$0 sps:$4 sm:$0xff]  }
  0xb6   : > { %5138 = vst [vmem:[#allocation14_spill] sm:$0xff] %v4075_v61  ;;  %v1234_v21 = vrot.slane %v4070_v57, 5  ;;  %v4082_v19 = vcombine.low %v4073_v15, %v4075_v61  ;;  %v4085_v62 = vld [vmem:[#allocation2 + $0xc8] sm:$0xf]  ;;  %v3397_v61 = vld [vmem:[#allocation2 + $0xa0] ss:$0 sps:$4 sm:$0xff]  }
  0xb7   : > { %1270 = vrot.lane.b32.xlu0 %v1221_v37, %s3424_s12  ;;  %v3391_v37 = vld [vmem:[#allocation2 + $0x70] ss:$0 sps:$4 sm:$0xff]   ;;  %5139 = vst [vmem:[#allocation15_spill] sm:$0xff] %v4085_v62  ;;  %v1227_v12 = vsel %vm1215_vm3, %v1225_v53, %v1226_v30  ;;  %v1247_v53 = vrot.slane %v3392_v51, 5  ;;  %v5141_v15 = vrot.slane %v3820_v16, 5 }
  0xb8   : > { %v4087_v4 = vld [vmem:[#allocation2 + $0xcc] sm:$0xf]  ;;  %v1229_v13 = vrot.slane %v3391_v37, 5  ;;  %v3394_v30 = vld [vmem:[#allocation2 + $0x130] ss:$0 sps:$4 sm:$0xff]   ;;  %v1257_v37 = vsel %vm1215_vm3, %v1255_v41, %v1256_v32 }
  0xb9   : > { %1316 = vrot.lane.b32.xlu1 %v1255_v41, %s3424_s12  ;;  %5140 = vst [vmem:[#allocation16_spill] sm:$0xff] %v4087_v4  ;;  %v4094_v39 = vcombine.low %v4085_v62, %v4087_v4  ;;  %v1248_v58 = vsel %vm1215_vm3, %v5141_v15, %v1247_v53  ;;  %v1253_v26 = vrot.slane %v3394_v30, 5  ;;  %v3399_v51 = vld [vmem:[#allocation2 + $0xb8] ss:$0 sps:$4 sm:$0xff]   ;;  %v1080_v15 = vshrl.u32 %v3836_v42, 16 }
  0xba   : > { %v1230_v1 = vsel %vm1215_vm3, %v1228_v24, %v1229_v13  ;;  %v3396_v24 = vld [vmem:[#allocation2 + $0x160] ss:$0 sps:$4 sm:$0xff]   ;;  %v1235_v13 = vrot.slane %v3397_v61, 5  ;;  %v3398_v41 = vld [vmem:[#allocation2 + $0x178] ss:$0 sps:$4 sm:$0xff]   ;;  %v1083_v53 = vshll.u32 %v3836_v42, 16  ;;  %v5172_v62 = vcombine.low %v3806_v27, %v3806_v27 }
  0xbb   : > { %1274 = vrot.lane.b32.xlu0 %v1224_v33, %s3424_s12  ;;  %v1237_v33 = vrot.slane %v4082_v19, 5  ;;  %v1238_v30 = vrot.slane %v3399_v51, 5  ;;  %v5144_v51 = vrot.slane %v3946_v11, 5  ;;  %v4362_v23 = vld [vmem:[#allocation2 + $0xac] sm:$0xf] }
  0xbc   : > { %v4380_v31 = vld [vmem:[#allocation2 + $0x4] sm:$0xf]  ;;  %vm1474_vm7 = vsmask.f32 4352 }
  0xbd   : > { %1284 = vrot.lane.b32.xlu1 %v1231_v0, %s3424_s12  ;;  %v1239_v42 = vsel %vm1215_vm3, %v1237_v33, %v1238_v30 }
  0xbf   : > { %1310 = vrot.lane.b32.xlu0 %v1251_v25, %s3424_s12  ;;  %v5109_v25 = vrot.slane %v4094_v39, 5 }
  0xc1   : > { %1288 = vrot.lane.b32.xlu1 %v1234_v21, %s3424_s12 }
  0xc3   : > { %1278 = vrot.lane.b32.xlu0 %v1227_v12, %s3424_s12  ;;  %v1232_v12 = vrot.slane %v3395_v47, 5  ;;  %v1259_v47 = vrot.slane %v3396_v24, 5  ;;  %v1024_v24 = vshrl.u32 %v3913_v5, 16 }
  0xc5   : > { %1292 = vrot.lane.b32.xlu1 %v1237_v33, %s3424_s12 }
  0xc7   : > { %1282 = vrot.lane.b32.xlu0 %v1230_v1, %s3424_s12  ;;  %v1233_v1 = vsel %vm1215_vm3, %v1231_v0, %v1232_v12  ;;  %v5143_v0 = vrot.slane %v3897_v22, 5  ;;  %v1082_v12 = vrot.slane %v1080_v15, 4  ;;  %v1107_v15 = vshll.u32 %v3857_v48, 16 }
  0xc9   : > { %1296 = vrot.lane.b32.xlu1 %v5109_v25, %s3424_s12  ;;  %v5142_v25 = vrot.slane %v3857_v48, 5  ;;  %v1260_v61 = vsel %vm1215_vm3, %v5143_v0, %v1259_v47  ;;  %v1019_v0 = vshll.u32 %v3866_v38, 16 }
  0xcb   : > { %1318 = vrot.lane.b32.xlu0 %v1257_v37, %s3424_s12  ;;  %v1254_v32 = vsel %vm1215_vm3, %v5142_v25, %v1253_v26  ;;  %v1262_v25 = vrot.slane %v3398_v41, 5  ;;  %v3400_v37 = vld [vmem:[#allocation2 + $0x190] ss:$0 sps:$4 sm:$0xff]   ;;  %v1085_v26 = vrot.slane %v1083_v53, 5  ;;  %v1104_v41 = vshrl.u32 %v3857_v48, 16 }
  0xcc   : > { %v1738_v47 = vrot.slane %v3400_v37, 5  ;;  %v1026_v53 = vrot.slane %v1024_v24, 4  ;;  %v1040_v37 = vshrl.u32 %v4024_v18, 16  ;;  %v1043_v48 = vshll.u32 %v4024_v18, 16 }
  0xcd   : > { %1306 = vrot.lane.b32.xlu1 %v1248_v58, %s3424_s12  ;;  %v1236_v58 = vsel %vm1215_vm3, %v1234_v21, %v1235_v13  ;;  %v1088_v21 = vshrl.u32 %v3820_v16, 16  ;;  %v1091_v13 = vshll.u32 %v3820_v16, 16  ;;  %v1016_v16 = vshrl.u32 %v3866_v38, 16 }
  0xce   : > { %v1099_v38 = vshll.u32 %v3954_v29, 16 }
  0xcf   : > { %1286 = vrot.lane.b32.xlu0 %v1233_v1, %s3424_s12  ;;  %v1027_v1 = vshll.u32 %v3913_v5, 16  ;;  %v1086_v5 = vor.u32 %v1085_v26, %v1082_v12  ;;  %v1093_v30 = vrot.slane %v1091_v13, 5  ;;  %v1106_v12 = vrot.slane %v1104_v41, 4 }
  0xd0   : > { %v1109_v26 = vrot.slane %v1107_v15, 5  ;;  %v1021_v13 = vrot.slane %v1019_v0, 5  ;;  %v1123_v41 = vshll.u32 %v3897_v22, 16 }
  0xd1   : > { %1314 = vrot.lane.b32.xlu1 %v1254_v32, %s3424_s12  ;;  %v1263_v32 = vsel %vm1215_vm3, %v5144_v51, %v1262_v25  ;;  %v1029_v33 = vrot.slane %v1027_v1, 5  ;;  %v1096_v1 = vshrl.u32 %v3954_v29, 16  ;;  %v1042_v51 = vrot.slane %v1040_v37, 4 }
  0xd2   : > { %v1110_v18 = vor.u32 %v1109_v26, %v1106_v12  ;;  %v1035_v29 = vshll.u32 %v4003_v3, 16  ;;  %v1059_v37 = vshll.u32 %v4070_v57, 16 }
  0xd3   : > { %1290 = vrot.lane.b32.xlu0 %v1236_v58, %s3424_s12  ;;  %v1090_v58 = vrot.slane %v1088_v21, 4  ;;  %v1030_v24 = vor.u32 %v1029_v33, %v1026_v53  ;;  %v1018_v21 = vrot.slane %v1016_v16, 4  ;;  %v1098_v15 = vrot.slane %v1096_v1, 4  ;;  %v860_v16 = vld [vmem:[%s5094_s4 + $0x8] sm:$0xf] }
  0xd4   : > { %v1032_v53 = vshrl.u32 %v4003_v3, 16  ;;  %v1125_v3 = vrot.slane %v1123_v41, 5  ;;  %v1037_v12 = vrot.slane %v1035_v29, 5  ;;  %v1072_v29 = vshrl.u32 %v4094_v39, 16 }
  0xd5   : > { %1322 = vrot.lane.b32.xlu1 %v1260_v61, %s3424_s12  ;;  %v5145_v61 = vrot.slane %v3996_v40, 5  ;;  %v1022_v33 = vor.u32 %v1021_v13, %v1018_v21 }
  0xd7   : > { %1294 = vrot.lane.b32.xlu0 %v1239_v42, %s3424_s12  ;;  %v1739_v25 = vsel %vm1215_vm3, %v5145_v61, %v1738_v47  ;;  %v1094_v42 = vor.u32 %v1093_v30, %v1090_v58  ;;  %v1120_v47 = vshrl.u32 %v3897_v22, 16  ;;  %v858_v58 = vld [vmem:[%s5094_s4] sm:$0xf]  ;;  %v859_v30 = vld [vmem:[%s5094_s4 + $0x4] sm:$0xf] }
  0xd8   : > { %v2965_v61 = vcombine.low %v859_v30, %v860_v16  ;;  %v1128_v16 = vshrl.u32 %v3946_v11, 16 }
  0xd9   : > { %1326 = vrot.lane.b32.xlu1 %v1263_v32, %s3424_s12  ;;  %v1045_v32 = vrot.slane %v1043_v48, 5  ;;  %v1122_v0 = vrot.slane %v1120_v47, 4  ;;  %v1034_v48 = vrot.slane %v1032_v53, 4  ;;  %v1725_v47 = vshrl.u32 %v3996_v40, 16 }
  0xda   : > { %v1773_v26 = vrot.slane %v2965_v61, 2 }
  0xdb   : > { %1153 = vrot.lane.b32.xlu0 %v1086_v5, %s3425_s13  ;;  %v1101_v5 = vrot.slane %v1099_v38, 5  ;;  %v1046_v22 = vor.u32 %v1045_v32, %v1042_v51  ;;  %v1112_v38 = vshrl.u32 %v4042_v36, 16  ;;  %v1126_v51 = vor.u32 %v1125_v3, %v1122_v0 }
  0xdc   : > { %3355 = vmatprep.subr.msk.bf16.mxu1 %vm1823_vm4, %v1773_v26  ;;  %v1825_v21 = vsel %vm1823_vm4, %v1773_v26, 0  ;;  %v1038_v32 = vor.u32 %v1037_v12, %v1034_v48  ;;  %3354 = vmatprep.subr.msk.bf16.mxu0 %vm1823_vm4, %v1773_v26  ;;  %v1131_v3 = vshll.u32 %v3946_v11, 16  ;;  %v4192_v48 = vld [vmem:[#allocation2 + $0x1a0] sm:$0xf]  ;;  %v4194_v12 = vld [vmem:[#allocation2 + $0x1a4] sm:$0xf] }
  0xdd   : > { %1742 = vrot.lane.b32.xlu1 %v1739_v25, %s3424_s12  ;;  %v1056_v25 = vshrl.u32 %v4070_v57, 16  ;;  %v1102_v1 = vor.u32 %v1101_v5, %v1098_v15  ;;  %v1061_v57 = vrot.slane %v1059_v37, 5  ;;  %3353 = vmatpush3.bf16.msra.mxu1 %v1825_v21  ;;  %v1048_v15 = vshrl.u32 %v4056_v2, 16 }
  0xde   : > { %v1051_v5 = vshll.u32 %v4056_v2, 16  ;;  %3251 = vmatpush3.bf16.msra.mxu0 %v1825_v21 }
  0xdf   : > { %1139 = vrot.lane.b32.xlu0 %v1030_v24, %s3425_s13  ;;  %v2982_v24 = vcombine.low %v858_v58, %v859_v30  ;;  %v1058_v13 = vrot.slane %v1056_v25, 4  ;;  %v1075_v30 = vshll.u32 %v4094_v39, 16  ;;  %v1050_v2 = vrot.slane %v1048_v15, 4 }
  0xe0   : > { %v1053_v61 = vrot.slane %v1051_v5, 5  ;;  %v1074_v25 = vrot.slane %v1072_v29, 4 }
  0xe1   : > { %1155 = vrot.lane.b32.xlu1 %v1094_v42, %s3425_s13  ;;  %v1115_v42 = vshll.u32 %v4042_v36, 16  ;;  %3356 = vmatprep.subr.msk.bf16.mxu1 %vm1823_vm4, %v2982_v24  ;;  %v1114_v36 = vrot.slane %v1112_v38, 4  ;;  %v1062_v53 = vor.u32 %v1061_v57, %v1058_v13  ;;  %v1130_v38 = vrot.slane %v1128_v16, 4 }
  0xe2   : > { %v4197_v21 = vsel %vm1823_vm4, %v2982_v24, 0  ;;  %v1054_v11 = vor.u32 %v1053_v61, %v1050_v2  ;;  %v1133_v13 = vrot.slane %v1131_v3, 5  ;;  %v1064_v57 = vshrl.u32 %v4082_v19, 16 }
  0xe3   : > { %1159 = vrot.lane.b32.xlu0 %v1110_v18, %s3425_s13  ;;  %v1728_v18 = vshll.u32 %v3996_v40, 16  ;;  %v1117_v41 = vrot.slane %v1115_v42, 5  ;;  %v1727_v40 = vrot.slane %v1725_v47, 4  ;;  %v3401_v42 = vld [vmem:[#allocation2 + $0xd0] ss:$0 sps:$4 sm:$0xff]   ;;  %5146 = vst [vmem:[#allocation17_spill] sm:$0xff] %v4197_v21  ;;  %v3001_v47 = vcombine.low %v4192_v48, %v4194_v12 }
  0xe4   : > { %v1241_v15 = vrot.slane %v3401_v42, 5  ;;  %v1066_v5 = vrot.slane %v1064_v57, 4 }
  0xe5   : > { %1137 = vrot.lane.b32.xlu1 %v1022_v33, %s3425_s13  ;;  %v4181_v33 = vld [vmem:[#allocation2 + $0x8] sm:$0xf]  ;;  %v1730_v58 = vrot.slane %v1728_v18, 5  ;;  %v1118_v0 = vor.u32 %v1117_v41, %v1114_v36  ;;  %v1134_v41 = vor.u32 %v1133_v13, %v1130_v38  ;;  %v2171_v29 = vshll.u32 %v3001_v47, 16 }
  0xe6   : > { %v3405_v38 = vld [vmem:[#allocation2 + $0x1a8] ss:$0 sps:$4 sm:$0xff]   ;;  %v2180_v13 = vrot.slane %v3001_v47, 5 }
  0xe7   : > { %1143 = vrot.lane.b32.xlu0 %v1046_v22, %s3425_s13  ;;  %v4185_v22 = vld [vmem:[#allocation2 + $0xc] sm:$0xf]  ;;  %v1731_v26 = vor.u32 %v1730_v58, %v1727_v40 }
  0xe8   : > { %v2929_v37 = vcombine.low %v4181_v33, %v4185_v22 }
  0xe9   : > { %1157 = vrot.lane.b32.xlu1 %v1102_v1, %s3425_s13  ;;  %v1077_v1 = vrot.slane %v1075_v30, 5  ;;  %v3403_v30 = vld [vmem:[#allocation2 + $0x10] ss:$0 sps:$4 sm:$0xff]  }
  0xea   : > { %v1008_v18 = vshrl.u32 %v2929_v37, 16  ;;  %v1011_v24 = vshll.u32 %v2929_v37, 16  ;;  %v1216_v3 = vrot.slane %v2929_v37, 5  ;;  %v1217_v42 = vrot.slane %v3403_v30, 5 }
  0xeb   : > { %1163 = vrot.lane.b32.xlu0 %v1126_v51, %s3425_s13  ;;  %v1067_v51 = vshll.u32 %v4082_v19, 16  ;;  %v1078_v36 = vor.u32 %v1077_v1, %v1074_v25 }
  0xec   : > { %v1010_v40 = vrot.slane %v1008_v18, 4  ;;  %v1013_v58 = vrot.slane %v1011_v24, 5  ;;  %v1218_v57 = vsel %vm1215_vm3, %v1216_v3, %v1217_v42 }
  0xed   : > { %1141 = vrot.lane.b32.xlu1 %v1038_v32, %s3425_s13  ;;  %v3408_v32 = vld [vmem:[%s5094_s4 + $0xc] sm:$0x3f]   ;;  %v1069_v19 = vrot.slane %v1067_v51, 5 }
  0xee   : > { %3357 = vmatprep.subr.msk.bf16.mxu0 %vm1823_vm4, %v3408_v32  ;;  %v4212_v16 = vsel %vm1823_vm4, %v3408_v32, 0  ;;  %v1014_v1 = vor.u32 %v1013_v58, %v1010_v40 }
  0xef   : > { %1147 = vrot.lane.b32.xlu0 %v1062_v53, %s3425_s13  ;;  %v2168_v53 = vshrl.u32 %v3001_v47, 16  ;;  %5147 = vst [vmem:[#allocation18_spill] sm:$0xff] %v4212_v16  ;;  %v1070_v61 = vor.u32 %v1069_v19, %v1066_v5  ;;  %v4294_v16 = vld [vmem:[#allocation2 + $0x64] sm:$0xf] }
  0xf1   : > { %1161 = vrot.lane.b32.xlu1 %v1118_v0, %s3425_s13  ;;  %v5148_v0 = vrot.slane %v4094_v39, 5  ;;  %v2170_v25 = vrot.slane %v2168_v53, 4  ;;  %v2181_v39 = vrot.slane %v3405_v38, 5 }
  0xf3   : > { %1732 = vrot.lane.b32.xlu0 %v1731_v26, %s3425_s13  ;;  %v1242_v2 = vsel %vm1215_vm3, %v5148_v0, %v1241_v15  ;;  %v2173_v26 = vrot.slane %v2171_v29, 5  ;;  %v2182_v37 = vsel %vm1215_vm3, %v2180_v13, %v2181_v39  ;;  %v822_v39 = vld [vmem:[#allocation2 + $0xdc] sm:$0xf] }
  0xf5   : > { %1145 = vrot.lane.b32.xlu1 %v1054_v11, %s3425_s13  ;;  %v2174_v11 = vor.u32 %v2173_v26, %v2170_v25 }
  0xf7   : > { %1151 = vrot.lane.b32.xlu0 %v1078_v36, %s3425_s13 }
  0xf9   : > { %1165 = vrot.lane.b32.xlu1 %v1134_v41, %s3425_s13 }
  0xfb   : > { %1298 = vrot.lane.b32.xlu0 %v1242_v2, %s3424_s12 }
  0xfd   : > { %1149 = vrot.lane.b32.xlu1 %v1070_v61, %s3425_s13 }
  0xff   : > { %1264 = vrot.lane.b32.xlu0 %v1216_v3, %s3424_s12 }
 0x101   : > { %1135 = vrot.lane.b32.xlu1 %v1014_v1, %s3425_s13 }
 0x103   : > { %2175 = vrot.lane.b32.xlu0 %v2174_v11, %s3425_s13 }
 0x105   : > { %1266 = vrot.lane.b32.xlu1 %v1218_v57, %s3424_s12  ;;  %v4279_v57 = vld [vmem:[#allocation2 + $0xf4] sm:$0xf] }
 0x107   : > { %2185 = vrot.lane.b32.xlu0 %v2182_v37, %s3424_s12  ;;  %v4281_v37 = vld [vmem:[#allocation2 + $0x34] sm:$0xf] }
 0x109   : > { %2183 = vrot.lane.b32.xlu1 %v2180_v13, %s3424_s12 }
 0x111   : > { %v4227_v51 = vpop.permute.xlu0 %1304 }
 0x113   : > { %v4229_v32 = vpop.permute.xlu1 %1300 }
 0x115   : > { %v4231_v18 = vpop.permute.xlu0 %1312 }
 0x117   : > { %v4233_v47 = vpop.permute.xlu1 %1268 }
 0x119   : > { %v4235_v24 = vpop.permute.xlu0 %1320 }
 0x11a   : > { %5149 = vst [vmem:[#allocation19_spill] sm:$0xff] %v4235_v24  ;;  %v4332_v24 = vld [vmem:[#allocation2 + $0x184] sm:$0xf] }
 0x11b   : > { %v4237_v36 = vpop.permute.xlu1 %1272 }
 0x11d   : > { %v4239_v41 = vpop.permute.xlu0 %1324 }
 0x11e   : > { %5150 = vst [vmem:[#allocation20_spill] sm:$0xff] %v4239_v41 }
 0x11f   : > { %v4241_v15 = vpop.permute.xlu1 %1308 }
 0x120   : > { %5151 = vst [vmem:[#allocation21_spill] sm:$0xff] %v4241_v15  ;;  %v4346_v15 = vld [vmem:[#allocation2 + $0xc4] sm:$0xf] }
 0x121   : > { %v4243_v5 = vpop.permute.xlu0 %1740 }
 0x122   : > { %5152 = vst [vmem:[#allocation22_spill] sm:$0xff] %v4243_v5  ;;  %v2915_v5 = vcombine.low %v822_v39, %v3808_v8  ;;  %v4306_v8 = vld [vmem:[#allocation2 + $0x154] sm:$0xf]  ;;  %v4308_v39 = vld [vmem:[#allocation2 + $0x4c] sm:$0xf] }
 0x123   : > { %v4245_v19 = vpop.permute.xlu1 %1276 }
 0x124   : > { %5153 = vst [vmem:[#allocation23_spill] sm:$0xff] %v4245_v19  ;;  %v4344_v19 = vld [vmem:[#allocation2 + $0x7c] sm:$0xf] }
 0x125   : > { %v4247_v53 = vpop.permute.xlu0 %1302 }
 0x127   : > { %v4249_v29 = vpop.permute.xlu1 %1280 }
 0x129   : > { %v4251_v40 = vpop.permute.xlu0 %1270 }
 0x12b   : > { %v4253_v58 = vpop.permute.xlu1 %1316 }
 0x12c   : > { %5154 = vst [vmem:[#allocation24_spill] sm:$0xff] %v4253_v58 }
 0x12d   : > { %v4255_v30 = vpop.permute.xlu0 %1274 }
 0x12f   : > { %v4257_v0 = vpop.permute.xlu1 %1284 }
 0x130   : > { %5155 = vst [vmem:[#allocation25_spill] sm:$0xff] %v4257_v0  ;;  %v4287_v0 = vld [vmem:[#allocation2 + $0x1c] sm:$0xf] }
 0x131   : > { %v4259_v2 = vpop.permute.xlu0 %1310 }
 0x132   : > { %5156 = vst [vmem:[#allocation26_spill] sm:$0xff] %v4259_v2 }
 0x133   : > { %v4261_v61 = vpop.permute.xlu1 %1288 }
 0x134   : > { %5157 = vst [vmem:[#allocation27_spill] sm:$0xff] %v4261_v61  ;;  %v4318_v61 = vld [vmem:[#allocation2 + $0x94] sm:$0xf] }
 0x135   : > { %v4263_v3 = vpop.permute.xlu0 %1278 }
 0x136   : > { %5158 = vst [vmem:[#allocation28_spill] sm:$0xff] %v4263_v3 }
 0x137   : > { %v4265_v25 = vpop.permute.xlu1 %1292 }
 0x138   : > { %5159 = vst [vmem:[#allocation29_spill] sm:$0xff] %v4265_v25  ;;  %v4285_v25 = vld [vmem:[#allocation2 + $0x124] sm:$0xf] }
 0x139   : > { %v4267_v26 = vpop.permute.xlu0 %1282 }
 0x13b   : > { %v4269_v1 = vpop.permute.xlu1 %1296 }
 0x13c   : > { %5160 = vst [vmem:[#allocation30_spill] sm:$0xff] %v4269_v1 }
 0x13d   : > { %v4271_v38 = vpop.permute.xlu0 %1318 }
 0x13e   : > { %5161 = vst [vmem:[#allocation31_spill] sm:$0xff] %v4271_v38  ;;  %v4296_v38 = vld [vmem:[#allocation2 + $0x10c] sm:$0xf] }
 0x13f   : > { %v4273_v42 = vpop.permute.xlu1 %1306 }
 0x141   : > { %v4275_v11 = vpop.permute.xlu0 %1286 }
 0x142   : > { %5162 = vst [vmem:[#allocation32_spill] sm:$0xff] %v4275_v11  ;;  %v2916_v11 = vcombine.low %v3822_v17, %v3822_v17 }
 0x143   : > { %v4277_v13 = vpop.permute.xlu1 %1314 }
 0x145   : > { %v4283_v41 = vpop.permute.xlu0 %1290 }
 0x146   : > { %5163 = vst [vmem:[#allocation33_spill] sm:$0xff] %v4283_v41 }
 0x147   : > { %v4289_v1 = vpop.permute.xlu1 %1322 }
 0x148   : > { %5164 = vst [vmem:[#allocation34_spill] sm:$0xff] %v4289_v1  ;;  %v4320_v1 = vld [vmem:[#allocation2 + $0x13c] sm:$0xf] }
 0x149   : > { %v4322_v3 = vpop.permute.xlu0 %1294 }
 0x14a   : > { %5165 = vst [vmem:[#allocation35_spill] sm:$0xff] %v4322_v3  ;;  %v4382_v3 = vld [vmem:[#allocation2 + $0x19c] sm:$0xf] }
 0x14b   : > { %v4334_v41 = vpop.permute.xlu1 %1326 }
 0x14c   : > { %5166 = vst [vmem:[#allocation36_spill] sm:$0xff] %v4334_v41  ;;  %v4354_v41 = vld [vmem:[#allocation2 + $0x16c] sm:$0xf] }
 0x14d   : > { %5167 = vst [vmem:[#allocation37_spill] sm:$0xff] %v4354_v41  ;;  %v1154_v58 = vpop.permute.xlu0 %1153 }
 0x14e   : > { %v1376_v21 = vsel %vm1328_vm5, %v2915_v5, %v1154_v58  ;;  %v1378_v28 = vsel %vm1328_vm5, %v2916_v11, %v1154_v58 }
 0x14f   : > { %v4372_v54 = vpop.permute.xlu1 %1742  ;;  %v1447_v10 = vsel %vm1409_vm6, %v1376_v21, %v4229_v32  ;;  %v1449_v17 = vsel %vm1409_vm6, %v1378_v28, %v4247_v53  ;;  %v5173_v28 = vcombine.low %v4281_v37, %v3899_v14 }
 0x150   : > { %v1610_v46 = vshrl.u32 %v1447_v10, 16  ;;  %v1613_v52 = vshll.u32 %v1447_v10, 16  ;;  %v1617_v41 = vshrl.u32 %v1449_v17, 16  ;;  %v1620_v2 = vshll.u32 %v1449_v17, 16 }
 0x151   : > { %v1140_v20 = vpop.permute.xlu0 %1139  ;;  %v5171_v17 = vcombine.low %v4279_v57, %v3804_v7 }
 0x152   : > { %v1612_v53 = vrot.slane %v1610_v46, 3  ;;  %v1615_v5 = vrot.slane %v1613_v52, 4  ;;  %v1619_v11 = vrot.slane %v1617_v41, 3  ;;  %v1622_v58 = vrot.slane %v1620_v2, 4 }
 0x153   : > { %v1156_v10 = vpop.permute.xlu1 %1155  ;;  %v1341_v32 = vsel %vm1328_vm5, %v5173_v28, %v1140_v20  ;;  %v5174_v52 = vcombine.low %v3901_v56, %v3901_v56 }
 0x154   : > { %v1381_v4 = vsel %vm1328_vm5, %v5171_v17, %v1156_v10  ;;  %v1383_v21 = vsel %vm1328_vm5, %v5172_v62, %v1156_v10  ;;  %v1419_v27 = vsel %vm1409_vm6, %v1341_v32, %v4237_v36 }
 0x155   : > { %v1343_v46 = vsel %vm1328_vm5, %v5174_v52, %v1140_v20  ;;  %v1451_v7 = vsel %vm1409_vm6, %v1381_v4, %v4227_v51  ;;  %v1453_v41 = vsel %vm1409_vm6, %v1383_v21, %v4273_v42  ;;  %v1160_v37 = vpop.permute.xlu0 %1159  ;;  %v1505_v20 = vshrl.u32 %v1419_v27, 16 }
 0x156   : > { %v1421_v14 = vsel %vm1409_vm6, %v1343_v46, %v4255_v30  ;;  %v1625_v62 = vshrl.u32 %v1451_v7, 16  ;;  %v1628_v2 = vshll.u32 %v1451_v7, 16  ;;  %v1632_v57 = vshrl.u32 %v1453_v41, 16 }
 0x157   : > { %v1635_v56 = vshll.u32 %v1453_v41, 16  ;;  %v1508_v28 = vshll.u32 %v1419_v27, 16  ;;  %v1512_v10 = vshrl.u32 %v1421_v14, 16  ;;  %v1515_v17 = vshll.u32 %v1421_v14, 16  ;;  %v1138_v46 = vpop.permute.xlu1 %1137 }
 0x158   : > { %v4424_v4 = vrot.slane %v1625_v62, 3  ;;  %v4426_v51 = vrot.slane %v1628_v2, 4  ;;  %v4428_v42 = vrot.slane %v1632_v57, 3  ;;  %v4432_v21 = vrot.slane %v1505_v20, 3 }
 0x159   : > { %v4430_v36 = vrot.slane %v1635_v56, 4  ;;  %v4434_v30 = vrot.slane %v1508_v28, 4  ;;  %v4436_v32 = vrot.slane %v1512_v10, 3  ;;  %v4438_v52 = vrot.slane %v1515_v17, 4 }
 0x15a   : > { %v1631_v7 = vor.u32 %v4426_v51, %v4424_v4  ;;  %v5175_v27 = vcombine.low %v4285_v25, %v3838_v43  ;;  %v5176_v62 = vcombine.low %v3840_v44, %v3840_v44  ;;  %v1144_v4 = vpop.permute.xlu0 %1143  ;;  %v5177_v44 = vcombine.low %v4287_v0, %v3842_v45 }
 0x15b   : > { %v1638_v41 = vor.u32 %v4430_v36, %v4428_v42  ;;  %v1511_v57 = vor.u32 %v4434_v30, %v4432_v21  ;;  %v1518_v56 = vor.u32 %v4438_v52, %v4436_v32  ;;  %v5178_v51 = vcombine.low %v3859_v49, %v3859_v49  ;;  %v5198_v52 = vld [vmem:[#allocation27_spill] sm:$0xff] }
 0x15c   : > { %v1391_v14 = vsel %vm1328_vm5, %v5175_v27, %v1160_v37  ;;  %v1393_v2 = vsel %vm1328_vm5, %v5176_v62, %v1160_v37  ;;  %v1336_v37 = vsel %vm1328_vm5, %v5177_v44, %v1138_v46  ;;  %v1616_v36 = vor.u32 %v1615_v5, %v1612_v53 }
 0x15d   : > { %v1459_v20 = vsel %vm1409_vm6, %v1391_v14, %v4231_v18  ;;  %v1461_v28 = vsel %vm1409_vm6, %v1393_v2, %v4277_v13  ;;  %v1338_v42 = vsel %vm1328_vm5, %v5178_v51, %v1138_v46  ;;  %v1623_v18 = vor.u32 %v1622_v58, %v1619_v11  ;;  %v1158_v11 = vpop.permute.xlu1 %1157 }
 0x15e   : > { %v1655_v43 = vshrl.u32 %v1459_v20, 16  ;;  %v1658_v25 = vshll.u32 %v1459_v20, 16  ;;  %v1662_v10 = vshrl.u32 %v1461_v28, 16  ;;  %v1665_v17 = vshll.u32 %v1461_v28, 16 }
 0x15f   : > { %v1415_v45 = vsel %vm1409_vm6, %v1336_v37, %v4233_v47  ;;  %v1417_v0 = vsel %vm1409_vm6, %v1338_v42, %v4251_v40  ;;  %v4481_v49 = vsel %vm1474_vm7, %v1616_v36, %v1623_v18  ;;  %v5179_v5 = vcombine.low %v4294_v16, %v4010_v50 }
 0x160   : > { %v4468_v27 = vrot.slane %v1655_v43, 3  ;;  %v4470_v13 = vrot.slane %v1658_v25, 4  ;;  %v4472_v14 = vrot.slane %v1662_v10, 3  ;;  %v4474_v62 = vrot.slane %v1665_v17, 4  ;;  %3268 = vmatprep.mubr.msk.bf16.mxu1 %vm1774_vm8, %v4481_v49 }
 0x161   : > { %v1351_v58 = vsel %vm1328_vm5, %v5179_v5, %v1144_v4  ;;  %v1490_v2 = vshrl.u32 %v1415_v45, 16  ;;  %v1493_v47 = vshll.u32 %v1415_v45, 16  ;;  %v1497_v40 = vshrl.u32 %v1417_v0, 16  ;;  %v1164_v45 = vpop.permute.xlu0 %1163 }
 0x162   : > { %v1661_v53 = vor.u32 %v4470_v13, %v4468_v27  ;;  %v1668_v46 = vor.u32 %v4474_v62, %v4472_v14  ;;  %v1500_v20 = vshll.u32 %v1417_v0, 16  ;;  %v5180_v28 = vcombine.low %v4012_v6, %v4012_v6  ;;  %v5211_v62 = vld [vmem:[#allocation22_spill] sm:$0xff] }
 0x163   : > { %v1427_v16 = vsel %vm1409_vm6, %v1351_v58, %v4249_v29  ;;  %v4499_v43 = vrot.slane %v1490_v2, 3  ;;  %v4501_v25 = vrot.slane %v1493_v47, 4  ;;  %v4505_v44 = vrot.slane %v1497_v40, 3  ;;  %v5183_v58 = vld [vmem:[#allocation21_spill] sm:$0xff]  ;;  %v5184_v47 = vld [vmem:[#allocation26_spill] sm:$0xff] }
 0x164   : > { %v1353_v50 = vsel %vm1328_vm5, %v5180_v28, %v1144_v4  ;;  %v1535_v17 = vshrl.u32 %v1427_v16, 16  ;;  %v4507_v37 = vrot.slane %v1500_v20, 4  ;;  %v1538_v51 = vshll.u32 %v1427_v16, 16  ;;  %v1142_v20 = vpop.permute.xlu1 %1141 }
 0x165   : > { %v1429_v10 = vsel %vm1409_vm6, %v1353_v50, %v4267_v26  ;;  %v5181_v29 = vcombine.low %v4296_v38, %v3919_v59  ;;  %v5182_v18 = vcombine.low %v3930_v9, %v3930_v9  ;;  %v4532_v16 = vsel %vm1474_vm7, %v1631_v7, %v1638_v41 }
 0x166   : > { %v1542_v42 = vshrl.u32 %v1429_v10, 16  ;;  %v4509_v6 = vrot.slane %v1535_v17, 3  ;;  %v1545_v4 = vshll.u32 %v1429_v10, 16  ;;  %v4519_v0 = vrot.slane %v1538_v51, 4  ;;  %3269 = vmatmul.mubr.msk.bf16.vlgmr.msra.gmra.mxu1 %vm1774_vm8, %v4532_v16 }
 0x167   : > { %v1386_v36 = vsel %vm1328_vm5, %v5181_v29, %v1158_v11  ;;  %v1388_v26 = vsel %vm1328_vm5, %v5182_v18, %v1158_v11  ;;  %v5185_v10 = vcombine.low %v4306_v8, %v3890_v34  ;;  %v5186_v7 = vcombine.low %v3892_v35, %v3892_v35  ;;  %v5187_v8 = vld [vmem:[#allocation19_spill] sm:$0xff]  ;;  %v5188_v18 = vld [vmem:[#allocation8_spill] sm:$0xff] }
 0x168   : > { %v4521_v5 = vrot.slane %v1542_v42, 3  ;;  %v1455_v2 = vsel %vm1409_vm6, %v1386_v36, %v5183_v58  ;;  %v1457_v40 = vsel %vm1409_vm6, %v1388_v26, %v5184_v47  ;;  %v4527_v59 = vrot.slane %v1545_v4, 4 }
 0x169   : > { %v1640_v38 = vshrl.u32 %v1455_v2, 16  ;;  %v1643_v28 = vshll.u32 %v1455_v2, 16  ;;  %v1647_v50 = vshrl.u32 %v1457_v40, 16  ;;  %v1541_v9 = vor.u32 %v4519_v0, %v4509_v6  ;;  %v5190_v2 = vld [vmem:[#allocation17_spill] sm:$0xff] }
 0x16a   : > { %v1650_v11 = vshll.u32 %v1457_v40, 16  ;;  %v1401_v17 = vsel %vm1328_vm5, %v5185_v10, %v1164_v45  ;;  %v1548_v51 = vor.u32 %v4527_v59, %v4521_v5  ;;  %v1403_v34 = vsel %vm1328_vm5, %v5186_v7, %v1164_v45  ;;  %3285 = vmatpush3.bf16.msra.mxu1 %v5190_v2  ;;  %v5191_v40 = vld [vmem:[#allocation34_spill] sm:$0xff]  ;;  %v5192_v10 = vld [vmem:[#allocation9_spill] sm:$0xff]  ;;  %v1148_v7 = vpop.permute.xlu0 %1147  ;;  %v5219_v59 = vld [vmem:[#allocation16_spill] sm:$0xff] }
 0x16b   : > { %v4540_v42 = vrot.slane %v1640_v38, 3  ;;  %v4542_v4 = vrot.slane %v1643_v28, 4  ;;  %v4544_v29 = vrot.slane %v1647_v50, 3  ;;  %v1467_v41 = vsel %vm1409_vm6, %v1401_v17, %v5187_v8  ;;  %v1162_v8 = vpop.permute.xlu1 %1161 }
 0x16c   : > { %v4548_v36 = vrot.slane %v1650_v11, 4  ;;  %v5189_v26 = vcombine.low %v4308_v39, %v5188_v18  ;;  %v1469_v38 = vsel %vm1409_vm6, %v1403_v34, %v5191_v40  ;;  %v1685_v28 = vshrl.u32 %v1467_v41, 16 }
 0x16d   : > { %v1646_v47 = vor.u32 %v4542_v4, %v4540_v42  ;;  %v1688_v35 = vshll.u32 %v1467_v41, 16  ;;  %v1692_v50 = vshrl.u32 %v1469_v38, 16  ;;  %v1695_v11 = vshll.u32 %v1469_v38, 16  ;;  %v5194_v4 = vld [vmem:[#allocation23_spill] sm:$0xff]  ;;  %v5195_v41 = vld [vmem:[#allocation28_spill] sm:$0xff] }
 0x16e   : > { %v1346_v58 = vsel %vm1328_vm5, %v5189_v26, %v1142_v20  ;;  %v1653_v45 = vor.u32 %v4548_v36, %v4544_v29  ;;  %v5193_v39 = vcombine.low %v5192_v10, %v5192_v10  ;;  %v4571_v18 = vrot.slane %v1685_v28, 3  ;;  %v1733_v30 = vpop.permute.xlu0 %1732 }
 0x16f   : > { %v4573_v42 = vrot.slane %v1688_v35, 4  ;;  %v1423_v34 = vsel %vm1409_vm6, %v1346_v58, %v5194_v4  ;;  %v4579_v29 = vrot.slane %v1692_v50, 3  ;;  %v4581_v36 = vrot.slane %v1695_v11, 4 }
 0x170   : > { %v1348_v17 = vsel %vm1328_vm5, %v5193_v39, %v1142_v20  ;;  %v1520_v2 = vshrl.u32 %v1423_v34, 16  ;;  %v1523_v40 = vshll.u32 %v1423_v34, 16  ;;  %v1496_v35 = vor.u32 %v4501_v25, %v4499_v43 }
 0x171   : > { %v1425_v26 = vsel %vm1409_vm6, %v1348_v17, %v5195_v41  ;;  %v1691_v20 = vor.u32 %v4573_v42, %v4571_v18  ;;  %v1698_v58 = vor.u32 %v4581_v36, %v4579_v29  ;;  %v1503_v50 = vor.u32 %v4507_v37, %v4505_v44  ;;  %v5229_v29 = vld [vmem:[#allocation13_spill] sm:$0xff] }
 0x172   : > { %v1527_v38 = vshrl.u32 %v1425_v26, 16  ;;  %v1530_v28 = vshll.u32 %v1425_v26, 16  ;;  %v1522_v10 = vrot.slane %v1520_v2, 3  ;;  %v1525_v39 = vrot.slane %v1523_v40, 4 }
 0x173   : > { %v4598_v4 = vsel %vm1474_vm7, %v1511_v57, %v1518_v56  ;;  %v5196_v43 = vcombine.low %v4318_v61, %v4059_v63  ;;  %v4605_v41 = vsel %vm1474_vm7, %v1496_v35, %v1503_v50  ;;  %v5197_v44 = vcombine.low %v4061_v60, %v4061_v60  ;;  %v1146_v57 = vpop.permute.xlu1 %1145  ;;  %v5199_v63 = vld [vmem:[#allocation33_spill] sm:$0xff] }
 0x174   : > { %v1529_v11 = vrot.slane %v1527_v38, 3  ;;  %v1532_v17 = vrot.slane %v1530_v28, 4  ;;  %v1526_v34 = vor.u32 %v1525_v39, %v1522_v10  ;;  %3252 = vmatprep.mubr.msk.bf16.mxu0 %vm1774_vm8, %v4605_v41  ;;  %v5202_v28 = vld [vmem:[#allocation11_spill] sm:$0xff]  ;;  %v5220_v6 = vcombine.low %v5219_v59, %v5219_v59 }
 0x175   : > { %v1361_v25 = vsel %vm1328_vm5, %v5196_v43, %v1148_v7  ;;  %v1363_v32 = vsel %vm1328_vm5, %v5197_v44, %v1148_v7  ;;  %3253 = vmatmul.mubr.msk.bf16.vlgmr.msra.gmra.mxu0 %vm1774_vm8, %v4598_v4  ;;  %v5200_v7 = vld [vmem:[#allocation10_spill] sm:$0xff]  ;;  %v5203_v35 = vcombine.low %v5202_v28, %v5202_v28  ;;  %v5205_v43 = vld [vmem:[#allocation31_spill] sm:$0xff]  ;;  %v5230_v36 = vcombine.low %v4362_v23, %v5229_v29 }
 0x176   : > { %v1435_v21 = vsel %vm1409_vm6, %v1361_v25, %v5198_v52  ;;  %v1533_v56 = vor.u32 %v1532_v17, %v1529_v11  ;;  %v1437_v61 = vsel %vm1409_vm6, %v1363_v32, %v5199_v63  ;;  %v5201_v40 = vcombine.low %v4320_v1, %v5200_v7  ;;  %v5204_v11 = vld [vmem:[#allocation24_spill] sm:$0xff]  ;;  %v5206_v44 = vld [vmem:[#allocation18_spill] sm:$0xff] }
 0x177   : > { %v1565_v37 = vshrl.u32 %v1435_v21, 16  ;;  %v1568_v26 = vshll.u32 %v1435_v21, 16  ;;  %v1572_v60 = vshrl.u32 %v1437_v61, 16  ;;  %v1575_v2 = vshll.u32 %v1437_v61, 16  ;;  %3319 = vmatpush3.bf16.msra.mxu0 %v5206_v44  ;;  %v5207_v28 = vld [vmem:[#allocation6_spill] sm:$0xff] }
 0x178   : > { %v1396_v38 = vsel %vm1328_vm5, %v5201_v40, %v1162_v8  ;;  %v1398_v10 = vsel %vm1328_vm5, %v5203_v35, %v1162_v8  ;;  %v5208_v35 = vcombine.low %v4332_v24, %v5207_v28 }
 0x179   : > { %v4627_v39 = vrot.slane %v1565_v37, 3  ;;  %v4629_v50 = vrot.slane %v1568_v26, 4  ;;  %v1463_v17 = vsel %vm1409_vm6, %v1396_v38, %v5204_v11  ;;  %v1465_v25 = vsel %vm1409_vm6, %v1398_v10, %v5205_v43  ;;  %v5209_v11 = vld [vmem:[#allocation7_spill] sm:$0xff] }
 0x17a   : > { %v4636_v1 = vrot.slane %v1572_v60, 3  ;;  %v4638_v32 = vrot.slane %v1575_v2, 4  ;;  %v1670_v52 = vshrl.u32 %v1463_v17, 16  ;;  %v1673_v21 = vshll.u32 %v1463_v17, 16  ;;  %v1152_v2 = vpop.permute.xlu0 %1151  ;;  %v5212_v17 = vld [vmem:[#allocation12_spill] sm:$0xff] }
 0x17b   : > { %v1571_v8 = vor.u32 %v4629_v50, %v4627_v39  ;;  %v1677_v63 = vshrl.u32 %v1465_v25, 16  ;;  %v1680_v61 = vshll.u32 %v1465_v25, 16  ;;  %v4643_v37 = vsel %vm1474_vm7, %v1646_v47, %v1653_v45  ;;  %v1166_v47 = vpop.permute.xlu1 %1165 }
 0x17c   : > { %v1578_v26 = vor.u32 %v4638_v32, %v4636_v1  ;;  %v1672_v7 = vrot.slane %v1670_v52, 3  ;;  %v1675_v40 = vrot.slane %v1673_v21, 4  ;;  %3272 = vmatprep.mubr.msk.bf16.mxu1 %vm1774_vm8, %v4643_v37  ;;  %v4656_v60 = vsel %vm1474_vm7, %v1661_v53, %v1668_v46 }
 0x17d   : > { %v1679_v45 = vrot.slane %v1677_v63, 3  ;;  %v1682_v38 = vrot.slane %v1680_v61, 4  ;;  %3273 = vmatmul.mubr.msk.bf16.gmra.mxu1 %vm1774_vm8, %v4656_v60  ;;  %v1746_v10 = vsel %vm1328_vm5, %v5208_v35, %v1733_v30  ;;  %v5210_v14 = vcombine.low %v5209_v11, %v5209_v11 }
 0x17e   : > { %v1676_v13 = vor.u32 %v1675_v40, %v1672_v7  ;;  %v1750_v53 = vsel %vm1409_vm6, %v1746_v10, %v5211_v62  ;;  %v5213_v43 = vcombine.low %v4344_v19, %v5212_v17  ;;  %v5215_v7 = vld [vmem:[#allocation25_spill] sm:$0xff]  ;;  %v4706_v62 = vsel %vm1474_vm7, %v1541_v9, %v1548_v51  ;;  %v5221_v9 = vld [vmem:[#allocation30_spill] sm:$0xff] }
 0x17f   : > { %v1748_v27 = vsel %vm1328_vm5, %v5210_v14, %v1733_v30  ;;  %v1683_v24 = vor.u32 %v1682_v38, %v1679_v45  ;;  %v1753_v44 = vshrl.u32 %v1750_v53, 16  ;;  %v1756_v52 = vshll.u32 %v1750_v53, 16  ;;  %v5216_v38 = vld [vmem:[#allocation32_spill] sm:$0xff]  ;;  %v1299_v14 = vpop.permute.xlu0 %1298  ;;  %v5217_v53 = vld [vmem:[#allocation15_spill] sm:$0xff]  ;;  %v5222_v51 = vld [vmem:[#allocation37_spill] sm:$0xff] }
 0x180   : > { %v1752_v46 = vsel %vm1409_vm6, %v1748_v27, %v4372_v54  ;;  %v1356_v25 = vsel %vm1328_vm5, %v5213_v43, %v1146_v57  ;;  %v5214_v30 = vcombine.low %v4047_v55, %v4047_v55  ;;  %v4683_v54 = vsel %vm1474_vm7, %v1526_v34, %v1533_v56  ;;  %v1150_v34 = vpop.permute.xlu1 %1149 }
 0x181   : > { %v1760_v21 = vshrl.u32 %v1752_v46, 16  ;;  %v1763_v63 = vshll.u32 %v1752_v46, 16  ;;  %v1431_v40 = vsel %vm1409_vm6, %v1356_v25, %v5215_v7  ;;  %v4685_v28 = vrot.slane %v1753_v44, 3  ;;  %3256 = vmatprep.mubr.msk.bf16.mxu0 %vm1774_vm8, %v4683_v54 }
 0x182   : > { %v1358_v61 = vsel %vm1328_vm5, %v5214_v30, %v1146_v57  ;;  %v4687_v19 = vrot.slane %v1756_v52, 4  ;;  %v1550_v57 = vshrl.u32 %v1431_v40, 16  ;;  %v1553_v10 = vshll.u32 %v1431_v40, 16  ;;  %3257 = vmatmul.mubr.msk.bf16.gmra.mxu0 %vm1774_vm8, %v4706_v62 }
 0x183   : > { %v4689_v45 = vrot.slane %v1760_v21, 3  ;;  %v1433_v35 = vsel %vm1409_vm6, %v1358_v61, %v5216_v38  ;;  %v4695_v55 = vrot.slane %v1763_v63, 4  ;;  %v5218_v46 = vcombine.low %v4346_v15, %v5217_v53  ;;  %v5223_v21 = vld [vmem:[#allocation4_spill] sm:$0xff]  ;;  %v5225_v38 = vld [vmem:[#allocation5_spill] sm:$0xff] }
 0x184   : > { %v1557_v11 = vshrl.u32 %v1433_v35, 16  ;;  %v1759_v56 = vor.u32 %v4687_v19, %v4685_v28  ;;  %v1560_v27 = vshll.u32 %v1433_v35, 16  ;;  %v1552_v25 = vrot.slane %v1550_v57, 3 }
 0x185   : > { %v1371_v17 = vsel %vm1328_vm5, %v5218_v46, %v1152_v2  ;;  %v1766_v43 = vor.u32 %v4695_v55, %v4689_v45  ;;  %v1555_v44 = vrot.slane %v1553_v10, 4  ;;  %v1373_v0 = vsel %vm1328_vm5, %v5220_v6, %v1152_v2  ;;  %v1136_v6 = vpop.permute.xlu1 %1135 }
 0x186   : > { %v1559_v52 = vrot.slane %v1557_v11, 3  ;;  %v1562_v5 = vrot.slane %v1560_v27, 4  ;;  %v1443_v15 = vsel %vm1409_vm6, %v1371_v17, %v5221_v9  ;;  %v5224_v63 = vcombine.low %v5222_v51, %v5223_v21  ;;  %v5227_v11 = vld [vmem:[#allocation20_spill] sm:$0xff]  ;;  %v1265_v9 = vpop.permute.xlu0 %1264 }
 0x187   : > { %v1556_v61 = vor.u32 %v1555_v44, %v1552_v25  ;;  %v1595_v7 = vshrl.u32 %v1443_v15, 16  ;;  %v1598_v40 = vshll.u32 %v1443_v15, 16  ;;  %v5226_v35 = vcombine.low %v5225_v38, %v5225_v38  ;;  %v5228_v27 = vld [vmem:[#allocation36_spill] sm:$0xff] }
 0x188   : > { %v1406_v30 = vsel %vm1328_vm5, %v5224_v63, %v1166_v47  ;;  %v1563_v10 = vor.u32 %v1562_v5, %v1559_v52  ;;  %v4735_v46 = vsel %vm1474_vm7, %v1676_v13, %v1683_v24  ;;  %v4746_v13 = vsel %vm1474_vm7, %v1691_v20, %v1698_v58  ;;  %v5231_v58 = vld [vmem:[#allocation14_spill] sm:$0xff] }
 0x189   : > { %v1408_v57 = vsel %vm1328_vm5, %v5226_v35, %v1166_v47  ;;  %v1471_v2 = vsel %vm1409_vm6, %v1406_v30, %v5227_v11  ;;  %v1597_v17 = vrot.slane %v1595_v7, 3  ;;  %v1600_v59 = vrot.slane %v1598_v40, 4  ;;  %3276 = vmatprep.mubr.msk.bf16.mxu1 %vm1774_vm8, %v4735_v46  ;;  %v5233_v40 = vld [vmem:[#allocation29_spill] sm:$0xff] }
 0x18a   : > { %v1473_v53 = vsel %vm1409_vm6, %v1408_v57, %v5228_v27  ;;  %v1700_v25 = vshrl.u32 %v1471_v2, 16  ;;  %v1703_v44 = vshll.u32 %v1471_v2, 16  ;;  %v1445_v24 = vsel %vm1409_vm6, %v1373_v0, %v1299_v14  ;;  %3277 = vmatmul.mubr.msk.bf16.gmra.mxu1 %vm1774_vm8, %v4746_v13  ;;  %v2176_v35 = vpop.permute.xlu0 %2175  ;;  %v5234_v2 = vld [vmem:[#allocation35_spill] sm:$0xff] }
 0x18b   : > { %v1707_v47 = vshrl.u32 %v1473_v53, 16  ;;  %v1710_v52 = vshll.u32 %v1473_v53, 16  ;;  %v1601_v5 = vor.u32 %v1600_v59, %v1597_v17  ;;  %v1602_v21 = vshrl.u32 %v1445_v24, 16 }
 0x18c   : > { %v1702_v15 = vrot.slane %v1700_v25, 3  ;;  %v1705_v51 = vrot.slane %v1703_v44, 4  ;;  %v1605_v7 = vshll.u32 %v1445_v24, 16  ;;  %v1366_v18 = vsel %vm1328_vm5, %v5230_v36, %v1150_v34  ;;  %v1267_v44 = vpop.permute.xlu1 %1266 }
 0x18d   : > { %v1709_v63 = vrot.slane %v1707_v47, 3  ;;  %v1712_v30 = vrot.slane %v1710_v52, 4  ;;  %v1604_v20 = vrot.slane %v1602_v21, 3  ;;  %v5232_v14 = vcombine.low %v5231_v58, %v5231_v58 }
 0x18e   : > { %v1706_v42 = vor.u32 %v1705_v51, %v1702_v15  ;;  %v1439_v38 = vsel %vm1409_vm6, %v1366_v18, %v5233_v40  ;;  %v1607_v11 = vrot.slane %v1605_v7, 4  ;;  %v1564_v25 = vsel %vm1474_vm7, %v1556_v61, %v1563_v10 }
 0x18f   : > { %v1368_v0 = vsel %vm1328_vm5, %v5232_v14, %v1150_v34  ;;  %v1713_v57 = vor.u32 %v1712_v30, %v1709_v63  ;;  %v1580_v53 = vshrl.u32 %v1439_v38, 16  ;;  %v1583_v23 = vshll.u32 %v1439_v38, 16  ;;  %3260 = vmatprep.mubr.msk.bf16.mxu0 %vm1774_vm8, %v1564_v25 }
 0x190   : > { %v1441_v27 = vsel %vm1409_vm6, %v1368_v0, %v5234_v2  ;;  %v1608_v47 = vor.u32 %v1607_v11, %v1604_v20  ;;  %v1579_v34 = vsel %vm1474_vm7, %v1571_v8, %v1578_v26  ;;  %v5235_v24 = vcombine.low %v4380_v31, %v4181_v33 }
 0x191   : > { %v1587_v17 = vshrl.u32 %v1441_v27, 16  ;;  %v1590_v59 = vshll.u32 %v1441_v27, 16  ;;  %v1582_v52 = vrot.slane %v1580_v53, 3  ;;  %v1585_v51 = vrot.slane %v1583_v23, 4  ;;  %3261 = vmatmul.mubr.msk.bf16.gmra.mxu0 %vm1774_vm8, %v1579_v34 }
 0x192   : > { %v1331_v15 = vsel %vm1328_vm5, %v5235_v24, %v1136_v6  ;;  %v5236_v21 = vcombine.low %v4185_v22, %v4185_v22  ;;  %v4783_v39 = vsel %vm1474_vm7, %v1706_v42, %v1713_v57  ;;  %v4792_v31 = vsel %vm1474_vm7, %v1759_v56, %v1766_v43 }
 0x193   : > { %v1589_v61 = vrot.slane %v1587_v17, 3  ;;  %v1592_v10 = vrot.slane %v1590_v59, 4  ;;  %v1411_v32 = vsel %vm1409_vm6, %v1331_v15, %v1265_v9  ;;  %v1586_v50 = vor.u32 %v1585_v51, %v1582_v52  ;;  %3280 = vmatprep.mubr.msk.bf16.mxu1 %vm1774_vm8, %v4783_v39  ;;  %v2184_v9 = vpop.permute.xlu1 %2183 }
 0x194   : > { %v1333_v1 = vsel %vm1328_vm5, %v5236_v21, %v1136_v6  ;;  %v1475_v8 = vshrl.u32 %v1411_v32, 16  ;;  %v1478_v26 = vshll.u32 %v1411_v32, 16  ;;  %v2186_v6 = vpop.permute.xlu0 %2185  ;;  %3281 = vmatmul.mubr.msk.bf16.gmra.mxu1 %vm1774_vm8, %v4792_v31  ;;  %v1609_v28 = vsel %vm1474_vm7, %v1601_v5, %v1608_v47 }
 0x195   : > { %v1413_v33 = vsel %vm1409_vm6, %v1333_v1, %v1267_v44  ;;  %v1593_v22 = vor.u32 %v1592_v10, %v1589_v61  ;;  %v5237_v19 = vcombine.low %v4382_v3, %v4192_v48  ;;  %v5238_v7 = vcombine.low %v4194_v12, %v4194_v12 }
 0x196   : > { %v1482_v45 = vshrl.u32 %v1413_v33, 16  ;;  %v1485_v55 = vshll.u32 %v1413_v33, 16  ;;  %v1477_v43 = vrot.slane %v1475_v8, 3  ;;  %v1480_v63 = vrot.slane %v1478_v26, 4 }
 0x197   : > { %v2189_v56 = vsel %vm1328_vm5, %v5237_v19, %v2176_v35  ;;  %v1594_v30 = vsel %vm1474_vm7, %v1586_v50, %v1593_v22  ;;  %v2191_v29 = vsel %vm1328_vm5, %v5238_v7, %v2176_v35 }
 0x198   : > { %v1484_v36 = vrot.slane %v1482_v45, 3  ;;  %v1487_v18 = vrot.slane %v1485_v55, 4  ;;  %3264 = vmatprep.mubr.msk.bf16.mxu0 %vm1774_vm8, %v1594_v30  ;;  %v2195_v5 = vsel %vm1409_vm6, %v2191_v29, %v2186_v6  ;;  %v2193_v42 = vsel %vm1409_vm6, %v2189_v56, %v2184_v9 }
 0x199   : > { %v2203_v48 = vshrl.u32 %v2195_v5, 16  ;;  %v2206_v3 = vshll.u32 %v2195_v5, 16  ;;  %v2196_v20 = vshrl.u32 %v2193_v42, 16  ;;  %v1481_v58 = vor.u32 %v1480_v63, %v1477_v43  ;;  %3265 = vmatmul.mubr.msk.bf16.gmra.mxu0 %vm1774_vm8, %v1609_v28 }
 0x19a   : > { %v1488_v14 = vor.u32 %v1487_v18, %v1484_v36  ;;  %v2199_v0 = vshll.u32 %v2193_v42, 16  ;;  %3320 = vmatprep.mubr.msk.bf16.mxu0 %vm1774_vm8, %v4598_v4 }
 0x19b   : > { %v2205_v40 = vrot.slane %v2203_v48, 3  ;;  %v2208_v12 = vrot.slane %v2206_v3, 4  ;;  %v2198_v38 = vrot.slane %v2196_v20, 3 }
 0x19c   : > { %v1489_v35 = vsel %vm1474_vm7, %v1481_v58, %v1488_v14  ;;  %v2201_v57 = vrot.slane %v2199_v0, 4 }
 0x19d   : > { %3286 = vmatprep.mubr.msk.bf16.mxu1 %vm1774_vm8, %v1489_v35  ;;  %v2209_v11 = vor.u32 %v2208_v12, %v2205_v40 }
 0x19e   : > { %3287 = vmatmul.mubr.msk.bf16.vlgmr.msra.gmra.mxu1 %vm1774_vm8, %v4605_v41  ;;  %v2202_v2 = vor.u32 %v2201_v57, %v2198_v38 }
 0x19f   : > { %3290 = vmatprep.mubr.msk.bf16.mxu1 %vm1774_vm8, %v4598_v4 }
 0x1a0   : > { %v2210_v27 = vsel %vm1474_vm7, %v2202_v2, %v2209_v11 }
 0x1a1   : > { %3321 = vmatmul.mubr.msk.bf16.vlgmr.msra.gmra.mxu0 %vm1774_vm8, %v4683_v54 }
 0x1a2   : > { %3324 = vmatprep.mubr.msk.bf16.mxu0 %vm1774_vm8, %v4706_v62 }
 0x1a6   : > { %3291 = vmatmul.mubr.msk.bf16.gmra.mxu1 %vm1774_vm8, %v4683_v54 }
 0x1a7   : > { %3294 = vmatprep.mubr.msk.bf16.mxu1 %vm1774_vm8, %v4706_v62 }
 0x1a9   : > { %3325 = vmatmul.mubr.msk.bf16.gmra.mxu0 %vm1774_vm8, %v1564_v25 }
 0x1aa   : > { %3328 = vmatprep.mubr.msk.bf16.mxu0 %vm1774_vm8, %v1579_v34 }
 0x1ae   : > { %3295 = vmatmul.mubr.msk.bf16.gmra.mxu1 %vm1774_vm8, %v1564_v25 }
 0x1af   : > { %3298 = vmatprep.mubr.msk.bf16.mxu1 %vm1774_vm8, %v1579_v34 }
 0x1b1   : > { %3329 = vmatmul.mubr.msk.bf16.gmra.mxu0 %vm1774_vm8, %v1594_v30 }
 0x1b2   : > { %3332 = vmatprep.mubr.msk.bf16.mxu0 %vm1774_vm8, %v1609_v28 }
 0x1b6   : > { %3299 = vmatmul.mubr.msk.bf16.gmra.mxu1 %vm1774_vm8, %v1594_v30 }
 0x1b7   : > { %3302 = vmatprep.mubr.msk.bf16.mxu1 %vm1774_vm8, %v1609_v28 }
 0x1b9   : > { %3333 = vmatmul.mubr.msk.bf16.gmra.mxu0 %vm1774_vm8, %v4481_v49 }
 0x1ba   : > { %3336 = vmatprep.mubr.msk.bf16.mxu0 %vm1774_vm8, %v4532_v16 }
 0x1be   : > { %3303 = vmatmul.mubr.msk.bf16.gmra.mxu1 %vm1774_vm8, %v4481_v49 }
 0x1bf   : > { %3306 = vmatprep.mubr.msk.bf16.mxu1 %vm1774_vm8, %v4532_v16 }
 0x1c1   : > { %3337 = vmatmul.mubr.msk.bf16.gmra.mxu0 %vm1774_vm8, %v4643_v37 }
 0x1c2   : > { %3340 = vmatprep.mubr.msk.bf16.mxu0 %vm1774_vm8, %v4656_v60 }
 0x1c6   : > { %3307 = vmatmul.mubr.msk.bf16.gmra.mxu1 %vm1774_vm8, %v4643_v37 }
 0x1c7   : > { %3310 = vmatprep.mubr.msk.bf16.mxu1 %vm1774_vm8, %v4656_v60 }
 0x1c9   : > { %3341 = vmatmul.mubr.msk.bf16.gmra.mxu0 %vm1774_vm8, %v4735_v46 }
 0x1ca   : > { %3344 = vmatprep.mubr.msk.bf16.mxu0 %vm1774_vm8, %v4746_v13 }
 0x1ce   : > { %3311 = vmatmul.mubr.msk.bf16.gmra.mxu1 %vm1774_vm8, %v4735_v46 }
 0x1cf   : > { %3314 = vmatprep.mubr.msk.bf16.mxu1 %vm1774_vm8, %v4746_v13 }
 0x1d1   : > { %3345 = vmatmul.mubr.msk.bf16.gmra.mxu0 %vm1774_vm8, %v4783_v39 }
 0x1d2   : > { %3348 = vmatprep.mubr.msk.bf16.mxu0 %vm1774_vm8, %v4792_v31 }
 0x1d6   : > { %3315 = vmatmul.mubr.msk.bf16.gmra.mxu1 %vm1774_vm8, %v4783_v39 }
 0x1d9   : > { %3349 = vmatmul.mubr.msk.bf16.gmra.mxu0 %vm1774_vm8, %v2210_v27 }
 0x226   : > { %v4869_v49 = vpop.f32.mrf.mxu1 }
 0x228   : > { %v4871_v16 = vpop.f32.mrf.mxu1 }
 0x22a   : > { %v4873_v4 = vpop.f32.mrf.mxu1 }
 0x22c   : > { %v4875_v37 = vpop.f32.mrf.mxu1 }
 0x235   : > { %v3254_v41 = vpop.f32.mrf.mxu0 }
 0x237   : > { %v1861_v60 = vpop.f32.mrf.mxu0 }
 0x239   : > { %v3255_v54 = vpop.f32.mrf.mxu0 }
 0x23b   : > { %v1864_v13 = vpop.f32.mrf.mxu0 }
 0x23d   : > { %v4877_v62 = vpop.f32.mrf.mxu1 }
 0x23f   : > { %v4879_v46 = vpop.f32.mrf.mxu1 }
 0x241   : > { %v4881_v53 = vpop.f32.mrf.mxu1 }
 0x242   : > { %v3258_v23 = vpop.f32.mrf.mxu0 }
 0x243   : > { %v4883_v59 = vpop.f32.mrf.mxu1 }
 0x244   : > { %v1877_v17 = vpop.f32.mrf.mxu0 }
 0x246   : > { %v3259_v25 = vpop.f32.mrf.mxu0 }
 0x248   : > { %v4887_v47 = vpop.f32.mrf.mxu0 }
 0x24a   : > { %v4885_v44 = vpop.f32.mrf.mxu1 }
 0x24c   : > { %v4889_v52 = vpop.f32.mrf.mxu1 }
 0x24e   : > { %v4891_v34 = vpop.f32.mrf.mxu1 }
 0x250   : > { %v4895_v15 = vpop.f32.mrf.mxu1 }
 0x251   : > { %v4893_v24 = vpop.f32.mrf.mxu0 }
 0x253   : > { %v4897_v51 = vpop.f32.mrf.mxu0 }
 0x254   : > { %v4899_v61 = vpop.f32.mrf.mxu1 }
 0x255   : > { %v4901_v10 = vpop.f32.mrf.mxu0 }
 0x256   : > { %v4903_v21 = vpop.f32.mrf.mxu1 }
 0x257   : > { %v4905_v1 = vpop.f32.mrf.mxu0 }
 0x258   : > { %v4907_v32 = vpop.f32.mrf.mxu1 }
 0x259   : > { %v4909_v39 = vpop.f32.mrf.mxu0 }
 0x25a   : > { %v4911_v31 = vpop.f32.mrf.mxu1 }
 0x25b   : > { %v4913_v33 = vpop.f32.mrf.mxu0 }
 0x25d   : > { %v4915_v22 = vpop.f32.mrf.mxu0 }
 0x25e   : > { %v3288_v50 = vpop.f32.mrf.mxu1 }
 0x25f   : > { %v2040_v8 = vadd.f32 %v3288_v50, %v3254_v41  ;;  %v4917_v6 = vpop.f32.mrf.mxu0 }
 0x260   : > { %v2031_v26 = vpop.f32.mrf.mxu1 }
 0x261   : > { %v2032_v9 = vadd.f32 %v2031_v26, %v1861_v60  ;;  %v3322_v55 = vpop.f32.mrf.mxu0 }
 0x262   : > { %v3289_v45 = vpop.f32.mrf.mxu1  ;;  %v2385_v28 = vadd.f32 %v3322_v55, %v2040_v8 }
 0x263   : > { %v2256_v56 = vpop.f32.mrf.mxu0  ;;  %v2043_v43 = vadd.f32 %v3289_v45, %v3255_v54 }
 0x264   : > { %v2034_v19 = vpop.f32.mrf.mxu1  ;;  %v3090_v63 = vpack.c.bf16 %v2385_v28, %v2385_v28  ;;  %v2383_v30 = vadd.f32 %v2256_v56, %v2032_v9  ;;  %v2648_v20 = vmul.f32 %v2385_v28, %v2385_v28  ;;  %v2578_v54 = vsel %vm1328_vm5, %v2385_v28, 0.0 }
 0x265   : > { %v2035_v7 = vadd.f32 %v2034_v19, %v1864_v13  ;;  %v3323_v36 = vpop.f32.mrf.mxu0 }
 0x266   : > { %v3292_v29 = vpop.f32.mrf.mxu1  ;;  %2545 = vst.msk [vmem:[%s4924_s24 + $0x8] sm:$0xf] %vm299_vm0, %v3090_v63  ;;  %v3088_v18 = vpack.c.bf16 %v2383_v30, %v2383_v30  ;;  %v2386_v48 = vadd.f32 %v3323_v36, %v2043_v43  ;;  %v2646_v58 = vmul.f32 %v2383_v30, %v2383_v30  ;;  %v2575_v40 = vsel %vm1328_vm5, %v2383_v30, 0.0 }
 0x267   : > { %v2056_v5 = vadd.f32 %v3292_v29, %v3258_v23  ;;  %v2259_v3 = vpop.f32.mrf.mxu0  ;;  %v2681_v56 = vsel %vm1328_vm5, %v2648_v20, 0.0 }
 0x268   : > { %v2047_v42 = vpop.f32.mrf.mxu1  ;;  %2543 = vst.msk [vmem:[%s4924_s24] sm:$0xf] %vm299_vm0, %v3088_v18  ;;  %v2384_v14 = vadd.f32 %v2259_v3, %v2035_v7  ;;  %v3091_v12 = vpack.c.bf16 %v2386_v48, %v2386_v48  ;;  %v2678_v50 = vsel %vm1328_vm5, %v2646_v58, 0.0  ;;  %v2649_v8 = vmul.f32 %v2386_v48, %v2386_v48 }
 0x269   : > { %v3326_v38 = vpop.f32.mrf.mxu0  ;;  %v2048_v35 = vadd.f32 %v2047_v42, %v1877_v17  ;;  %v2580_v43 = vsel %vm1328_vm5, %v2386_v48, 0.0 }
 0x26a   : > { %v3293_v0 = vpop.f32.mrf.mxu1  ;;  %v3089_v11 = vpack.c.bf16 %v2384_v14, %v2384_v14  ;;  %v2576_v2 = vsel %vm1328_vm5, %v2384_v14, 0.0  ;;  %v2647_v27 = vmul.f32 %v2384_v14, %v2384_v14  ;;  %v2389_v41 = vadd.f32 %v3326_v38, %v2056_v5  ;;  %2546 = vst.msk [vmem:[%s4924_s24 + $0xc] sm:$0xf] %vm299_vm0, %v3091_v12 }
 0x26b   : > { %v2059_v57 = vadd.f32 %v3293_v0, %v3259_v25  ;;  %v2577_v13 = vadd.f32 %v2576_v2, %v2575_v40  ;;  %v2272_v23 = vpop.f32.mrf.mxu0  ;;  %v2683_v42 = vsel %vm1328_vm5, %v2649_v8, 0.0 }
 0x26c   : > { %v2050_v60 = vpop.f32.mrf.mxu1  ;;  %2544 = vst.msk [vmem:[%s4924_s24 + $0x4] sm:$0xf] %vm299_vm0, %v3089_v11  ;;  %v2679_v17 = vsel %vm1328_vm5, %v2647_v27, 0.0  ;;  %v3094_v25 = vpack.c.bf16 %v2389_v41, %v2389_v41  ;;  %v2387_v55 = vadd.f32 %v2272_v23, %v2048_v35  ;;  %v2652_v12 = vmul.f32 %v2389_v41, %v2389_v41 }
 0x26d   : > { %v2579_v9 = vadd.f32 %v2578_v54, %v2577_v13  ;;  %v2680_v45 = vadd.f32 %v2679_v17, %v2678_v50  ;;  %v3327_v19 = vpop.f32.mrf.mxu0  ;;  %v2051_v28 = vadd.f32 %v2050_v60, %v4887_v47  ;;  %v2586_v17 = vsel %vm1328_vm5, %v2389_v41, 0.0 }
 0x26e   : > { %v3296_v26 = vpop.f32.mrf.mxu1  ;;  %2549 = vst.msk [vmem:[%s4924_s24 + $0x18] sm:$0xf] %vm299_vm0, %v3094_v25  ;;  %v2390_v63 = vadd.f32 %v3327_v19, %v2059_v57  ;;  %v3092_v36 = vpack.c.bf16 %v2387_v55, %v2387_v55  ;;  %v2582_v47 = vsel %vm1328_vm5, %v2387_v55, 0.0  ;;  %v2650_v3 = vmul.f32 %v2387_v55, %v2387_v55 }
 0x26f   : > { %v2072_v30 = vadd.f32 %v3296_v26, %v4893_v24  ;;  %v2682_v29 = vadd.f32 %v2681_v56, %v2680_v45  ;;  %v2581_v18 = vadd.f32 %v2580_v43, %v2579_v9  ;;  %v2275_v5 = vpop.f32.mrf.mxu0  ;;  %v2689_v43 = vsel %vm1328_vm5, %v2652_v12, 0.0 }
 0x270   : > { %v2063_v7 = vpop.f32.mrf.mxu1  ;;  %v3095_v58 = vpack.c.bf16 %v2390_v63, %v2390_v63  ;;  %2547 = vst.msk [vmem:[%s4924_s24 + $0x10] sm:$0xf] %vm299_vm0, %v3092_v36  ;;  %v2388_v0 = vadd.f32 %v2275_v5, %v2051_v28  ;;  %v2685_v38 = vsel %vm1328_vm5, %v2650_v3, 0.0  ;;  %v2653_v23 = vmul.f32 %v2390_v63, %v2390_v63 }
 0x271   : > { %v2583_v48 = vadd.f32 %v2582_v47, %v2581_v18  ;;  %v2684_v14 = vadd.f32 %v2683_v42, %v2682_v29  ;;  %v3330_v40 = vpop.f32.mrf.mxu0  ;;  %v2064_v24 = vadd.f32 %v2063_v7, %v4897_v51  ;;  %v2588_v41 = vsel %vm1328_vm5, %v2390_v63, 0.0 }
 0x272   : > { %v3297_v20 = vpop.f32.mrf.mxu1  ;;  %2550 = vst.msk [vmem:[%s4924_s24 + $0x1c] sm:$0xf] %vm299_vm0, %v3095_v58  ;;  %v2393_v35 = vadd.f32 %v3330_v40, %v2072_v30  ;;  %v3093_v27 = vpack.c.bf16 %v2388_v0, %v2388_v0  ;;  %v2584_v60 = vsel %vm1328_vm5, %v2388_v0, 0.0  ;;  %v2651_v54 = vmul.f32 %v2388_v0, %v2388_v0 }
 0x273   : > { %v2075_v57 = vadd.f32 %v3297_v20, %v4901_v10  ;;  %v2686_v2 = vadd.f32 %v2685_v38, %v2684_v14  ;;  %v2288_v13 = vpop.f32.mrf.mxu0  ;;  %v2585_v50 = vadd.f32 %v2584_v60, %v2583_v48  ;;  %v2691_v36 = vsel %vm1328_vm5, %v2653_v23, 0.0 }
 0x274   : > { %v2066_v11 = vpop.f32.mrf.mxu1  ;;  %v3098_v51 = vpack.c.bf16 %v2393_v35, %v2393_v35  ;;  %2548 = vst.msk [vmem:[%s4924_s24 + $0x14] sm:$0xf] %vm299_vm0, %v3093_v27  ;;  %v2687_v25 = vsel %vm1328_vm5, %v2651_v54, 0.0  ;;  %v2391_v26 = vadd.f32 %v2288_v13, %v2064_v24  ;;  %v2656_v47 = vmul.f32 %v2393_v35, %v2393_v35 }
 0x275   : > { %v3331_v10 = vpop.f32.mrf.mxu0  ;;  %v2067_v9 = vadd.f32 %v2066_v11, %v4905_v1  ;;  %v2587_v45 = vadd.f32 %v2586_v17, %v2585_v50  ;;  %v2688_v55 = vadd.f32 %v2687_v25, %v2686_v2  ;;  %v2594_v13 = vsel %vm1328_vm5, %v2393_v35, 0.0 }
 0x276   : > { %v3300_v8 = vpop.f32.mrf.mxu1  ;;  %2553 = vst.msk [vmem:[%s4924_s24 + $0x28] sm:$0xf] %vm299_vm0, %v3098_v51  ;;  %v2394_v19 = vadd.f32 %v3331_v10, %v2075_v57  ;;  %v3096_v30 = vpack.c.bf16 %v2391_v26, %v2391_v26  ;;  %v2654_v7 = vmul.f32 %v2391_v26, %v2391_v26 }
 0x277   : > { %v2088_v28 = vadd.f32 %v3300_v8, %v4909_v39  ;;  %v2291_v29 = vpop.f32.mrf.mxu0  ;;  %v2690_v1 = vadd.f32 %v2689_v43, %v2688_v55  ;;  %v2589_v18 = vadd.f32 %v2588_v41, %v2587_v45  ;;  %v2590_v39 = vsel %vm1328_vm5, %v2391_v26, 0.0 }
 0x278   : > { %v2079_v56 = vpop.f32.mrf.mxu1  ;;  %v3099_v5 = vpack.c.bf16 %v2394_v19, %v2394_v19  ;;  %2551 = vst.msk [vmem:[%s4924_s24 + $0x20] sm:$0xf] %vm299_vm0, %v3096_v30  ;;  %v2392_v3 = vadd.f32 %v2291_v29, %v2067_v9  ;;  %v2693_v24 = vsel %vm1328_vm5, %v2654_v7, 0.0  ;;  %v2657_v27 = vmul.f32 %v2394_v19, %v2394_v19 }
 0x279   : > { %v3334_v58 = vpop.f32.mrf.mxu0  ;;  %v2080_v20 = vadd.f32 %v2079_v56, %v4913_v33  ;;  %v2591_v63 = vadd.f32 %v2590_v39, %v2589_v18  ;;  %v2692_v48 = vadd.f32 %v2691_v36, %v2690_v1  ;;  %v2697_v9 = vsel %vm1328_vm5, %v2656_v47, 0.0 }
 0x27a   : > { %v3301_v42 = vpop.f32.mrf.mxu1  ;;  %2554 = vst.msk [vmem:[%s4924_s24 + $0x2c] sm:$0xf] %vm299_vm0, %v3099_v5  ;;  %v2397_v14 = vadd.f32 %v3334_v58, %v2088_v28  ;;  %v3097_v12 = vpack.c.bf16 %v2392_v3, %v2392_v3  ;;  %v2592_v38 = vsel %vm1328_vm5, %v2392_v3, 0.0  ;;  %v2655_v57 = vmul.f32 %v2392_v3, %v2392_v3 }
 0x27b   : > { %v2091_v0 = vadd.f32 %v3301_v42, %v4915_v22  ;;  %v2304_v11 = vpop.f32.mrf.mxu0  ;;  %v2694_v2 = vadd.f32 %v2693_v24, %v2692_v48  ;;  %v2593_v33 = vadd.f32 %v2592_v38, %v2591_v63  ;;  %v2596_v35 = vsel %vm1328_vm5, %v2394_v19, 0.0 }
 0x27c   : > { %v2082_v40 = vpop.f32.mrf.mxu1  ;;  %v3102_v60 = vpack.c.bf16 %v2397_v14, %v2397_v14  ;;  %2552 = vst.msk [vmem:[%s4924_s24 + $0x24] sm:$0xf] %vm299_vm0, %v3097_v12  ;;  %v2695_v22 = vsel %vm1328_vm5, %v2655_v57, 0.0  ;;  %v2395_v23 = vadd.f32 %v2304_v11, %v2080_v20  ;;  %v2699_v56 = vsel %vm1328_vm5, %v2657_v27, 0.0 }
 0x27d   : > { %v3335_v50 = vpop.f32.mrf.mxu0  ;;  %v2083_v51 = vadd.f32 %v2082_v40, %v4917_v6  ;;  %v2595_v8 = vadd.f32 %v2594_v13, %v2593_v33  ;;  %v2696_v17 = vadd.f32 %v2695_v22, %v2694_v2  ;;  %v2660_v7 = vmul.f32 %v2397_v14, %v2397_v14 }
 0x27e   : > { %v3304_v54 = vpop.f32.mrf.mxu1  ;;  %2557 = vst.msk [vmem:[%s4924_s24 + $0x38] sm:$0xf] %vm299_vm0, %v3102_v60  ;;  %v2398_v25 = vadd.f32 %v3335_v50, %v2091_v0  ;;  %v3100_v45 = vpack.c.bf16 %v2395_v23, %v2395_v23  ;;  %v2658_v55 = vmul.f32 %v2395_v23, %v2395_v23  ;;  %v2602_v12 = vsel %vm1328_vm5, %v2397_v14, 0.0 }
 0x27f   : > { %v2104_v26 = vadd.f32 %v3304_v54, %v4869_v49  ;;  %v2307_v28 = vpop.f32.mrf.mxu0  ;;  %v2698_v6 = vadd.f32 %v2697_v9, %v2696_v17  ;;  %v2597_v43 = vadd.f32 %v2596_v35, %v2595_v8  ;;  %v2598_v49 = vsel %vm1328_vm5, %v2395_v23, 0.0 }
 0x280   : > { %v2095_v10 = vpop.f32.mrf.mxu1  ;;  %v3103_v41 = vpack.c.bf16 %v2398_v25, %v2398_v25  ;;  %2555 = vst.msk [vmem:[%s4924_s24 + $0x30] sm:$0xf] %vm299_vm0, %v3100_v45  ;;  %v2396_v29 = vadd.f32 %v2307_v28, %v2083_v51  ;;  %v2701_v39 = vsel %vm1328_vm5, %v2658_v55, 0.0  ;;  %v2661_v0 = vmul.f32 %v2398_v25, %v2398_v25 }
 0x281   : > { %v3338_v36 = vpop.f32.mrf.mxu0  ;;  %v2096_v1 = vadd.f32 %v2095_v10, %v4871_v16  ;;  %v2599_v19 = vadd.f32 %v2598_v49, %v2597_v43  ;;  %v2700_v18 = vadd.f32 %v2699_v56, %v2698_v6  ;;  %v2705_v13 = vsel %vm1328_vm5, %v2660_v7, 0.0 }
 0x282   : > { %v3305_v30 = vpop.f32.mrf.mxu1  ;;  %2558 = vst.msk [vmem:[%s4924_s24 + $0x3c] sm:$0xf] %vm299_vm0, %v3103_v41  ;;  %v2401_v5 = vadd.f32 %v3338_v36, %v2104_v26  ;;  %v3101_v3 = vpack.c.bf16 %v2396_v29, %v2396_v29  ;;  %v2600_v58 = vsel %vm1328_vm5, %v2396_v29, 0.0  ;;  %v2659_v20 = vmul.f32 %v2396_v29, %v2396_v29 }
 0x283   : > { %v2107_v42 = vadd.f32 %v3305_v30, %v4873_v4  ;;  %v2320_v63 = vpop.f32.mrf.mxu0  ;;  %v2702_v48 = vadd.f32 %v2701_v39, %v2700_v18  ;;  %v2601_v16 = vadd.f32 %v2600_v58, %v2599_v19  ;;  %v2604_v14 = vsel %vm1328_vm5, %v2398_v25, 0.0 }
 0x284   : > { %v2098_v47 = vpop.f32.mrf.mxu1  ;;  %v3106_v40 = vpack.c.bf16 %v2401_v5, %v2401_v5  ;;  %2556 = vst.msk [vmem:[%s4924_s24 + $0x34] sm:$0xf] %vm299_vm0, %v3101_v3  ;;  %v2703_v4 = vsel %vm1328_vm5, %v2659_v20, 0.0  ;;  %v2399_v38 = vadd.f32 %v2320_v63, %v2096_v1  ;;  %v2707_v51 = vsel %vm1328_vm5, %v2661_v0, 0.0 }
 0x285   : > { %v3339_v57 = vpop.f32.mrf.mxu0  ;;  %v2099_v11 = vadd.f32 %v2098_v47, %v4875_v37  ;;  %v2603_v2 = vadd.f32 %v2602_v12, %v2601_v16  ;;  %v2704_v27 = vadd.f32 %v2703_v4, %v2702_v48  ;;  %v2664_v10 = vmul.f32 %v2401_v5, %v2401_v5 }
 0x286   : > { %v3308_v24 = vpop.f32.mrf.mxu1  ;;  %2561 = vst.msk [vmem:[%s4924_s24 + $0x48] sm:$0xf] %vm299_vm0, %v3106_v40  ;;  %v2402_v33 = vadd.f32 %v3339_v57, %v2107_v42  ;;  %v3104_v22 = vpack.c.bf16 %v2399_v38, %v2399_v38  ;;  %v2662_v23 = vmul.f32 %v2399_v38, %v2399_v38  ;;  %v2610_v18 = vsel %vm1328_vm5, %v2401_v5, 0.0 }
 0x287   : > { %v2120_v60 = vadd.f32 %v3308_v24, %v4877_v62  ;;  %v2323_v50 = vpop.f32.mrf.mxu0  ;;  %v2706_v37 = vadd.f32 %v2705_v13, %v2704_v27  ;;  %v2605_v8 = vadd.f32 %v2604_v14, %v2603_v2  ;;  %v2606_v62 = vsel %vm1328_vm5, %v2399_v38, 0.0 }
 0x288   : > { %v2111_v54 = vpop.f32.mrf.mxu1  ;;  %v3107_v17 = vpack.c.bf16 %v2402_v33, %v2402_v33  ;;  %2559 = vst.msk [vmem:[%s4924_s24 + $0x40] sm:$0xf] %vm299_vm0, %v3104_v22  ;;  %v2400_v9 = vadd.f32 %v2323_v50, %v2099_v11  ;;  %v2709_v43 = vsel %vm1328_vm5, %v2662_v23, 0.0  ;;  %v2665_v36 = vmul.f32 %v2402_v33, %v2402_v33 }
 0x289   : > { %v3342_v35 = vpop.f32.mrf.mxu0  ;;  %v2112_v45 = vadd.f32 %v2111_v54, %v4879_v46  ;;  %v2607_v25 = vadd.f32 %v2606_v62, %v2605_v8  ;;  %v2708_v55 = vadd.f32 %v2707_v51, %v2706_v37  ;;  %v2713_v0 = vsel %vm1328_vm5, %v2664_v10, 0.0 }
 0x28a   : > { %v3309_v26 = vpop.f32.mrf.mxu1  ;;  %2562 = vst.msk [vmem:[%s4924_s24 + $0x4c] sm:$0xf] %vm299_vm0, %v3107_v17  ;;  %v2405_v28 = vadd.f32 %v3342_v35, %v2120_v60  ;;  %v3105_v41 = vpack.c.bf16 %v2400_v9, %v2400_v9  ;;  %v2608_v30 = vsel %vm1328_vm5, %v2400_v9, 0.0  ;;  %v2663_v7 = vmul.f32 %v2400_v9, %v2400_v9 }
 0x28b   : > { %v2123_v56 = vadd.f32 %v3309_v26, %v4881_v53  ;;  %v2336_v49 = vpop.f32.mrf.mxu0  ;;  %v2710_v29 = vadd.f32 %v2709_v43, %v2708_v55  ;;  %v2609_v46 = vadd.f32 %v2608_v30, %v2607_v25  ;;  %v2612_v5 = vsel %vm1328_vm5, %v2402_v33, 0.0 }
 0x28c   : > { %v2114_v6 = vpop.f32.mrf.mxu1  ;;  %v3110_v1 = vpack.c.bf16 %v2405_v28, %v2405_v28  ;;  %2560 = vst.msk [vmem:[%s4924_s24 + $0x44] sm:$0xf] %vm299_vm0, %v3105_v41  ;;  %v2711_v53 = vsel %vm1328_vm5, %v2663_v7, 0.0  ;;  %v2403_v42 = vadd.f32 %v2336_v49, %v2112_v45  ;;  %v2715_v12 = vsel %vm1328_vm5, %v2665_v36, 0.0 }
 0x28d   : > { %v3343_v47 = vpop.f32.mrf.mxu0  ;;  %v2115_v39 = vadd.f32 %v2114_v6, %v4883_v59  ;;  %v2611_v3 = vadd.f32 %v2610_v18, %v2609_v46  ;;  %v2712_v58 = vadd.f32 %v2711_v53, %v2710_v29  ;;  %v2668_v11 = vmul.f32 %v2405_v28, %v2405_v28 }
 0x28e   : > { %v3312_v19 = vpop.f32.mrf.mxu1  ;;  %2565 = vst.msk [vmem:[%s4924_s24 + $0x58] sm:$0xf] %vm299_vm0, %v3110_v1  ;;  %v2406_v20 = vadd.f32 %v3343_v47, %v2123_v56  ;;  %v3108_v16 = vpack.c.bf16 %v2403_v42, %v2403_v42  ;;  %v2666_v40 = vmul.f32 %v2403_v42, %v2403_v42  ;;  %v2618_v9 = vsel %vm1328_vm5, %v2405_v28, 0.0 }
 0x28f   : > { %v2136_v63 = vadd.f32 %v3312_v19, %v4885_v44  ;;  %v2339_v24 = vpop.f32.mrf.mxu0  ;;  %v2714_v59 = vadd.f32 %v2713_v0, %v2712_v58  ;;  %v2613_v4 = vadd.f32 %v2612_v5, %v2611_v3  ;;  %v2614_v44 = vsel %vm1328_vm5, %v2403_v42, 0.0 }
 0x290   : > { %v2127_v48 = vpop.f32.mrf.mxu1  ;;  %v3111_v38 = vpack.c.bf16 %v2406_v20, %v2406_v20  ;;  %2563 = vst.msk [vmem:[%s4924_s24 + $0x50] sm:$0xf] %vm299_vm0, %v3108_v16  ;;  %v2404_v2 = vadd.f32 %v2339_v24, %v2115_v39  ;;  %v2717_v23 = vsel %vm1328_vm5, %v2666_v40, 0.0  ;;  %v2669_v26 = vmul.f32 %v2406_v20, %v2406_v20 }
 0x291   : > { %v3346_v27 = vpop.f32.mrf.mxu0  ;;  %v2128_v60 = vadd.f32 %v2127_v48, %v4889_v52  ;;  %v2615_v33 = vadd.f32 %v2614_v44, %v2613_v4  ;;  %v2716_v54 = vadd.f32 %v2715_v12, %v2714_v59  ;;  %v2721_v30 = vsel %vm1328_vm5, %v2668_v11, 0.0 }
 0x292   : > { %v3313_v57 = vpop.f32.mrf.mxu1  ;;  %2566 = vst.msk [vmem:[%s4924_s24 + $0x5c] sm:$0xf] %vm299_vm0, %v3111_v38  ;;  %v2409_v13 = vadd.f32 %v3346_v27, %v2136_v63  ;;  %v3109_v50 = vpack.c.bf16 %v2404_v2, %v2404_v2  ;;  %v2616_v51 = vsel %vm1328_vm5, %v2404_v2, 0.0  ;;  %v2667_v37 = vmul.f32 %v2404_v2, %v2404_v2 }
 0x293   : > { %v2139_v14 = vadd.f32 %v3313_v57, %v4891_v34  ;;  %v2352_v8 = vpop.f32.mrf.mxu0  ;;  %v2718_v17 = vadd.f32 %v2717_v23, %v2716_v54  ;;  %v2617_v52 = vadd.f32 %v2616_v51, %v2615_v33  ;;  %v2620_v28 = vsel %vm1328_vm5, %v2406_v20, 0.0 }
 0x294   : > { %v2130_v22 = vpop.f32.mrf.mxu1  ;;  %v3114_v10 = vpack.c.bf16 %v2409_v13, %v2409_v13  ;;  %2564 = vst.msk [vmem:[%s4924_s24 + $0x54] sm:$0xf] %vm299_vm0, %v3109_v50  ;;  %v2719_v34 = vsel %vm1328_vm5, %v2667_v37, 0.0  ;;  %v2407_v35 = vadd.f32 %v2352_v8, %v2128_v60  ;;  %v2723_v36 = vsel %vm1328_vm5, %v2669_v26, 0.0 }
 0x295   : > { %v3347_v45 = vpop.f32.mrf.mxu0  ;;  %v2131_v25 = vadd.f32 %v2130_v22, %v4895_v15  ;;  %v2619_v55 = vadd.f32 %v2618_v9, %v2617_v52  ;;  %v2720_v56 = vadd.f32 %v2719_v34, %v2718_v17  ;;  %v2672_v18 = vmul.f32 %v2409_v13, %v2409_v13 }
 0x296   : > { %v3316_v62 = vpop.f32.mrf.mxu1  ;;  %2569 = vst.msk [vmem:[%s4924_s24 + $0x68] sm:$0xf] %vm299_vm0, %v3114_v10  ;;  %v2410_v6 = vadd.f32 %v3347_v45, %v2139_v14  ;;  %v3112_v7 = vpack.c.bf16 %v2407_v35, %v2407_v35  ;;  %v2670_v49 = vmul.f32 %v2407_v35, %v2407_v35  ;;  %v2626_v24 = vsel %vm1328_vm5, %v2409_v13, 0.0 }
 0x297   : > { %v2152_v43 = vadd.f32 %v3316_v62, %v4899_v61  ;;  %v2355_v29 = vpop.f32.mrf.mxu0  ;;  %v2722_v15 = vadd.f32 %v2721_v30, %v2720_v56  ;;  %v2621_v46 = vadd.f32 %v2620_v28, %v2619_v55  ;;  %v2622_v61 = vsel %vm1328_vm5, %v2407_v35, 0.0 }
 0x298   : > { %v2143_v41 = vpop.f32.mrf.mxu1  ;;  %v3115_v1 = vpack.c.bf16 %v2410_v6, %v2410_v6  ;;  %2567 = vst.msk [vmem:[%s4924_s24 + $0x60] sm:$0xf] %vm299_vm0, %v3112_v7  ;;  %v2408_v53 = vadd.f32 %v2355_v29, %v2131_v25  ;;  %v2725_v48 = vsel %vm1328_vm5, %v2670_v49, 0.0  ;;  %v2673_v4 = vmul.f32 %v2410_v6, %v2410_v6 }
 0x299   : > { %v3350_v42 = vpop.f32.mrf.mxu0  ;;  %v2144_v47 = vadd.f32 %v2143_v41, %v4903_v21  ;;  %v2623_v39 = vadd.f32 %v2622_v61, %v2621_v46  ;;  %v2724_v3 = vadd.f32 %v2723_v36, %v2722_v15  ;;  %v2729_v60 = vsel %vm1328_vm5, %v2672_v18, 0.0 }
 0x29a   : > { %v3317_v19 = vpop.f32.mrf.mxu1  ;;  %2570 = vst.msk [vmem:[%s4924_s24 + $0x6c] sm:$0xf] %vm299_vm0, %v3115_v1  ;;  %v2413_v58 = vadd.f32 %v3350_v42, %v2152_v43  ;;  %v3113_v0 = vpack.c.bf16 %v2408_v53, %v2408_v53  ;;  %v2624_v5 = vsel %vm1328_vm5, %v2408_v53, 0.0  ;;  %v2671_v16 = vmul.f32 %v2408_v53, %v2408_v53 }
 0x29b   : > { %v2155_v20 = vadd.f32 %v3317_v19, %v4907_v32  ;;  %v2368_v40 = vpop.f32.mrf.mxu0  ;;  %v2726_v21 = vadd.f32 %v2725_v48, %v2724_v3  ;;  %v2625_v12 = vadd.f32 %v2624_v5, %v2623_v39  ;;  %v2628_v33 = vsel %vm1328_vm5, %v2410_v6, 0.0 }
 0x29c   : > { %v2146_v63 = vpop.f32.mrf.mxu1  ;;  %v3118_v59 = vpack.c.bf16 %v2413_v58, %v2413_v58  ;;  %2568 = vst.msk [vmem:[%s4924_s24 + $0x64] sm:$0xf] %vm299_vm0, %v3113_v0  ;;  %v2727_v38 = vsel %vm1328_vm5, %v2671_v16, 0.0  ;;  %v2411_v32 = vadd.f32 %v2368_v40, %v2144_v47  ;;  %v2731_v51 = vsel %vm1328_vm5, %v2673_v4, 0.0 }
 0x29d   : > { %v3351_v57 = vpop.f32.mrf.mxu0  ;;  %v2147_v11 = vadd.f32 %v2146_v63, %v4911_v31  ;;  %v2627_v44 = vadd.f32 %v2626_v24, %v2625_v12  ;;  %v2728_v2 = vadd.f32 %v2727_v38, %v2726_v21  ;;  %v2676_v8 = vmul.f32 %v2413_v58, %v2413_v58 }
 0x29e   : > { %2573 = vst.msk [vmem:[%s4924_s24 + $0x78] sm:$0xf] %vm299_vm0, %v3118_v59  ;;  %v2414_v27 = vadd.f32 %v3351_v57, %v2155_v20  ;;  %v3116_v54 = vpack.c.bf16 %v2411_v32, %v2411_v32  ;;  %v2674_v13 = vmul.f32 %v2411_v32, %v2411_v32  ;;  %v2630_v31 = vsel %vm1328_vm5, %v2411_v32, 0.0 }
 0x29f   : > { %v2371_v14 = vpop.f32.mrf.mxu0  ;;  %v2730_v22 = vadd.f32 %v2729_v60, %v2728_v2  ;;  %v2629_v23 = vadd.f32 %v2628_v33, %v2627_v44  ;;  %v2634_v45 = vsel %vm1328_vm5, %v2413_v58, 0.0  ;;  %v2737_v43 = vsel %vm1328_vm5, %v2676_v8, 0.0 }
 0x2a0   : > { %v3119_v50 = vpack.c.bf16 %v2414_v27, %v2414_v27  ;;  %2571 = vst.msk [vmem:[%s4924_s24 + $0x70] sm:$0xf] %vm299_vm0, %v3116_v54  ;;  %v2412_v37 = vadd.f32 %v2371_v14, %v2147_v11  ;;  %v2733_v52 = vsel %vm1328_vm5, %v2674_v13, 0.0  ;;  %v2677_v25 = vmul.f32 %v2414_v27, %v2414_v27 }
 0x2a1   : > { %v2631_v17 = vadd.f32 %v2630_v31, %v2629_v23  ;;  %v2732_v26 = vadd.f32 %v2731_v51, %v2730_v22  ;;  %v2636_v41 = vsel %vm1328_vm5, %v2414_v27, 0.0 }
 0x2a2   : > { %2574 = vst.msk [vmem:[%s4924_s24 + $0x7c] sm:$0xf] %vm299_vm0, %v3119_v50  ;;  %v3117_v10 = vpack.c.bf16 %v2412_v37, %v2412_v37  ;;  %v2632_v62 = vsel %vm1328_vm5, %v2412_v37, 0.0  ;;  %v2675_v9 = vmul.f32 %v2412_v37, %v2412_v37  ;;  %v2739_v7 = vsel %vm1328_vm5, %v2677_v25, 0.0 }
 0x2a3   : > { %v2734_v34 = vadd.f32 %v2733_v52, %v2732_v26  ;;  %v2633_v35 = vadd.f32 %v2632_v62, %v2631_v17 }
 0x2a4   : > { %2572 = vst.msk [vmem:[%s4924_s24 + $0x74] sm:$0xf] %vm299_vm0, %v3117_v10  ;;  %v2735_v55 = vsel %vm1328_vm5, %v2675_v9, 0.0  ;;  %vm2644_vm0 = vcmask 24576  }
 0x2a5   : > { %v2635_v56 = vadd.f32 %v2634_v45, %v2633_v35  ;;  %v2736_v6 = vadd.f32 %v2735_v55, %v2734_v34 }
 0x2a7   : > { %v2637_v30 = vadd.f32 %v2636_v41, %v2635_v56  ;;  %v2738_v28 = vadd.f32 %v2737_v43, %v2736_v6 }
 0x2a9   : > { %v2638_v49 = vrot.slane %v2637_v30, 4  ;;  %v2740_v29 = vadd.f32 %v2739_v7, %v2738_v28 }
 0x2ab   : > { %v2639_v36 = vadd.f32 %v2638_v49, %v2637_v30  ;;  %v2741_v15 = vrot.slane %v2740_v29, 4 }
 0x2ad   : > { %v2640_v46 = vrot.slane %v2639_v36, 2  ;;  %v2742_v1 = vadd.f32 %v2741_v15, %v2740_v29 }
 0x2af   : > { %v2641_v19 = vadd.f32 %v2640_v46, %v2639_v36  ;;  %v2743_v18 = vrot.slane %v2742_v1, 2 }
 0x2b1   : > { %v2642_v61 = vrot.slane %v2641_v19, 1  ;;  %v2744_v53 = vadd.f32 %v2743_v18, %v2742_v1 }
 0x2b3   : > { %v2643_v42 = vadd.f32 %v2642_v61, %v2641_v19  ;;  %v2745_v47 = vrot.slane %v2744_v53, 1 }
 0x2b5   : > { %2645 = vst.msk [vmem:[%s294_s28] sm:$0x1] %vm2644_vm0, %v2643_v42  ;;  %v2746_v39 = vadd.f32 %v2745_v47, %v2744_v53 }
 0x2b7   : > { %2747 = vst.msk [vmem:[%s297_s8] sm:$0x1] %vm2644_vm0, %v2746_v39 }
 0x2b8 PF: > { %s20_s26 = sadd.s32 1, %s3421_s26  }
 0x2b9   : > { %p17_p4 = scmp.ge.s32.totalorder %s20_s26, 4  }
 0x2bb   :  { %19 = sbr.rel (!%p17_p4) target bundleno = 3 (0x3), region = 96 }

</bundles_post_ra>
